<compile_context>
chip_gen: v7x
topology: tpu7x:2x2x1
jax: 0.10.0
libtpu: 0.0.40
codegen_flags: <defaults>
</compile_context>

<pallas_src>
import functools

import jax
import jax.numpy as jnp
from jax.experimental import pallas as pl
from jax.experimental.pallas import tpu as pltpu

EPS = 1e-5


# ---------------------------------------------------------------------------
# Stage 1/2 kernel: (optional fused BN-apply + PReLU) -> conv -> partial stats
# ---------------------------------------------------------------------------
def conv_stats_kernel(x_ref, w_ref, *rest, k: int, apply_act: bool):
    if apply_act:
        (scale_ref, shift_ref, a_ref,
         y_ref, sum_ref, sq_ref, pad_ref, col_ref) = rest
    else:
        y_ref, sum_ref, sq_ref, pad_ref, col_ref = rest

    _, H, W, C = x_ref.shape
    p = k // 2

    # Re-zero only the halo border of the padded scratch (the interior is
    # fully overwritten below).  Done every grid step so the kernel is correct
    # when the "parallel" batch axis is sharded across TensorCores.
    if p > 0:
        pad_ref[:, :p, :, :] = jnp.zeros((1, p, W + 2 * p, C), jnp.float32)
        pad_ref[:, p + H:, :, :] = jnp.zeros((1, p, W + 2 * p, C), jnp.float32)
        pad_ref[:, :, :p, :] = jnp.zeros((1, H + 2 * p, p, C), jnp.float32)
        pad_ref[:, :, p + W:, :] = jnp.zeros((1, H + 2 * p, p, C), jnp.float32)

    v = x_ref[...]
    if apply_act:
        # Fused BN1 (pre-folded scale/shift) + shared-slope PReLU on the
        # conv2 input, written straight into the padded scratch (no separate
        # y1 activation materialization / extra VMEM round trip).
        v = v * scale_ref[...] + shift_ref[...]
        v = jnp.maximum(v, 0.0) + a_ref[...] * jnp.minimum(v, 0.0)
    pad_ref[:, p:p + H, p:p + W, :] = v

    # im2col: k*k shifted copies into one (H*W, k*k*C) buffer ...
    for dy in range(k):
        for dx in range(k):
            t = (dy * k + dx) * C
            col_ref[:, t:t + C] = (
                pad_ref[:, dy:dy + H, dx:dx + W, :].reshape(H * W, C))

    # ... then a SINGLE MXU matmul for the whole conv (contraction = k*k*C).
    acc = jnp.dot(col_ref[...], w_ref[...], preferred_element_type=jnp.float32)
    # TODO(synk): on v6e/v7x the matmul operands could be cast to bf16 (f32
    # accumulation) for ~2x MXU throughput; kept f32 to stay tight vs the
    # f32 reference check below.

    y_ref[0] = acc
    # One-pass BN statistics for this tile: per-channel sum and sum-of-squares
    # (folded into scale/shift between stages by the wrapper).
    sum_ref[0] = jnp.sum(acc, axis=0, keepdims=True)
    sq_ref[0] = jnp.sum(acc * acc, axis=0, keepdims=True)


def _conv_stats_call(x_nhwc, w_mat, k, act=None):
    """Conv (+optional fused pre-activation) over a batch-parallel grid."""
    N, H, W, C = x_nhwc.shape
    p = k // 2
    kkc = k * k * C
    apply_act = act is not None

    in_arrays = [x_nhwc, w_mat]
    in_specs = [
        pl.BlockSpec((1, H, W, C), lambda i: (i, 0, 0, 0)),
        pl.BlockSpec((kkc, C), lambda i: (0, 0)),
    ]
    if apply_act:
        scale, shift, a_vec = act
        in_arrays += [scale, shift, a_vec]
        in_specs += [
            pl.BlockSpec((1, C), lambda i: (0, 0)),
            pl.BlockSpec((1, C), lambda i: (0, 0)),
            pl.BlockSpec((1, C), lambda i: (0, 0)),
        ]

    kernel = functools.partial(conv_stats_kernel, k=k, apply_act=apply_act)
    return pl.pallas_call(
        kernel,
        grid=(N,),
        in_specs=in_specs,
        out_specs=(
            pl.BlockSpec((1, H * W, C), lambda i: (i, 0, 0)),
            pl.BlockSpec((1, 1, C), lambda i: (i, 0, 0)),
            pl.BlockSpec((1, 1, C), lambda i: (i, 0, 0)),
        ),
        out_shape=(
            jax.ShapeDtypeStruct((N, H * W, C), jnp.float32),  # raw conv out
            jax.ShapeDtypeStruct((N, 1, C), jnp.float32),      # per-tile sum
            jax.ShapeDtypeStruct((N, 1, C), jnp.float32),      # per-tile sumsq
        ),
        scratch_shapes=[
            pltpu.VMEM((1, H + 2 * p, W + 2 * p, C), jnp.float32),  # padded in
            pltpu.VMEM((H * W, kkc), jnp.float32),                  # im2col
        ],
        compiler_params=pltpu.CompilerParams(
            dimension_semantics=("parallel",)),
    )(*in_arrays)


# ---------------------------------------------------------------------------
# Stage 3 kernel: lane-dense BN2 apply + residual add
# ---------------------------------------------------------------------------
def bn_residual_kernel(y_ref, x_ref, scale_ref, shift_ref, o_ref):
    # All refs are (rows, W*C) lane-dense views; scale/shift are per-channel
    # values pre-tiled to width W*C by the wrapper, so every load/store is a
    # full-lane vreg op (no masked C-wide stores).
    o_ref[...] = y_ref[...] * scale_ref[...] + shift_ref[...] + x_ref[...]


def _bn_residual_call(y_flat, x_flat, scale_t, shift_t, N, H, WC):
    return pl.pallas_call(
        bn_residual_kernel,
        grid=(N,),
        in_specs=[
            pl.BlockSpec((H, WC), lambda i: (i, 0)),
            pl.BlockSpec((H, WC), lambda i: (i, 0)),
            pl.BlockSpec((1, WC), lambda i: (0, 0)),
            pl.BlockSpec((1, WC), lambda i: (0, 0)),
        ],
        out_specs=pl.BlockSpec((H, WC), lambda i: (i, 0)),
        out_shape=jax.ShapeDtypeStruct((N * H, WC), jnp.float32),
        compiler_params=pltpu.CompilerParams(
            dimension_semantics=("parallel",)),
    )(y_flat, x_flat, scale_t, shift_t)


# ---------------------------------------------------------------------------
# Wrapper
# ---------------------------------------------------------------------------
def _fold_bn(sum_tiles, sq_tiles, gamma, beta, inv_count):
    """Combine per-tile (sum, sumsq) into folded train-mode BN scale/shift."""
    mean = jnp.sum(sum_tiles, axis=0) * inv_count            # (1, C)
    var = jnp.sum(sq_tiles, axis=0) * inv_count - mean * mean
    scale = gamma * jax.lax.rsqrt(var + EPS)
    shift = beta - mean * scale
    return scale, shift


@jax.jit
def residual_block(x_nchw, params):
    # NCHW (PyTorch) -> NHWC (channels on the lane axis) -> back to NCHW.
    x = jnp.transpose(x_nchw, (0, 2, 3, 1)).astype(jnp.float32)
    N, H, W, C = x.shape
    k = params["w1"].shape[0]
    assert k % 2 == 1, "only odd kernel_size ('same' conv) is supported"
    kkc = k * k * C
    inv_count = 1.0 / float(N * H * W)

    # Conv weights (kH,kW,Cin,Cout) -> (kH*kW*Cin, Cout): one matmul per conv.
    w1 = params["w1"].reshape(kkc, C)
    w2 = params["w2"].reshape(kkc, C)
    # Conv biases b1/b2 are exactly cancelled by training-mode BN's mean
    # subtraction, so they are intentionally never passed to the kernels.
    a_vec = jnp.broadcast_to(params["a"].reshape(1, 1), (1, C)).astype(jnp.float32)

    # Stage 1: conv1 + per-tile channel stats.
    y1, s1, q1 = _conv_stats_call(x, w1, k)
    scale1, shift1 = _fold_bn(s1, q1, params["g1"], params["be1"], inv_count)

    # Stage 2: fused BN1-apply + PReLU + conv2 + per-tile channel stats.
    y1_nhwc = y1.reshape(N, H, W, C)                       # free: same layout
    y2, s2, q2 = _conv_stats_call(y1_nhwc, w2, k, act=(scale1, shift1, a_vec))
    scale2, shift2 = _fold_bn(s2, q2, params["g2"], params["be2"], inv_count)

    # Stage 3: lane-dense BN2-apply + residual add on a (N*H, W*C) view.
    WC = W * C
    y2_flat = y2.reshape(N * H, WC)                        # free reshapes
    x_flat = x.reshape(N * H, WC)
    scale_t = jnp.tile(scale2, (1, W))                     # col j -> channel j % C
    shift_t = jnp.tile(shift2, (1, W))
    out = _bn_residual_call(y2_flat, x_flat, scale_t, shift_t, N, H, WC)

    return jnp.transpose(out.reshape(N, H, W, C), (0, 3, 1, 2))


# ---------------------------------------------------------------------------
# Parameters & pure-JAX reference (for verification)
# ---------------------------------------------------------------------------
def init_params(key, channels, kernel_size):
    """Deterministic init mimicking PyTorch defaults (shapes/scales)."""
    k1, k2, k3, k4 = jax.random.split(key, 4)
    fan_in = channels * kernel_size * kernel_size
    bound = 1.0 / jnp.sqrt(fan_in)
    u = lambda kk, shape: jax.random.uniform(kk, shape, jnp.float32, -bound, bound)
    return {
        # conv weights stored as (kH, kW, Cin, Cout)
        "w1": u(k1, (kernel_size, kernel_size, channels, channels)),
        "b1": u(k2, (1, channels)),          # used only by the reference
        "g1": jnp.ones((1, channels), jnp.float32),
        "be1": jnp.zeros((1, channels), jnp.float32),
        "a": jnp.array([0.25], jnp.float32),  # nn.PReLU() default
        "w2": u(k3, (kernel_size, kernel_size, channels, channels)),
        "b2": u(k4, (1, channels)),          # used only by the reference
        "g2": jnp.ones((1, channels), jnp.float32),
        "be2": jnp.zeros((1, channels), jnp.float32),
    }


def reference_forward(x_nchw, params):
    """Pure-JAX (XLA) reference of the same forward pass (with conv bias)."""
    k = params["w1"].shape[0]
    p = k // 2

    def conv_bn(x, w_khwio, b, g, be):
        w_oihw = jnp.transpose(w_khwio, (3, 2, 0, 1))
        y = jax.lax.conv_general_dilated(
            x, w_oihw, window_strides=(1, 1), padding=[(p, p), (p, p)],
            dimension_numbers=("NCHW", "OIHW", "NCHW"))
        y = y + b.reshape(1, -1, 1, 1)
        mean = jnp.mean(y, axis=(0, 2, 3), keepdims=True)
        var = jnp.mean((y - mean) ** 2, axis=(0, 2, 3), keepdims=True)
        y = (y - mean) * jax.lax.rsqrt(var + EPS)
        return y * g.reshape(1, -1, 1, 1) + be.reshape(1, -1, 1, 1)

    y = conv_bn(x_nchw, params["w1"], params["b1"], params["g1"], params["be1"])
    a = params["a"][0]
    y = jnp.maximum(y, 0.0) + a * jnp.minimum(y, 0.0)
    y = conv_bn(y, params["w2"], params["b2"], params["g2"], params["be2"])
    return y + x_nchw


if __name__ == "__main__":
    key = jax.random.PRNGKey(0)
    kx, kp = jax.random.split(key)

    batch, channels, hw, kernel_size = 2, 8, 16, 3
    x = jax.random.normal(kx, (batch, channels, hw, hw), jnp.float32)  # NCHW
    params = init_params(kp, channels, kernel_size)

    out = jax.block_until_ready(residual_block(x, params))
    ref = jax.block_until_ready(reference_forward(x, params))

    assert out.shape == x.shape and out.dtype == jnp.float32
    assert jnp.allclose(out, ref, rtol=1e-3, atol=1e-3), "mismatch vs reference"

    print("KERNEL_OK")
</pallas_src>

<mosaic_0001>
module attributes {stable_mosaic.version = 11 : i64} {
  func.func @conv_stats_kernel(%arg0: i32, %arg1: memref<1x16x16x8xf32, #tpu.memory_space<vmem>>, %arg2: memref<72x8xf32, #tpu.memory_space<vmem>>, %arg3: memref<1x256x8xf32, #tpu.memory_space<vmem>>, %arg4: memref<1x1x8xf32, #tpu.memory_space<vmem>>, %arg5: memref<1x1x8xf32, #tpu.memory_space<vmem>>, %arg6: memref<1x18x18x8xf32, #tpu.memory_space<vmem>>, %arg7: memref<256x72xf32, #tpu.memory_space<vmem>>) attributes {dimension_semantics = [#tpu.dimension_semantics<parallel>], iteration_bounds = array<i64: 2>, scalar_prefetch = 0 : i64, scratch_operands = 2 : i64, tpu.core_type = #tpu.core_type<tc>, window_params = [{transform_indices = @transform_0, window_bounds = array<i64: 1, 16, 16, 8>}, {pipeline_mode = #tpu.pipeline_mode<synchronous>, transform_indices = @transform_1, window_bounds = array<i64: 72, 8>}, {transform_indices = @transform_2, window_bounds = array<i64: 1, 256, 8>}, {transform_indices = @transform_3, window_bounds = array<i64: 1, 1, 8>}, {transform_indices = @transform_4, window_bounds = array<i64: 1, 1, 8>}]} {
    %cst = arith.constant 0.000000e+00 : f32
    %0 = vector.broadcast %cst : f32 to vector<1x1x18x8xf32>
    %c0 = arith.constant 0 : index
    %c0_0 = arith.constant 0 : index
    %c0_1 = arith.constant 0 : index
    %c0_2 = arith.constant 0 : index
    %1 = vector.load %arg6[%c0, %c0_0, %c0_1, %c0_2] : memref<1x18x18x8xf32, #tpu.memory_space<vmem>>, vector<1x1x18x8xf32>
    tpu.vector_store %arg6[%c0, %c0_0, %c0_1, %c0_2], %0 {strides = array<i32>} : memref<1x18x18x8xf32, #tpu.memory_space<vmem>>, vector<1x1x18x8xf32>,
    %cst_3 = arith.constant 0.000000e+00 : f32
    %2 = vector.broadcast %cst_3 : f32 to vector<1x1x18x8xf32>
    %c0_4 = arith.constant 0 : index
    %c17 = arith.constant 17 : index
    %c0_5 = arith.constant 0 : index
    %c0_6 = arith.constant 0 : index
    %3 = vector.load %arg6[%c0_4, %c17, %c0_5, %c0_6] : memref<1x18x18x8xf32, #tpu.memory_space<vmem>>, vector<1x1x18x8xf32>
    tpu.vector_store %arg6[%c0_4, %c17, %c0_5, %c0_6], %2 {strides = array<i32>} : memref<1x18x18x8xf32, #tpu.memory_space<vmem>>, vector<1x1x18x8xf32>,
    %cst_7 = arith.constant 0.000000e+00 : f32
    %4 = vector.broadcast %cst_7 : f32 to vector<1x18x1x8xf32>
    %c0_8 = arith.constant 0 : index
    %c0_9 = arith.constant 0 : index
    %c0_10 = arith.constant 0 : index
    %c0_11 = arith.constant 0 : index
    %5 = vector.load %arg6[%c0_8, %c0_9, %c0_10, %c0_11] : memref<1x18x18x8xf32, #tpu.memory_space<vmem>>, vector<1x18x1x8xf32>
    tpu.vector_store %arg6[%c0_8, %c0_9, %c0_10, %c0_11], %4 {strides = array<i32>} : memref<1x18x18x8xf32, #tpu.memory_space<vmem>>, vector<1x18x1x8xf32>,
    %cst_12 = arith.constant 0.000000e+00 : f32
    %6 = vector.broadcast %cst_12 : f32 to vector<1x18x1x8xf32>
    %c0_13 = arith.constant 0 : index
    %c0_14 = arith.constant 0 : index
    %c17_15 = arith.constant 17 : index
    %c0_16 = arith.constant 0 : index
    %7 = vector.load %arg6[%c0_13, %c0_14, %c17_15, %c0_16] : memref<1x18x18x8xf32, #tpu.memory_space<vmem>>, vector<1x18x1x8xf32>
    tpu.vector_store %arg6[%c0_13, %c0_14, %c17_15, %c0_16], %6 {strides = array<i32>} : memref<1x18x18x8xf32, #tpu.memory_space<vmem>>, vector<1x18x1x8xf32>,
    %c0_17 = arith.constant 0 : index
    %c0_18 = arith.constant 0 : index
    %c0_19 = arith.constant 0 : index
    %c0_20 = arith.constant 0 : index
    %8 = vector.load %arg1[%c0_17, %c0_18, %c0_19, %c0_20] : memref<1x16x16x8xf32, #tpu.memory_space<vmem>>, vector<1x16x16x8xf32>
    %c0_21 = arith.constant 0 : index
    %c1 = arith.constant 1 : index
    %c1_22 = arith.constant 1 : index
    %c0_23 = arith.constant 0 : index
    %9 = vector.load %arg6[%c0_21, %c1, %c1_22, %c0_23] : memref<1x18x18x8xf32, #tpu.memory_space<vmem>>, vector<1x16x16x8xf32>
    tpu.vector_store %arg6[%c0_21, %c1, %c1_22, %c0_23], %8 {strides = array<i32>} : memref<1x18x18x8xf32, #tpu.memory_space<vmem>>, vector<1x16x16x8xf32>,
    %c0_24 = arith.constant 0 : index
    %c0_25 = arith.constant 0 : index
    %c0_26 = arith.constant 0 : index
    %c0_27 = arith.constant 0 : index
    %10 = vector.load %arg6[%c0_24, %c0_25, %c0_26, %c0_27] : memref<1x18x18x8xf32, #tpu.memory_space<vmem>>, vector<1x16x16x8xf32>
    %11 = vector.shape_cast %10 : vector<1x16x16x8xf32> to vector<256x8xf32>
    %c0_28 = arith.constant 0 : index
    %c0_29 = arith.constant 0 : index
    %12 = vector.load %arg7[%c0_28, %c0_29] : memref<256x72xf32, #tpu.memory_space<vmem>>, vector<256x8xf32>
    tpu.vector_store %arg7[%c0_28, %c0_29], %11 {strides = array<i32>} : memref<256x72xf32, #tpu.memory_space<vmem>>, vector<256x8xf32>,
    %c0_30 = arith.constant 0 : index
    %c0_31 = arith.constant 0 : index
    %c1_32 = arith.constant 1 : index
    %c0_33 = arith.constant 0 : index
    %13 = vector.load %arg6[%c0_30, %c0_31, %c1_32, %c0_33] : memref<1x18x18x8xf32, #tpu.memory_space<vmem>>, vector<1x16x16x8xf32>
    %14 = vector.shape_cast %13 : vector<1x16x16x8xf32> to vector<256x8xf32>
    %c0_34 = arith.constant 0 : index
    %c8 = arith.constant 8 : index
    %15 = vector.load %arg7[%c0_34, %c8] : memref<256x72xf32, #tpu.memory_space<vmem>>, vector<256x8xf32>
    tpu.vector_store %arg7[%c0_34, %c8], %14 {strides = array<i32>} : memref<256x72xf32, #tpu.memory_space<vmem>>, vector<256x8xf32>,
    %c0_35 = arith.constant 0 : index
    %c0_36 = arith.constant 0 : index
    %c2 = arith.constant 2 : index
    %c0_37 = arith.constant 0 : index
    %16 = vector.load %arg6[%c0_35, %c0_36, %c2, %c0_37] : memref<1x18x18x8xf32, #tpu.memory_space<vmem>>, vector<1x16x16x8xf32>
    %17 = vector.shape_cast %16 : vector<1x16x16x8xf32> to vector<256x8xf32>
    %c0_38 = arith.constant 0 : index
    %c16 = arith.constant 16 : index
    %18 = vector.load %arg7[%c0_38, %c16] : memref<256x72xf32, #tpu.memory_space<vmem>>, vector<256x8xf32>
    tpu.vector_store %arg7[%c0_38, %c16], %17 {strides = array<i32>} : memref<256x72xf32, #tpu.memory_space<vmem>>, vector<256x8xf32>,
    %c0_39 = arith.constant 0 : index
    %c1_40 = arith.constant 1 : index
    %c0_41 = arith.constant 0 : index
    %c0_42 = arith.constant 0 : index
    %19 = vector.load %arg6[%c0_39, %c1_40, %c0_41, %c0_42] : memref<1x18x18x8xf32, #tpu.memory_space<vmem>>, vector<1x16x16x8xf32>
    %20 = vector.shape_cast %19 : vector<1x16x16x8xf32> to vector<256x8xf32>
    %c0_43 = arith.constant 0 : index
    %c24 = arith.constant 24 : index
    %21 = vector.load %arg7[%c0_43, %c24] : memref<256x72xf32, #tpu.memory_space<vmem>>, vector<256x8xf32>
    tpu.vector_store %arg7[%c0_43, %c24], %20 {strides = array<i32>} : memref<256x72xf32, #tpu.memory_space<vmem>>, vector<256x8xf32>,
    %c0_44 = arith.constant 0 : index
    %c1_45 = arith.constant 1 : index
    %c1_46 = arith.constant 1 : index
    %c0_47 = arith.constant 0 : index
    %22 = vector.load %arg6[%c0_44, %c1_45, %c1_46, %c0_47] : memref<1x18x18x8xf32, #tpu.memory_space<vmem>>, vector<1x16x16x8xf32>
    %23 = vector.shape_cast %22 : vector<1x16x16x8xf32> to vector<256x8xf32>
    %c0_48 = arith.constant 0 : index
    %c32 = arith.constant 32 : index
    %24 = vector.load %arg7[%c0_48, %c32] : memref<256x72xf32, #tpu.memory_space<vmem>>, vector<256x8xf32>
    tpu.vector_store %arg7[%c0_48, %c32], %23 {strides = array<i32>} : memref<256x72xf32, #tpu.memory_space<vmem>>, vector<256x8xf32>,
    %c0_49 = arith.constant 0 : index
    %c1_50 = arith.constant 1 : index
    %c2_51 = arith.constant 2 : index
    %c0_52 = arith.constant 0 : index
    %25 = vector.load %arg6[%c0_49, %c1_50, %c2_51, %c0_52] : memref<1x18x18x8xf32, #tpu.memory_space<vmem>>, vector<1x16x16x8xf32>
    %26 = vector.shape_cast %25 : vector<1x16x16x8xf32> to vector<256x8xf32>
    %c0_53 = arith.constant 0 : index
    %c40 = arith.constant 40 : index
    %27 = vector.load %arg7[%c0_53, %c40] : memref<256x72xf32, #tpu.memory_space<vmem>>, vector<256x8xf32>
    tpu.vector_store %arg7[%c0_53, %c40], %26 {strides = array<i32>} : memref<256x72xf32, #tpu.memory_space<vmem>>, vector<256x8xf32>,
    %c0_54 = arith.constant 0 : index
    %c2_55 = arith.constant 2 : index
    %c0_56 = arith.constant 0 : index
    %c0_57 = arith.constant 0 : index
    %28 = vector.load %arg6[%c0_54, %c2_55, %c0_56, %c0_57] : memref<1x18x18x8xf32, #tpu.memory_space<vmem>>, vector<1x16x16x8xf32>
    %29 = vector.shape_cast %28 : vector<1x16x16x8xf32> to vector<256x8xf32>
    %c0_58 = arith.constant 0 : index
    %c48 = arith.constant 48 : index
    %30 = vector.load %arg7[%c0_58, %c48] : memref<256x72xf32, #tpu.memory_space<vmem>>, vector<256x8xf32>
    tpu.vector_store %arg7[%c0_58, %c48], %29 {strides = array<i32>} : memref<256x72xf32, #tpu.memory_space<vmem>>, vector<256x8xf32>,
    %c0_59 = arith.constant 0 : index
    %c2_60 = arith.constant 2 : index
    %c1_61 = arith.constant 1 : index
    %c0_62 = arith.constant 0 : index
    %31 = vector.load %arg6[%c0_59, %c2_60, %c1_61, %c0_62] : memref<1x18x18x8xf32, #tpu.memory_space<vmem>>, vector<1x16x16x8xf32>
    %32 = vector.shape_cast %31 : vector<1x16x16x8xf32> to vector<256x8xf32>
    %c0_63 = arith.constant 0 : index
    %c56 = arith.constant 56 : index
    %33 = vector.load %arg7[%c0_63, %c56] : memref<256x72xf32, #tpu.memory_space<vmem>>, vector<256x8xf32>
    tpu.vector_store %arg7[%c0_63, %c56], %32 {strides = array<i32>} : memref<256x72xf32, #tpu.memory_space<vmem>>, vector<256x8xf32>,
    %c0_64 = arith.constant 0 : index
    %c2_65 = arith.constant 2 : index
    %c2_66 = arith.constant 2 : index
    %c0_67 = arith.constant 0 : index
    %34 = vector.load %arg6[%c0_64, %c2_65, %c2_66, %c0_67] : memref<1x18x18x8xf32, #tpu.memory_space<vmem>>, vector<1x16x16x8xf32>
    %35 = vector.shape_cast %34 : vector<1x16x16x8xf32> to vector<256x8xf32>
    %c0_68 = arith.constant 0 : index
    %c64 = arith.constant 64 : index
    %36 = vector.load %arg7[%c0_68, %c64] : memref<256x72xf32, #tpu.memory_space<vmem>>, vector<256x8xf32>
    tpu.vector_store %arg7[%c0_68, %c64], %35 {strides = array<i32>} : memref<256x72xf32, #tpu.memory_space<vmem>>, vector<256x8xf32>,
    %c0_69 = arith.constant 0 : index
    %c0_70 = arith.constant 0 : index
    %37 = vector.load %arg7[%c0_69, %c0_70] : memref<256x72xf32, #tpu.memory_space<vmem>>, vector<256x72xf32>
    %c0_71 = arith.constant 0 : index
    %c0_72 = arith.constant 0 : index
    %38 = vector.load %arg2[%c0_71, %c0_72] : memref<72x8xf32, #tpu.memory_space<vmem>>, vector<72x8xf32>
    %cst_73 = arith.constant dense<0.000000e+00> : vector<256x8xf32>
    %39 = tpu.matmul %37, %38, %cst_73 {dimension_numbers = #tpu.dot_dimension_numbers<[1], [0], [0], [1], [0, 0, 1, 1], [], []>} : vector<256x72xf32>, vector<72x8xf32>, vector<256x8xf32> -> vector<256x8xf32>
    %c0_74 = arith.constant 0 : index
    %c0_75 = arith.constant 0 : index
    %c0_76 = arith.constant 0 : index
    %40 = vector.load %arg3[%c0_74, %c0_75, %c0_76] : memref<1x256x8xf32, #tpu.memory_space<vmem>>, vector<1x256x8xf32>
    %41 = vector.shape_cast %40 : vector<1x256x8xf32> to vector<256x8xf32>
    %42 = vector.shape_cast %39 : vector<256x8xf32> to vector<1x256x8xf32>
    tpu.vector_store %arg3[%c0_74, %c0_75, %c0_76], %42 {strides = array<i32>} : memref<1x256x8xf32, #tpu.memory_space<vmem>>, vector<1x256x8xf32>,
    %cst_77 = arith.constant dense<0.000000e+00> : vector<8xf32>
    %43 = vector.multi_reduction <add>, %39, %cst_77 [0] : vector<256x8xf32> to vector<8xf32>
    %44 = vector.shape_cast %43 : vector<8xf32> to vector<1x8xf32>
    %c0_78 = arith.constant 0 : index
    %c0_79 = arith.constant 0 : index
    %c0_80 = arith.constant 0 : index
    %45 = vector.load %arg4[%c0_78, %c0_79, %c0_80] : memref<1x1x8xf32, #tpu.memory_space<vmem>>, vector<1x1x8xf32>
    %46 = vector.shape_cast %45 : vector<1x1x8xf32> to vector<1x8xf32>
    %47 = vector.shape_cast %44 : vector<1x8xf32> to vector<1x1x8xf32>
    tpu.vector_store %arg4[%c0_78, %c0_79, %c0_80], %47 {strides = array<i32>} : memref<1x1x8xf32, #tpu.memory_space<vmem>>, vector<1x1x8xf32>,
    %48 = arith.mulf %39, %39 : vector<256x8xf32>
    %cst_81 = arith.constant dense<0.000000e+00> : vector<8xf32>
    %49 = vector.multi_reduction <add>, %48, %cst_81 [0] : vector<256x8xf32> to vector<8xf32>
    %50 = vector.shape_cast %49 : vector<8xf32> to vector<1x8xf32>
    %c0_82 = arith.constant 0 : index
    %c0_83 = arith.constant 0 : index
    %c0_84 = arith.constant 0 : index
    %51 = vector.load %arg5[%c0_82, %c0_83, %c0_84] : memref<1x1x8xf32, #tpu.memory_space<vmem>>, vector<1x1x8xf32>
    %52 = vector.shape_cast %51 : vector<1x1x8xf32> to vector<1x8xf32>
    %53 = vector.shape_cast %50 : vector<1x8xf32> to vector<1x1x8xf32>
    tpu.vector_store %arg5[%c0_82, %c0_83, %c0_84], %53 {strides = array<i32>} : memref<1x1x8xf32, #tpu.memory_space<vmem>>, vector<1x1x8xf32>,
    return
  }
  func.func @transform_0(%arg0: i32) -> (i32, i32, i32, i32) {
    %c0_i32 = arith.constant 0 : i32
    %c0_i32_0 = arith.constant 0 : i32
    %c0_i32_1 = arith.constant 0 : i32
    %c0_i32_2 = arith.constant 0 : i32
    return %arg0, %c0_i32, %c0_i32_0, %c0_i32_1 : i32, i32, i32, i32
  }
  func.func @transform_1(%arg0: i32) -> (i32, i32) {
    %c0_i32 = arith.constant 0 : i32
    %c0_i32_0 = arith.constant 0 : i32
    %c0_i32_1 = arith.constant 0 : i32
    return %c0_i32, %c0_i32_0 : i32, i32
  }
  func.func @transform_2(%arg0: i32) -> (i32, i32, i32) {
    %c0_i32 = arith.constant 0 : i32
    %c0_i32_0 = arith.constant 0 : i32
    %c0_i32_1 = arith.constant 0 : i32
    return %arg0, %c0_i32, %c0_i32_0 : i32, i32, i32
  }
  func.func @transform_3(%arg0: i32) -> (i32, i32, i32) {
    %c0_i32 = arith.constant 0 : i32
    %c0_i32_0 = arith.constant 0 : i32
    %c0_i32_1 = arith.constant 0 : i32
    return %arg0, %c0_i32, %c0_i32_0 : i32, i32, i32
  }
  func.func @transform_4(%arg0: i32) -> (i32, i32, i32) {
    %c0_i32 = arith.constant 0 : i32
    %c0_i32_0 = arith.constant 0 : i32
    %c0_i32_1 = arith.constant 0 : i32
    return %arg0, %c0_i32, %c0_i32_0 : i32, i32, i32
  }
}

module attributes {stable_mosaic.version = 11 : i64} {
  func.func @conv_stats_kernel(%arg0: i32, %arg1: memref<1x16x16x8xf32, #tpu.memory_space<vmem>>, %arg2: memref<72x8xf32, #tpu.memory_space<vmem>>, %arg3: memref<1x8xf32, #tpu.memory_space<vmem>>, %arg4: memref<1x8xf32, #tpu.memory_space<vmem>>, %arg5: memref<1x8xf32, #tpu.memory_space<vmem>>, %arg6: memref<1x256x8xf32, #tpu.memory_space<vmem>>, %arg7: memref<1x1x8xf32, #tpu.memory_space<vmem>>, %arg8: memref<1x1x8xf32, #tpu.memory_space<vmem>>, %arg9: memref<1x18x18x8xf32, #tpu.memory_space<vmem>>, %arg10: memref<256x72xf32, #tpu.memory_space<vmem>>) attributes {dimension_semantics = [#tpu.dimension_semantics<parallel>], iteration_bounds = array<i64: 2>, scalar_prefetch = 0 : i64, scratch_operands = 2 : i64, tpu.core_type = #tpu.core_type<tc>, window_params = [{transform_indices = @transform_0, window_bounds = array<i64: 1, 16, 16, 8>}, {pipeline_mode = #tpu.pipeline_mode<synchronous>, transform_indices = @transform_1, window_bounds = array<i64: 72, 8>}, {pipeline_mode = #tpu.pipeline_mode<synchronous>, transform_indices = @transform_2, window_bounds = array<i64: 1, 8>}, {pipeline_mode = #tpu.pipeline_mode<synchronous>, transform_indices = @transform_3, window_bounds = array<i64: 1, 8>}, {pipeline_mode = #tpu.pipeline_mode<synchronous>, transform_indices = @transform_4, window_bounds = array<i64: 1, 8>}, {transform_indices = @transform_5, window_bounds = array<i64: 1, 256, 8>}, {transform_indices = @transform_6, window_bounds = array<i64: 1, 1, 8>}, {transform_indices = @transform_7, window_bounds = array<i64: 1, 1, 8>}]} {
    %cst = arith.constant 0.000000e+00 : f32
    %0 = vector.broadcast %cst : f32 to vector<1x1x18x8xf32>
    %c0 = arith.constant 0 : index
    %c0_0 = arith.constant 0 : index
    %c0_1 = arith.constant 0 : index
    %c0_2 = arith.constant 0 : index
    %1 = vector.load %arg9[%c0, %c0_0, %c0_1, %c0_2] : memref<1x18x18x8xf32, #tpu.memory_space<vmem>>, vector<1x1x18x8xf32>
    tpu.vector_store %arg9[%c0, %c0_0, %c0_1, %c0_2], %0 {strides = array<i32>} : memref<1x18x18x8xf32, #tpu.memory_space<vmem>>, vector<1x1x18x8xf32>,
    %cst_3 = arith.constant 0.000000e+00 : f32
    %2 = vector.broadcast %cst_3 : f32 to vector<1x1x18x8xf32>
    %c0_4 = arith.constant 0 : index
    %c17 = arith.constant 17 : index
    %c0_5 = arith.constant 0 : index
    %c0_6 = arith.constant 0 : index
    %3 = vector.load %arg9[%c0_4, %c17, %c0_5, %c0_6] : memref<1x18x18x8xf32, #tpu.memory_space<vmem>>, vector<1x1x18x8xf32>
    tpu.vector_store %arg9[%c0_4, %c17, %c0_5, %c0_6], %2 {strides = array<i32>} : memref<1x18x18x8xf32, #tpu.memory_space<vmem>>, vector<1x1x18x8xf32>,
    %cst_7 = arith.constant 0.000000e+00 : f32
    %4 = vector.broadcast %cst_7 : f32 to vector<1x18x1x8xf32>
    %c0_8 = arith.constant 0 : index
    %c0_9 = arith.constant 0 : index
    %c0_10 = arith.constant 0 : index
    %c0_11 = arith.constant 0 : index
    %5 = vector.load %arg9[%c0_8, %c0_9, %c0_10, %c0_11] : memref<1x18x18x8xf32, #tpu.memory_space<vmem>>, vector<1x18x1x8xf32>
    tpu.vector_store %arg9[%c0_8, %c0_9, %c0_10, %c0_11], %4 {strides = array<i32>} : memref<1x18x18x8xf32, #tpu.memory_space<vmem>>, vector<1x18x1x8xf32>,
    %cst_12 = arith.constant 0.000000e+00 : f32
    %6 = vector.broadcast %cst_12 : f32 to vector<1x18x1x8xf32>
    %c0_13 = arith.constant 0 : index
    %c0_14 = arith.constant 0 : index
    %c17_15 = arith.constant 17 : index
    %c0_16 = arith.constant 0 : index
    %7 = vector.load %arg9[%c0_13, %c0_14, %c17_15, %c0_16] : memref<1x18x18x8xf32, #tpu.memory_space<vmem>>, vector<1x18x1x8xf32>
    tpu.vector_store %arg9[%c0_13, %c0_14, %c17_15, %c0_16], %6 {strides = array<i32>} : memref<1x18x18x8xf32, #tpu.memory_space<vmem>>, vector<1x18x1x8xf32>,
    %c0_17 = arith.constant 0 : index
    %c0_18 = arith.constant 0 : index
    %c0_19 = arith.constant 0 : index
    %c0_20 = arith.constant 0 : index
    %8 = vector.load %arg1[%c0_17, %c0_18, %c0_19, %c0_20] : memref<1x16x16x8xf32, #tpu.memory_space<vmem>>, vector<1x16x16x8xf32>
    %c0_21 = arith.constant 0 : index
    %c0_22 = arith.constant 0 : index
    %9 = vector.load %arg3[%c0_21, %c0_22] : memref<1x8xf32, #tpu.memory_space<vmem>>, vector<1x8xf32>
    %10 = vector.shape_cast %9 : vector<1x8xf32> to vector<1x1x1x8xf32>
    %11 = vector.broadcast %10 : vector<1x1x1x8xf32> to vector<1x16x16x8xf32>
    %12 = arith.mulf %8, %11 : vector<1x16x16x8xf32>
    %c0_23 = arith.constant 0 : index
    %c0_24 = arith.constant 0 : index
    %13 = vector.load %arg4[%c0_23, %c0_24] : memref<1x8xf32, #tpu.memory_space<vmem>>, vector<1x8xf32>
    %14 = vector.shape_cast %13 : vector<1x8xf32> to vector<1x1x1x8xf32>
    %15 = vector.broadcast %14 : vector<1x1x1x8xf32> to vector<1x16x16x8xf32>
    %16 = arith.addf %12, %15 : vector<1x16x16x8xf32>
    %cst_25 = arith.constant 0.000000e+00 : f32
    %17 = vector.broadcast %cst_25 : f32 to vector<1x16x16x8xf32>
    %18 = arith.maximumf %16, %17 : vector<1x16x16x8xf32>
    %c0_26 = arith.constant 0 : index
    %c0_27 = arith.constant 0 : index
    %19 = vector.load %arg5[%c0_26, %c0_27] : memref<1x8xf32, #tpu.memory_space<vmem>>, vector<1x8xf32>
    %cst_28 = arith.constant 0.000000e+00 : f32
    %20 = vector.broadcast %cst_28 : f32 to vector<1x16x16x8xf32>
    %21 = arith.minimumf %16, %20 : vector<1x16x16x8xf32>
    %22 = vector.shape_cast %19 : vector<1x8xf32> to vector<1x1x1x8xf32>
    %23 = vector.broadcast %22 : vector<1x1x1x8xf32> to vector<1x16x16x8xf32>
    %24 = arith.mulf %23, %21 : vector<1x16x16x8xf32>
    %25 = arith.addf %18, %24 : vector<1x16x16x8xf32>
    %c0_29 = arith.constant 0 : index
    %c1 = arith.constant 1 : index
    %c1_30 = arith.constant 1 : index
    %c0_31 = arith.constant 0 : index
    %26 = vector.load %arg9[%c0_29, %c1, %c1_30, %c0_31] : memref<1x18x18x8xf32, #tpu.memory_space<vmem>>, vector<1x16x16x8xf32>
    tpu.vector_store %arg9[%c0_29, %c1, %c1_30, %c0_31], %25 {strides = array<i32>} : memref<1x18x18x8xf32, #tpu.memory_space<vmem>>, vector<1x16x16x8xf32>,
    %c0_32 = arith.constant 0 : index
    %c0_33 = arith.constant 0 : index
    %c0_34 = arith.constant 0 : index
    %c0_35 = arith.constant 0 : index
    %27 = vector.load %arg9[%c0_32, %c0_33, %c0_34, %c0_35] : memref<1x18x18x8xf32, #tpu.memory_space<vmem>>, vector<1x16x16x8xf32>
    %28 = vector.shape_cast %27 : vector<1x16x16x8xf32> to vector<256x8xf32>
    %c0_36 = arith.constant 0 : index
    %c0_37 = arith.constant 0 : index
    %29 = vector.load %arg10[%c0_36, %c0_37] : memref<256x72xf32, #tpu.memory_space<vmem>>, vector<256x8xf32>
    tpu.vector_store %arg10[%c0_36, %c0_37], %28 {strides = array<i32>} : memref<256x72xf32, #tpu.memory_space<vmem>>, vector<256x8xf32>,
    %c0_38 = arith.constant 0 : index
    %c0_39 = arith.constant 0 : index
    %c1_40 = arith.constant 1 : index
    %c0_41 = arith.constant 0 : index
    %30 = vector.load %arg9[%c0_38, %c0_39, %c1_40, %c0_41] : memref<1x18x18x8xf32, #tpu.memory_space<vmem>>, vector<1x16x16x8xf32>
    %31 = vector.shape_cast %30 : vector<1x16x16x8xf32> to vector<256x8xf32>
    %c0_42 = arith.constant 0 : index
    %c8 = arith.constant 8 : index
    %32 = vector.load %arg10[%c0_42, %c8] : memref<256x72xf32, #tpu.memory_space<vmem>>, vector<256x8xf32>
    tpu.vector_store %arg10[%c0_42, %c8], %31 {strides = array<i32>} : memref<256x72xf32, #tpu.memory_space<vmem>>, vector<256x8xf32>,
    %c0_43 = arith.constant 0 : index
    %c0_44 = arith.constant 0 : index
    %c2 = arith.constant 2 : index
    %c0_45 = arith.constant 0 : index
    %33 = vector.load %arg9[%c0_43, %c0_44, %c2, %c0_45] : memref<1x18x18x8xf32, #tpu.memory_space<vmem>>, vector<1x16x16x8xf32>
    %34 = vector.shape_cast %33 : vector<1x16x16x8xf32> to vector<256x8xf32>
    %c0_46 = arith.constant 0 : index
    %c16 = arith.constant 16 : index
    %35 = vector.load %arg10[%c0_46, %c16] : memref<256x72xf32, #tpu.memory_space<vmem>>, vector<256x8xf32>
    tpu.vector_store %arg10[%c0_46, %c16], %34 {strides = array<i32>} : memref<256x72xf32, #tpu.memory_space<vmem>>, vector<256x8xf32>,
    %c0_47 = arith.constant 0 : index
    %c1_48 = arith.constant 1 : index
    %c0_49 = arith.constant 0 : index
    %c0_50 = arith.constant 0 : index
    %36 = vector.load %arg9[%c0_47, %c1_48, %c0_49, %c0_50] : memref<1x18x18x8xf32, #tpu.memory_space<vmem>>, vector<1x16x16x8xf32>
    %37 = vector.shape_cast %36 : vector<1x16x16x8xf32> to vector<256x8xf32>
    %c0_51 = arith.constant 0 : index
    %c24 = arith.constant 24 : index
    %38 = vector.load %arg10[%c0_51, %c24] : memref<256x72xf32, #tpu.memory_space<vmem>>, vector<256x8xf32>
    tpu.vector_store %arg10[%c0_51, %c24], %37 {strides = array<i32>} : memref<256x72xf32, #tpu.memory_space<vmem>>, vector<256x8xf32>,
    %c0_52 = arith.constant 0 : index
    %c1_53 = arith.constant 1 : index
    %c1_54 = arith.constant 1 : index
    %c0_55 = arith.constant 0 : index
    %39 = vector.load %arg9[%c0_52, %c1_53, %c1_54, %c0_55] : memref<1x18x18x8xf32, #tpu.memory_space<vmem>>, vector<1x16x16x8xf32>
    %40 = vector.shape_cast %39 : vector<1x16x16x8xf32> to vector<256x8xf32>
    %c0_56 = arith.constant 0 : index
    %c32 = arith.constant 32 : index
    %41 = vector.load %arg10[%c0_56, %c32] : memref<256x72xf32, #tpu.memory_space<vmem>>, vector<256x8xf32>
    tpu.vector_store %arg10[%c0_56, %c32], %40 {strides = array<i32>} : memref<256x72xf32, #tpu.memory_space<vmem>>, vector<256x8xf32>,
    %c0_57 = arith.constant 0 : index
    %c1_58 = arith.constant 1 : index
    %c2_59 = arith.constant 2 : index
    %c0_60 = arith.constant 0 : index
    %42 = vector.load %arg9[%c0_57, %c1_58, %c2_59, %c0_60] : memref<1x18x18x8xf32, #tpu.memory_space<vmem>>, vector<1x16x16x8xf32>
    %43 = vector.shape_cast %42 : vector<1x16x16x8xf32> to vector<256x8xf32>
    %c0_61 = arith.constant 0 : index
    %c40 = arith.constant 40 : index
    %44 = vector.load %arg10[%c0_61, %c40] : memref<256x72xf32, #tpu.memory_space<vmem>>, vector<256x8xf32>
    tpu.vector_store %arg10[%c0_61, %c40], %43 {strides = array<i32>} : memref<256x72xf32, #tpu.memory_space<vmem>>, vector<256x8xf32>,
    %c0_62 = arith.constant 0 : index
    %c2_63 = arith.constant 2 : index
    %c0_64 = arith.constant 0 : index
    %c0_65 = arith.constant 0 : index
    %45 = vector.load %arg9[%c0_62, %c2_63, %c0_64, %c0_65] : memref<1x18x18x8xf32, #tpu.memory_space<vmem>>, vector<1x16x16x8xf32>
    %46 = vector.shape_cast %45 : vector<1x16x16x8xf32> to vector<256x8xf32>
    %c0_66 = arith.constant 0 : index
    %c48 = arith.constant 48 : index
    %47 = vector.load %arg10[%c0_66, %c48] : memref<256x72xf32, #tpu.memory_space<vmem>>, vector<256x8xf32>
    tpu.vector_store %arg10[%c0_66, %c48], %46 {strides = array<i32>} : memref<256x72xf32, #tpu.memory_space<vmem>>, vector<256x8xf32>,
    %c0_67 = arith.constant 0 : index
    %c2_68 = arith.constant 2 : index
    %c1_69 = arith.constant 1 : index
    %c0_70 = arith.constant 0 : index
    %48 = vector.load %arg9[%c0_67, %c2_68, %c1_69, %c0_70] : memref<1x18x18x8xf32, #tpu.memory_space<vmem>>, vector<1x16x16x8xf32>
    %49 = vector.shape_cast %48 : vector<1x16x16x8xf32> to vector<256x8xf32>
    %c0_71 = arith.constant 0 : index
    %c56 = arith.constant 56 : index
    %50 = vector.load %arg10[%c0_71, %c56] : memref<256x72xf32, #tpu.memory_space<vmem>>, vector<256x8xf32>
    tpu.vector_store %arg10[%c0_71, %c56], %49 {strides = array<i32>} : memref<256x72xf32, #tpu.memory_space<vmem>>, vector<256x8xf32>,
    %c0_72 = arith.constant 0 : index
    %c2_73 = arith.constant 2 : index
    %c2_74 = arith.constant 2 : index
    %c0_75 = arith.constant 0 : index
    %51 = vector.load %arg9[%c0_72, %c2_73, %c2_74, %c0_75] : memref<1x18x18x8xf32, #tpu.memory_space<vmem>>, vector<1x16x16x8xf32>
    %52 = vector.shape_cast %51 : vector<1x16x16x8xf32> to vector<256x8xf32>
    %c0_76 = arith.constant 0 : index
    %c64 = arith.constant 64 : index
    %53 = vector.load %arg10[%c0_76, %c64] : memref<256x72xf32, #tpu.memory_space<vmem>>, vector<256x8xf32>
    tpu.vector_store %arg10[%c0_76, %c64], %52 {strides = array<i32>} : memref<256x72xf32, #tpu.memory_space<vmem>>, vector<256x8xf32>,
    %c0_77 = arith.constant 0 : index
    %c0_78 = arith.constant 0 : index
    %54 = vector.load %arg10[%c0_77, %c0_78] : memref<256x72xf32, #tpu.memory_space<vmem>>, vector<256x72xf32>
    %c0_79 = arith.constant 0 : index
    %c0_80 = arith.constant 0 : index
    %55 = vector.load %arg2[%c0_79, %c0_80] : memref<72x8xf32, #tpu.memory_space<vmem>>, vector<72x8xf32>
    %cst_81 = arith.constant dense<0.000000e+00> : vector<256x8xf32>
    %56 = tpu.matmul %54, %55, %cst_81 {dimension_numbers = #tpu.dot_dimension_numbers<[1], [0], [0], [1], [0, 0, 1, 1], [], []>} : vector<256x72xf32>, vector<72x8xf32>, vector<256x8xf32> -> vector<256x8xf32>
    %c0_82 = arith.constant 0 : index
    %c0_83 = arith.constant 0 : index
    %c0_84 = arith.constant 0 : index
    %57 = vector.load %arg6[%c0_82, %c0_83, %c0_84] : memref<1x256x8xf32, #tpu.memory_space<vmem>>, vector<1x256x8xf32>
    %58 = vector.shape_cast %57 : vector<1x256x8xf32> to vector<256x8xf32>
    %59 = vector.shape_cast %56 : vector<256x8xf32> to vector<1x256x8xf32>
    tpu.vector_store %arg6[%c0_82, %c0_83, %c0_84], %59 {strides = array<i32>} : memref<1x256x8xf32, #tpu.memory_space<vmem>>, vector<1x256x8xf32>,
    %cst_85 = arith.constant dense<0.000000e+00> : vector<8xf32>
    %60 = vector.multi_reduction <add>, %56, %cst_85 [0] : vector<256x8xf32> to vector<8xf32>
    %61 = vector.shape_cast %60 : vector<8xf32> to vector<1x8xf32>
    %c0_86 = arith.constant 0 : index
    %c0_87 = arith.constant 0 : index
    %c0_88 = arith.constant 0 : index
    %62 = vector.load %arg7[%c0_86, %c0_87, %c0_88] : memref<1x1x8xf32, #tpu.memory_space<vmem>>, vector<1x1x8xf32>
    %63 = vector.shape_cast %62 : vector<1x1x8xf32> to vector<1x8xf32>
    %64 = vector.shape_cast %61 : vector<1x8xf32> to vector<1x1x8xf32>
    tpu.vector_store %arg7[%c0_86, %c0_87, %c0_88], %64 {strides = array<i32>} : memref<1x1x8xf32, #tpu.memory_space<vmem>>, vector<1x1x8xf32>,
    %65 = arith.mulf %56, %56 : vector<256x8xf32>
    %cst_89 = arith.constant dense<0.000000e+00> : vector<8xf32>
    %66 = vector.multi_reduction <add>, %65, %cst_89 [0] : vector<256x8xf32> to vector<8xf32>
    %67 = vector.shape_cast %66 : vector<8xf32> to vector<1x8xf32>
    %c0_90 = arith.constant 0 : index
    %c0_91 = arith.constant 0 : index
    %c0_92 = arith.constant 0 : index
    %68 = vector.load %arg8[%c0_90, %c0_91, %c0_92] : memref<1x1x8xf32, #tpu.memory_space<vmem>>, vector<1x1x8xf32>
    %69 = vector.shape_cast %68 : vector<1x1x8xf32> to vector<1x8xf32>
    %70 = vector.shape_cast %67 : vector<1x8xf32> to vector<1x1x8xf32>
    tpu.vector_store %arg8[%c0_90, %c0_91, %c0_92], %70 {strides = array<i32>} : memref<1x1x8xf32, #tpu.memory_space<vmem>>, vector<1x1x8xf32>,
    return
  }
  func.func @transform_0(%arg0: i32) -> (i32, i32, i32, i32) {
    %c0_i32 = arith.constant 0 : i32
    %c0_i32_0 = arith.constant 0 : i32
    %c0_i32_1 = arith.constant 0 : i32
    %c0_i32_2 = arith.constant 0 : i32
    return %arg0, %c0_i32, %c0_i32_0, %c0_i32_1 : i32, i32, i32, i32
  }
  func.func @transform_1(%arg0: i32) -> (i32, i32) {
    %c0_i32 = arith.constant 0 : i32
    %c0_i32_0 = arith.constant 0 : i32
    %c0_i32_1 = arith.constant 0 : i32
    return %c0_i32, %c0_i32_0 : i32, i32
  }
  func.func @transform_2(%arg0: i32) -> (i32, i32) {
    %c0_i32 = arith.constant 0 : i32
    %c0_i32_0 = arith.constant 0 : i32
    %c0_i32_1 = arith.constant 0 : i32
    return %c0_i32, %c0_i32_0 : i32, i32
  }
  func.func @transform_3(%arg0: i32) -> (i32, i32) {
    %c0_i32 = arith.constant 0 : i32
    %c0_i32_0 = arith.constant 0 : i32
    %c0_i32_1 = arith.constant 0 : i32
    return %c0_i32, %c0_i32_0 : i32, i32
  }
  func.func @transform_4(%arg0: i32) -> (i32, i32) {
    %c0_i32 = arith.constant 0 : i32
    %c0_i32_0 = arith.constant 0 : i32
    %c0_i32_1 = arith.constant 0 : i32
    return %c0_i32, %c0_i32_0 : i32, i32
  }
  func.func @transform_5(%arg0: i32) -> (i32, i32, i32) {
    %c0_i32 = arith.constant 0 : i32
    %c0_i32_0 = arith.constant 0 : i32
    %c0_i32_1 = arith.constant 0 : i32
    return %arg0, %c0_i32, %c0_i32_0 : i32, i32, i32
  }
  func.func @transform_6(%arg0: i32) -> (i32, i32, i32) {
    %c0_i32 = arith.constant 0 : i32
    %c0_i32_0 = arith.constant 0 : i32
    %c0_i32_1 = arith.constant 0 : i32
    return %arg0, %c0_i32, %c0_i32_0 : i32, i32, i32
  }
  func.func @transform_7(%arg0: i32) -> (i32, i32, i32) {
    %c0_i32 = arith.constant 0 : i32
    %c0_i32_0 = arith.constant 0 : i32
    %c0_i32_1 = arith.constant 0 : i32
    return %arg0, %c0_i32, %c0_i32_0 : i32, i32, i32
  }
}

module attributes {stable_mosaic.version = 11 : i64} {
  func.func @bn_residual_kernel(%arg0: i32, %arg1: memref<16x128xf32, #tpu.memory_space<vmem>>, %arg2: memref<16x128xf32, #tpu.memory_space<vmem>>, %arg3: memref<1x128xf32, #tpu.memory_space<vmem>>, %arg4: memref<1x128xf32, #tpu.memory_space<vmem>>, %arg5: memref<16x128xf32, #tpu.memory_space<vmem>>) attributes {dimension_semantics = [#tpu.dimension_semantics<parallel>], iteration_bounds = array<i64: 2>, scalar_prefetch = 0 : i64, scratch_operands = 0 : i64, tpu.core_type = #tpu.core_type<tc>, window_params = [{transform_indices = @transform_0, window_bounds = array<i64: 16, 128>}, {transform_indices = @transform_1, window_bounds = array<i64: 16, 128>}, {pipeline_mode = #tpu.pipeline_mode<synchronous>, transform_indices = @transform_2, window_bounds = array<i64: 1, 128>}, {pipeline_mode = #tpu.pipeline_mode<synchronous>, transform_indices = @transform_3, window_bounds = array<i64: 1, 128>}, {transform_indices = @transform_4, window_bounds = array<i64: 16, 128>}]} {
    %c0 = arith.constant 0 : index
    %c0_0 = arith.constant 0 : index
    %0 = vector.load %arg1[%c0, %c0_0] : memref<16x128xf32, #tpu.memory_space<vmem>>, vector<16x128xf32>
    %c0_1 = arith.constant 0 : index
    %c0_2 = arith.constant 0 : index
    %1 = vector.load %arg3[%c0_1, %c0_2] : memref<1x128xf32, #tpu.memory_space<vmem>>, vector<1x128xf32>
    %2 = vector.broadcast %1 : vector<1x128xf32> to vector<16x128xf32>
    %3 = arith.mulf %0, %2 : vector<16x128xf32>
    %c0_3 = arith.constant 0 : index
    %c0_4 = arith.constant 0 : index
    %4 = vector.load %arg4[%c0_3, %c0_4] : memref<1x128xf32, #tpu.memory_space<vmem>>, vector<1x128xf32>
    %5 = vector.broadcast %4 : vector<1x128xf32> to vector<16x128xf32>
    %6 = arith.addf %3, %5 : vector<16x128xf32>
    %c0_5 = arith.constant 0 : index
    %c0_6 = arith.constant 0 : index
    %7 = vector.load %arg2[%c0_5, %c0_6] : memref<16x128xf32, #tpu.memory_space<vmem>>, vector<16x128xf32>
    %8 = arith.addf %6, %7 : vector<16x128xf32>
    %c0_7 = arith.constant 0 : index
    %c0_8 = arith.constant 0 : index
    %9 = vector.load %arg5[%c0_7, %c0_8] : memref<16x128xf32, #tpu.memory_space<vmem>>, vector<16x128xf32>
    tpu.vector_store %arg5[%c0_7, %c0_8], %8 {strides = array<i32>} : memref<16x128xf32, #tpu.memory_space<vmem>>, vector<16x128xf32>,
    return
  }
  func.func @transform_0(%arg0: i32) -> (i32, i32) {
    %c0_i32 = arith.constant 0 : i32
    %c0_i32_0 = arith.constant 0 : i32
    return %arg0, %c0_i32 : i32, i32
  }
  func.func @transform_1(%arg0: i32) -> (i32, i32) {
    %c0_i32 = arith.constant 0 : i32
    %c0_i32_0 = arith.constant 0 : i32
    return %arg0, %c0_i32 : i32, i32
  }
  func.func @transform_2(%arg0: i32) -> (i32, i32) {
    %c0_i32 = arith.constant 0 : i32
    %c0_i32_0 = arith.constant 0 : i32
    %c0_i32_1 = arith.constant 0 : i32
    return %c0_i32, %c0_i32_0 : i32, i32
  }
  func.func @transform_3(%arg0: i32) -> (i32, i32) {
    %c0_i32 = arith.constant 0 : i32
    %c0_i32_0 = arith.constant 0 : i32
    %c0_i32_1 = arith.constant 0 : i32
    return %c0_i32, %c0_i32_0 : i32, i32
  }
  func.func @transform_4(%arg0: i32) -> (i32, i32) {
    %c0_i32 = arith.constant 0 : i32
    %c0_i32_0 = arith.constant 0 : i32
    return %arg0, %c0_i32 : i32, i32
  }
}

</mosaic_0001>

<bundles_post_ra>
// kernel: residual_block.5
= control target key start
LH: loop header
LB: loop body
LE: loop exit
PB: predicated region body
PF: predicated region fallthrough
CT: control target
= control target key end

     0   :  { %s373_s15 = smov 0   ;;  %s399_s0 = inlined_call_operand.vmem [shape: f32[32,128], index: 0, kind: input, shape index: {}]   ;;  %s400_s1 = inlined_call_operand.vmem [shape: f32[32,128], index: 1, kind: input, shape index: {}]   ;;  %s401_s2 = inlined_call_operand.vmem [shape: f32[1,128], index: 2, kind: input, shape index: {}]   ;;  %s402_s3 = inlined_call_operand.vmem [shape: f32[1,128], index: 3, kind: input, shape index: {}]   ;;  %s403_s4 = inlined_call_operand.vmem [shape: f32[32,128], index: 4, kind: output, shape index: {}]  }
   0x1 LB: > { %s317_s16 = sadd.s32 4294967295, %s346_s15   ;;  %p321_p0 = scmp.ge.s32.totalorder %s346_s15, 1  ;;  %s346_s15 = sphi %s373_s15, %s14_s15  }
   0x2   : > { %p174_p1 = scmp.lt.s32.totalorder %s346_s15, 3 }
   0x4   : > { %p175_p2 = pnand %p321_p0, %p174_p1 }
   0x5   : > { %s322_s17 = sshll.u32 (!%p175_p2), %s317_s16, 1  ;;  %v328_v0 = vld [vmem:[%s401_s2] ss:$0 sm:$0xff] (!%p175_p2) }
   0x6   : > { %178 = sbr.rel (%p175_p2) target bundleno = 24 (0x18), region = 36  ;;  %p206_p3 = scmp.lt.s32.totalorder (!%p175_p2), %s322_s17, 3  ;;  %v329_v3 = vld [vmem:[%s402_s3] ss:$0 sm:$0xff] (!%p175_p2) }
   0xd   : > { %s405_s17 = smov (!%p206_p3, %s322_s17), 3 }
   0xe   : > { %s323_s18 = sshll.u32 %s405_s17, 3 }
   0xf   : > { %s209_s23 = scalar_lea.vmem %s399_s0, %s323_s18  ;;  %s215_s26 = scalar_lea.vmem %s400_s1, %s323_s18 }
  0x10   : > { %v223_v1 = vld [vmem:[%s209_s23] sm:$0xff]  ;;  %v224_v2 = vld [vmem:[%s209_s23 + $0x8] sm:$0xff]  ;;  %s221_s5 = scalar_lea.vmem %s403_s4, %s323_s18 }
  0x11   : > { %v232_v4 = vmul.f32 %v328_v0, %v223_v1  ;;  %v233_v5 = vmul.f32 %v328_v0, %v224_v2  ;;  %v243_v6 = vld [vmem:[%s215_s26] sm:$0xff]  ;;  %v244_v7 = vld [vmem:[%s215_s26 + $0x8] sm:$0xff] }
  0x13   : > { %v241_v8 = vadd.f32 %v329_v3, %v232_v4  ;;  %v242_v9 = vadd.f32 %v329_v3, %v233_v5 }
  0x15   : > { %v245_v10 = vadd.f32 %v243_v6, %v241_v8  ;;  %v246_v11 = vadd.f32 %v244_v7, %v242_v9 }
  0x17   : > { %247 = vst [vmem:[%s221_s5] sm:$0xff] %v245_v10  ;;  %248 = vst [vmem:[%s221_s5 + $0x8] sm:$0xff] %v246_v11 }
  0x18 PF: > { %s14_s15 = sadd.s32 1, %s346_s15  }
  0x19   : > { %p11_p4 = scmp.ge.s32.totalorder %s14_s15, 4  }
  0x1b   :  { %13 = sbr.rel (!%p11_p4) target bundleno = 1 (0x1), region = 69 }

// kernel: residual_block.4
= control target key start
LH: loop header
LB: loop body
LE: loop exit
PB: predicated region body
PF: predicated region fallthrough
CT: control target
= control target key end

     0   :  { %s3159_s24 = smov 0   ;;  %s4375_s0 = inlined_call_operand.vmem [shape: f32[2,16,16,8], index: 0, kind: input, shape index: {}]   ;;  %s4376_s1 = inlined_call_operand.vmem [shape: f32[72,8], index: 1, kind: input, shape index: {}]   ;;  %s4377_s2 = inlined_call_operand.vmem [shape: f32[1,8], index: 2, kind: input, shape index: {}]   ;;  %s4378_s3 = inlined_call_operand.vmem [shape: f32[1,8], index: 3, kind: input, shape index: {}]   ;;  %s4379_s4 = inlined_call_operand.vmem [shape: f32[1,8], index: 4, kind: input, shape index: {}]   ;;  %s4380_s5 = inlined_call_operand.vmem [shape: f32[2,256,8], index: 5, kind: output, shape index: {0}]   ;;  %s4381_s6 = inlined_call_operand.vmem [shape: f32[2,1,8], index: 6, kind: output, shape index: {1}]   ;;  %s4382_s7 = inlined_call_operand.vmem [shape: f32[2,1,8], index: 7, kind: output, shape index: {2}]  }
   0x1 LB: > { %s2901_s25 = sadd.s32 4294967295, %s3108_s24   ;;  %p2905_p0 = scmp.ge.s32.totalorder %s3108_s24, 1  ;;  %s3108_s24 = sphi %s3159_s24, %s18_s24  }
   0x2   : > { %p242_p1 = scmp.lt.s32.totalorder %s3108_s24, 3 }
   0x4   : > { %p243_p2 = pnand %p2905_p0, %p242_p1 }
   0x5   : > { %vm296_vm0 = vcmask (!%p243_p2), 64512   ;;  %vm305_vm1 = vcmask (!%p243_p2), 57344   ;;  %vm299_vm2 = vcmask (!%p243_p2), 58368   ;;  %p3169_p3 = scmp.lt.s32.totalorder (!%p243_p2), %s2901_s25, 1  ;;  %v3110_v0 = vmov (!%p243_p2), 0.0   ;;  %s3111_s12 = smov (!%p243_p2), 8  }
   0x6   : > { %246 = sbr.rel (%p243_p2) target bundleno = 900 (0x384), region = 40  ;;  %297 = vst.msk [vmem:[#allocation2] sm:$0xff] (!%p243_p2), %vm296_vm0, %v3110_v0  ;;  %298 = vst.msk [vmem:[#allocation2 + $0x8] sm:$0xff] (!%p243_p2), %vm296_vm0, %v3110_v0  ;;  %v3225_v1 = vld [vmem:[%s4377_s2] ss:$0 sm:$0xff] (!%p243_p2)  ;;  %s3112_s15 = smov (!%p243_p2), 16  }
   0x7   : > { %302 = vst.msk [vmem:[#allocation2 + $0x198] sm:$0xff] (!%p243_p2), %vm296_vm0, %v3110_v0  ;;  %303 = vst.msk [vmem:[#allocation2 + $0x1a0] sm:$0xff] (!%p243_p2), %vm296_vm0, %v3110_v0  ;;  %v3237_v2 = vld [vmem:[%s4378_s3] ss:$0 sm:$0xff] (!%p243_p2)  ;;  %vm844_vm3 = vcmask (!%p243_p2), 130112   ;;  %s3113_s16 = smov (!%p243_p2), 24  }
   0x8   : > { %307 = vst.msk [vmem:[#allocation2 + $0x18] sm:$0x1] (!%p243_p2), %vm305_vm1, %v3110_v0  ;;  %308 = vst.msk [vmem:[#allocation2 + $0x30] sm:$0x1] (!%p243_p2), %vm305_vm1, %v3110_v0  ;;  %v3261_v23 = vld [vmem:[%s4379_s4] ss:$0 sm:$0xff] (!%p243_p2) }
   0x9   : > { %309 = vst.msk [vmem:[#allocation2 + $0x48] sm:$0x1] (!%p243_p2), %vm305_vm1, %v3110_v0  ;;  %310 = vst.msk [vmem:[#allocation2 + $0x60] sm:$0x1] (!%p243_p2), %vm305_vm1, %v3110_v0  ;;  %s3114_s17 = smov (!%p243_p2), 32   ;;  %s3115_s22 = smov (!%p243_p2), 40  }
   0xa   : > { %311 = vst.msk [vmem:[#allocation2 + $0x78] sm:$0x1] (!%p243_p2), %vm305_vm1, %v3110_v0  ;;  %312 = vst.msk [vmem:[#allocation2 + $0x90] sm:$0x1] (!%p243_p2), %vm305_vm1, %v3110_v0  ;;  %s3116_s30 = smov (!%p243_p2), 48   ;;  %s3117_s19 = smov (!%p243_p2), 56  }
   0xb   : > { %313 = vst.msk [vmem:[#allocation2 + $0xa8] sm:$0x1] (!%p243_p2), %vm305_vm1, %v3110_v0  ;;  %314 = vst.msk [vmem:[#allocation2 + $0xc0] sm:$0x1] (!%p243_p2), %vm305_vm1, %v3110_v0  ;;  %s3118_s20 = smov (!%p243_p2), 64   ;;  %vm1037_vm4 = vcmask (!%p243_p2), 195712  }
   0xc   : > { %315 = vst.msk [vmem:[#allocation2 + $0xd8] sm:$0x1] (!%p243_p2), %vm305_vm1, %v3110_v0  ;;  %316 = vst.msk [vmem:[#allocation2 + $0xf0] sm:$0x1] (!%p243_p2), %vm305_vm1, %v3110_v0  ;;  %vm1230_vm5 = vcmask (!%p243_p2), 261312   ;;  %vm1423_vm6 = vcmask (!%p243_p2), 326912  }
   0xd   : > { %317 = vst.msk [vmem:[#allocation2 + $0x108] sm:$0x1] %vm305_vm1, %v3110_v0  ;;  %318 = vst.msk [vmem:[#allocation2 + $0x120] sm:$0x1] %vm305_vm1, %v3110_v0  ;;  %s4385_s25 = smov (!%p3169_p3, %s2901_s25), 1  ;;  %v684_v12 = vld [vmem:[#allocation2 + $0x1] sm:$0xff] }
   0xe   : > { %319 = vst.msk [vmem:[#allocation2 + $0x138] sm:$0x1] %vm305_vm1, %v3110_v0  ;;  %320 = vst.msk [vmem:[#allocation2 + $0x150] sm:$0x1] %vm305_vm1, %v3110_v0  ;;  %s2947_s27 = sshll.u32 %s4385_s25, 8  ;;  %748 = vrot.lane.b32.xlu0 %v684_v12, %s3111_s12  ;;  %vm1616_vm7 = vcmask 392512   ;;  %s295_s14 = scalar_lea.vmem %s4382_s7, %s4385_s25 }
   0xf   : > { %321 = vst.msk [vmem:[#allocation2 + $0x168] sm:$0x1] %vm305_vm1, %v3110_v0  ;;  %322 = vst.msk [vmem:[#allocation2 + $0x180] sm:$0x1] %vm305_vm1, %v3110_v0  ;;  %s3232_s9 = scalar_lea.vmem %s4375_s0, %s2947_s27  ;;  %vm1810_vm8 = vcmask 458112   ;;  %vm2003_vm9 = vcmask 523712  }
  0x10   : > { %325 = vst.msk [vmem:[#allocation2 + $0x29] sm:$0x1] %vm305_vm1, %v3110_v0  ;;  %326 = vst.msk [vmem:[#allocation2 + $0x41] sm:$0x1] %vm305_vm1, %v3110_v0  ;;  %v342_v3 = vld [vmem:[%s3232_s9] sm:$0xff]  ;;  %v344_v4 = vld [vmem:[%s3232_s9 + $0x10] sm:$0xff] }
  0x11   : > { %327 = vst.msk [vmem:[#allocation2 + $0x59] sm:$0x1] %vm305_vm1, %v3110_v0  ;;  %328 = vst.msk [vmem:[#allocation2 + $0x71] sm:$0x1] %vm305_vm1, %v3110_v0  ;;  %v343_v5 = vld [vmem:[%s3232_s9 + $0x8] sm:$0xff]  ;;  %v381_v6 = vmul.f32 %v3225_v1, %v342_v3  ;;  %v383_v7 = vmul.f32 %v3225_v1, %v344_v4  ;;  %v346_v9 = vld [vmem:[%s3232_s9 + $0x20] sm:$0xff] }
  0x12   : > { %329 = vst.msk [vmem:[#allocation2 + $0x89] sm:$0x1] %vm305_vm1, %v3110_v0  ;;  %330 = vst.msk [vmem:[#allocation2 + $0xa1] sm:$0x1] %vm305_vm1, %v3110_v0  ;;  %v382_v8 = vmul.f32 %v3225_v1, %v343_v5  ;;  %v345_v10 = vld [vmem:[%s3232_s9 + $0x18] sm:$0xff]  ;;  %v348_v11 = vld [vmem:[%s3232_s9 + $0x30] sm:$0xff]  ;;  %v385_v13 = vmul.f32 %v3225_v1, %v346_v9 }
  0x13   : > { %331 = vst.msk [vmem:[#allocation2 + $0xb9] sm:$0x1] %vm305_vm1, %v3110_v0  ;;  %332 = vst.msk [vmem:[#allocation2 + $0xd1] sm:$0x1] %vm305_vm1, %v3110_v0  ;;  %v384_v14 = vmul.f32 %v3225_v1, %v345_v10  ;;  %v387_v15 = vmul.f32 %v3225_v1, %v348_v11  ;;  %v347_v16 = vld [vmem:[%s3232_s9 + $0x28] sm:$0xff]  ;;  %v420_v17 = vadd.f32 %v3237_v2, %v381_v6  ;;  %v350_v21 = vld [vmem:[%s3232_s9 + $0x40] sm:$0xff] }
  0x14   : > { %333 = vst.msk [vmem:[#allocation2 + $0xe9] sm:$0x1] %vm305_vm1, %v3110_v0  ;;  %334 = vst.msk [vmem:[#allocation2 + $0x101] sm:$0x1] %vm305_vm1, %v3110_v0  ;;  %v422_v18 = vadd.f32 %v3237_v2, %v383_v7  ;;  %v421_v19 = vadd.f32 %v3237_v2, %v382_v8  ;;  %v386_v20 = vmul.f32 %v3225_v1, %v347_v16  ;;  %v349_v44 = vld [vmem:[%s3232_s9 + $0x38] sm:$0xff]  ;;  %v352_v49 = vld [vmem:[%s3232_s9 + $0x50] sm:$0xff] }
  0x15   : > { %335 = vst.msk [vmem:[#allocation2 + $0x119] sm:$0x1] %vm305_vm1, %v3110_v0  ;;  %336 = vst.msk [vmem:[#allocation2 + $0x131] sm:$0x1] %vm305_vm1, %v3110_v0  ;;  %v424_v24 = vadd.f32 %v3237_v2, %v385_v13  ;;  %v423_v25 = vadd.f32 %v3237_v2, %v384_v14  ;;  %v426_v26 = vadd.f32 %v3237_v2, %v387_v15  ;;  %v452_v28 = vmax.f32 %v420_v17, 0.0  ;;  %v351_v54 = vld [vmem:[%s3232_s9 + $0x48] sm:$0xff] }
  0x16   : > { %337 = vst.msk [vmem:[#allocation2 + $0x149] sm:$0x1] %vm305_vm1, %v3110_v0  ;;  %338 = vst.msk [vmem:[#allocation2 + $0x161] sm:$0x1] %vm305_vm1, %v3110_v0  ;;  %v389_v27 = vmul.f32 %v3225_v1, %v350_v21  ;;  %v485_v29 = vmin.f32 %v420_v17, 0.0  ;;  %v454_v30 = vmax.f32 %v422_v18, 0.0  ;;  %v425_v48 = vadd.f32 %v3237_v2, %v386_v20 }
  0x17   : > { %339 = vst.msk [vmem:[#allocation2 + $0x179] sm:$0x1] %vm305_vm1, %v3110_v0  ;;  %340 = vst.msk [vmem:[#allocation2 + $0x191] sm:$0x1] %vm305_vm1, %v3110_v0  ;;  %v487_v31 = vmin.f32 %v422_v18, 0.0  ;;  %v453_v32 = vmax.f32 %v421_v19, 0.0  ;;  %v388_v59 = vmul.f32 %v3225_v1, %v349_v44  ;;  %v391_v3 = vmul.f32 %v3225_v1, %v352_v49 }
  0x18   : > { %300 = vst.msk [vmem:[#allocation2 + $0x10] sm:$0x3] %vm299_vm2, %v3110_v0  ;;  %304 = vst.msk [vmem:[#allocation2 + $0x1a8] sm:$0x3] %vm299_vm2, %v3110_v0  ;;  %v486_v33 = vmin.f32 %v421_v19, 0.0  ;;  %v456_v34 = vmax.f32 %v424_v24, 0.0  ;;  %v523_v36 = vmul.f32 %v3261_v23, %v485_v29  ;;  %v428_v53 = vadd.f32 %v3237_v2, %v389_v27 }
  0x19   : > { %306 = vst.msk [vmem:[#allocation2] sm:$0x1] %vm305_vm1, %v3110_v0  ;;  %323 = vst.msk [vmem:[#allocation2 + $0x198] sm:$0x1] %vm305_vm1, %v3110_v0  ;;  %v489_v35 = vmin.f32 %v424_v24, 0.0  ;;  %v525_v37 = vmul.f32 %v3261_v23, %v487_v31  ;;  %v455_v38 = vmax.f32 %v423_v25, 0.0  ;;  %v427_v7 = vadd.f32 %v3237_v2, %v388_v59 }
  0x1a   : > { %324 = vst.msk [vmem:[#allocation2 + $0x11] sm:$0x1] %vm305_vm1, %v3110_v0  ;;  %341 = vst.msk [vmem:[#allocation2 + $0x1a9] sm:$0x1] %vm305_vm1, %v3110_v0  ;;  %v488_v39 = vmin.f32 %v423_v25, 0.0  ;;  %v524_v40 = vmul.f32 %v3261_v23, %v486_v33  ;;  %v458_v42 = vmax.f32 %v426_v26, 0.0  ;;  %v555_v45 = vadd.f32 %v523_v36, %v452_v28 }
  0x1b   : > { %v527_v41 = vmul.f32 %v3261_v23, %v489_v35  ;;  %v491_v43 = vmin.f32 %v426_v26, 0.0  ;;  %v557_v46 = vadd.f32 %v525_v37, %v454_v30  ;;  %v354_v55 = vld [vmem:[%s3232_s9 + $0x60] sm:$0xff]  ;;  %v457_v57 = vmax.f32 %v425_v48, 0.0  ;;  %v353_v60 = vld [vmem:[%s3232_s9 + $0x58] sm:$0xff]  ;;  %v356_v61 = vld [vmem:[%s3232_s9 + $0x70] sm:$0xff] }
  0x1c   : > { %v526_v47 = vmul.f32 %v3261_v23, %v488_v39  ;;  %v556_v50 = vadd.f32 %v524_v40, %v453_v32  ;;  %588 = vst.msk [vmem:[#allocation2 + $0x19] sm:$0xff] %vm296_vm0, %v555_v45  ;;  %v490_v58 = vmin.f32 %v425_v48, 0.0  ;;  %v460_v63 = vmax.f32 %v428_v53, 0.0  ;;  %v621_v5 = vld [vmem:[#allocation2 + $0x8] sm:$0xff]  ;;  %v358_v28 = vld [vmem:[%s3232_s9 + $0x80] sm:$0xff]  ;;  %v357_v40 = vld [vmem:[%s3232_s9 + $0x78] sm:$0xff] }
  0x1d   : > { %v559_v51 = vadd.f32 %v527_v41, %v456_v34  ;;  %v529_v52 = vmul.f32 %v3261_v23, %v491_v43  ;;  %590 = vst.msk [vmem:[#allocation2 + $0x31] sm:$0xff] %vm296_vm0, %v557_v46  ;;  %v493_v0 = vmin.f32 %v428_v53, 0.0  ;;  %v390_v8 = vmul.f32 %v3225_v1, %v351_v54  ;;  %653 = vst.msk [vmem:[#allocation3 + $0x8] sm:$0xff] %vm296_vm0, %v621_v5  ;;  %v355_v27 = vld [vmem:[%s3232_s9 + $0x68] sm:$0xff]  ;;  %v360_v41 = vld [vmem:[%s3232_s9 + $0x90] sm:$0xff] }
  0x1e   : > { %v558_v56 = vadd.f32 %v526_v47, %v455_v38  ;;  %589 = vst.msk [vmem:[#allocation2 + $0x21] sm:$0xff] %vm296_vm0, %v556_v50  ;;  %v528_v6 = vmul.f32 %v3261_v23, %v490_v58  ;;  %v393_v9 = vmul.f32 %v3225_v1, %v354_v55  ;;  %v430_v11 = vadd.f32 %v3237_v2, %v391_v3 }
  0x1f   : > { %v685_v22 = vld [vmem:[#allocation2 + $0x9] sm:$0xff]  ;;  %592 = vst.msk [vmem:[#allocation2 + $0x49] sm:$0xff] %vm296_vm0, %v559_v51  ;;  %v561_v62 = vadd.f32 %v529_v52, %v458_v42  ;;  %v531_v10 = vmul.f32 %v3261_v23, %v493_v0  ;;  %v392_v12 = vmul.f32 %v3225_v1, %v353_v60  ;;  %v395_v13 = vmul.f32 %v3225_v1, %v356_v61 }
  0x20   : > { %750 = vrot.lane.b32.xlu0 %v685_v22, %s3111_s12  ;;  %v620_v4 = vld [vmem:[#allocation2] sm:$0xff]  ;;  %591 = vst.msk [vmem:[#allocation2 + $0x39] sm:$0xff] %vm296_vm0, %v558_v56  ;;  %v560_v14 = vadd.f32 %v528_v6, %v457_v57  ;;  %v459_v15 = vmax.f32 %v427_v7, 0.0  ;;  %v492_v16 = vmin.f32 %v427_v7, 0.0  ;;  %v429_v17 = vadd.f32 %v3237_v2, %v390_v8  ;;  %v359_v52 = vld [vmem:[%s3232_s9 + $0x88] sm:$0xff] }
  0x21   : > { %652 = vst.msk [vmem:[#allocation3] sm:$0xff] %vm296_vm0, %v620_v4  ;;  %594 = vst.msk [vmem:[#allocation2 + $0x61] sm:$0xff] %vm296_vm0, %v561_v62  ;;  %v563_v18 = vadd.f32 %v531_v10, %v460_v63  ;;  %v462_v19 = vmax.f32 %v430_v11, 0.0  ;;  %v495_v20 = vmin.f32 %v430_v11, 0.0  ;;  %v432_v21 = vadd.f32 %v3237_v2, %v393_v9  ;;  %v362_v9 = vld [vmem:[%s3232_s9 + $0xa0] sm:$0xff] }
  0x22   : > { %593 = vst.msk [vmem:[#allocation2 + $0x51] sm:$0xff] %vm296_vm0, %v560_v14  ;;  %v530_v22 = vmul.f32 %v3261_v23, %v492_v16  ;;  %v461_v24 = vmax.f32 %v429_v17, 0.0  ;;  %v494_v25 = vmin.f32 %v429_v17, 0.0  ;;  %v431_v26 = vadd.f32 %v3237_v2, %v392_v12  ;;  %v361_v14 = vld [vmem:[%s3232_s9 + $0x98] sm:$0xff] }
  0x23   : > { %v3307_v29 = vld [vmem:[#allocation2 + $0x19] sm:$0xff]  ;;  %596 = vst.msk [vmem:[#allocation2 + $0x79] sm:$0xff] %vm296_vm0, %v563_v18  ;;  %v533_v31 = vmul.f32 %v3261_v23, %v495_v20  ;;  %v464_v32 = vmax.f32 %v432_v21, 0.0  ;;  %v497_v33 = vmin.f32 %v432_v21, 0.0  ;;  %v434_v34 = vadd.f32 %v3237_v2, %v395_v13 }
  0x24   : > { %v3309_v30 = vld [vmem:[#allocation2 + $0x31] sm:$0xff]  ;;  %752 = vrot.lane.b32.xlu1 %v3307_v29, %s3111_s12  ;;  %v562_v36 = vadd.f32 %v530_v22, %v459_v15  ;;  %v532_v37 = vmul.f32 %v3261_v23, %v494_v25  ;;  %v463_v38 = vmax.f32 %v431_v26, 0.0  ;;  %v496_v39 = vmin.f32 %v431_v26, 0.0 }
  0x25   : > { %v3314_v35 = vld [vmem:[#allocation2 + $0x18] sm:$0xff]  ;;  %756 = vrot.lane.b32.xlu0 %v3309_v30, %s3111_s12  ;;  %v3325_v42 = vld [vmem:[#allocation2 + $0x21] sm:$0xff]  ;;  %v565_v44 = vadd.f32 %v533_v31, %v462_v19  ;;  %v535_v45 = vmul.f32 %v3261_v23, %v497_v33  ;;  %v466_v46 = vmax.f32 %v434_v34, 0.0  ;;  %v499_v47 = vmin.f32 %v434_v34, 0.0  ;;  %v3333_v53 = vld [vmem:[#allocation2 + $0x30] sm:$0xff] }
  0x26   : > { %654 = vst.msk [vmem:[#allocation3 + $0x10] sm:$0xff] %vm296_vm0, %v3314_v35  ;;  %v690_v43 = vld [vmem:[#allocation2 + $0x49] sm:$0xff]  ;;  %595 = vst.msk [vmem:[#allocation2 + $0x69] sm:$0xff] %vm296_vm0, %v562_v36  ;;  %v564_v48 = vadd.f32 %v532_v37, %v461_v24  ;;  %v534_v49 = vmul.f32 %v3261_v23, %v496_v39  ;;  %v394_v50 = vmul.f32 %v3225_v1, %v355_v27  ;;  %v3341_v58 = vld [vmem:[#allocation2 + $0x20] sm:$0xff]  ;;  %vm2196_vm10 = vcmask 589312  }
  0x27   : > { %v397_v51 = vmul.f32 %v3225_v1, %v358_v28  ;;  %598 = vst.msk [vmem:[#allocation2 + $0x91] sm:$0xff] %vm296_vm0, %v565_v44  ;;  %v567_v54 = vadd.f32 %v535_v45, %v464_v32  ;;  %v537_v55 = vmul.f32 %v3261_v23, %v499_v47  ;;  %v396_v56 = vmul.f32 %v3225_v1, %v357_v40  ;;  %v3343_v59 = vld [vmem:[#allocation2 + $0x48] sm:$0xff]  ;;  %v3345_v60 = vld [vmem:[#allocation2 + $0x38] sm:$0xff]  ;;  %v364_v25 = vld [vmem:[%s3232_s9 + $0xb0] sm:$0xff] }
  0x28   : > { %v399_v57 = vmul.f32 %v3225_v1, %v360_v41  ;;  %656 = vst.msk [vmem:[#allocation3 + $0x20] sm:$0xff] %vm296_vm0, %v3333_v53  ;;  %754 = vrot.lane.b32.xlu1 %v3325_v42, %s3111_s12  ;;  %597 = vst.msk [vmem:[#allocation2 + $0x81] sm:$0xff] %vm296_vm0, %v564_v48  ;;  %v566_v61 = vadd.f32 %v534_v49, %v463_v38  ;;  %v433_v62 = vadd.f32 %v3237_v2, %v394_v50  ;;  %v3359_v0 = vld [vmem:[#allocation2 + $0x60] sm:$0xff]  ;;  %v363_v34 = vld [vmem:[%s3232_s9 + $0xa8] sm:$0xff]  ;;  %vm2270_vm11 = vcmask 588800  }
  0x29   : > { %760 = vrot.lane.b32.xlu0 %v690_v43, %s3111_s12  ;;  %v436_v63 = vadd.f32 %v3237_v2, %v397_v51  ;;  %655 = vst.msk [vmem:[#allocation3 + $0x18] sm:$0xff] %vm296_vm0, %v3341_v58  ;;  %658 = vst.msk [vmem:[#allocation3 + $0x30] sm:$0xff] %vm296_vm0, %v3343_v59  ;;  %v3361_v3 = vld [vmem:[#allocation2 + $0x39] sm:$0xff]  ;;  %v692_v4 = vld [vmem:[#allocation2 + $0x61] sm:$0xff]  ;;  %v569_v5 = vadd.f32 %v537_v55, %v466_v46  ;;  %v435_v6 = vadd.f32 %v3237_v2, %v396_v56 }
  0x2a   : > { %657 = vst.msk [vmem:[#allocation3 + $0x28] sm:$0xff] %vm296_vm0, %v3345_v60  ;;  %600 = vst.msk [vmem:[#allocation2 + $0xa9] sm:$0xff] %vm296_vm0, %v567_v54  ;;  %v438_v7 = vadd.f32 %v3237_v2, %v399_v57  ;;  %v398_v8 = vmul.f32 %v3225_v1, %v359_v52  ;;  %v465_v10 = vmax.f32 %v433_v62, 0.0  ;;  %v498_v11 = vmin.f32 %v433_v62, 0.0  ;;  %v3372_v15 = vld [vmem:[#allocation2 + $0x50] sm:$0xff]  ;;  %v3377_v20 = vld [vmem:[#allocation2 + $0x78] sm:$0xff] }
  0x2b   : > { %660 = vst.msk [vmem:[#allocation3 + $0x40] sm:$0xff] %vm296_vm0, %v3359_v0  ;;  %599 = vst.msk [vmem:[#allocation2 + $0x99] sm:$0xff] %vm296_vm0, %v566_v61  ;;  %v468_v12 = vmax.f32 %v436_v63, 0.0  ;;  %v501_v13 = vmin.f32 %v436_v63, 0.0  ;;  %v467_v16 = vmax.f32 %v435_v6, 0.0  ;;  %v500_v17 = vmin.f32 %v435_v6, 0.0 }
  0x2c   : > { %602 = vst.msk [vmem:[#allocation2 + $0xc1] sm:$0xff] %vm296_vm0, %v569_v5  ;;  %v470_v18 = vmax.f32 %v438_v7, 0.0  ;;  %v503_v19 = vmin.f32 %v438_v7, 0.0  ;;  %659 = vst.msk [vmem:[#allocation3 + $0x38] sm:$0xff] %vm296_vm0, %v3372_v15  ;;  %758 = vrot.lane.b32.xlu1 %v3361_v3, %s3111_s12  ;;  %v536_v21 = vmul.f32 %v3261_v23, %v498_v11  ;;  %v437_v24 = vadd.f32 %v3237_v2, %v398_v8  ;;  %v3388_v26 = vld [vmem:[#allocation2 + $0x51] sm:$0xff]  ;;  %v694_v27 = vld [vmem:[#allocation2 + $0x79] sm:$0xff] }
  0x2d   : > { %764 = vrot.lane.b32.xlu0 %v692_v4, %s3111_s12  ;;  %v539_v22 = vmul.f32 %v3261_v23, %v501_v13  ;;  %662 = vst.msk [vmem:[#allocation3 + $0x50] sm:$0xff] %vm296_vm0, %v3377_v20  ;;  %v538_v28 = vmul.f32 %v3261_v23, %v500_v17  ;;  %v401_v32 = vmul.f32 %v3225_v1, %v362_v9  ;;  %v3395_v40 = vld [vmem:[#allocation2 + $0x68] sm:$0xff]  ;;  %v366_v47 = vld [vmem:[%s3232_s9 + $0xc0] sm:$0xff]  ;;  %v365_v48 = vld [vmem:[%s3232_s9 + $0xb8] sm:$0xff] }
  0x2e   : > { %v541_v31 = vmul.f32 %v3261_v23, %v503_v19  ;;  %v400_v33 = vmul.f32 %v3225_v1, %v361_v14  ;;  %v568_v36 = vadd.f32 %v536_v21, %v465_v10  ;;  %v469_v38 = vmax.f32 %v437_v24, 0.0  ;;  %v3397_v41 = vld [vmem:[#allocation2 + $0x90] sm:$0xff]  ;;  %661 = vst.msk [vmem:[#allocation3 + $0x48] sm:$0xff] %vm296_vm0, %v3395_v40  ;;  %v367_v14 = vld [vmem:[%s3232_s9 + $0xc8] sm:$0xff] }
  0x2f   : > { %v571_v37 = vadd.f32 %v539_v22, %v468_v12  ;;  %v502_v39 = vmin.f32 %v437_v24, 0.0  ;;  %v570_v43 = vadd.f32 %v538_v28, %v467_v16  ;;  %v440_v45 = vadd.f32 %v3237_v2, %v401_v32  ;;  %664 = vst.msk [vmem:[#allocation3 + $0x60] sm:$0xff] %vm296_vm0, %v3397_v41  ;;  %v368_v52 = vld [vmem:[%s3232_s9 + $0xd0] sm:$0xff]  ;;  %v3416_v54 = vld [vmem:[#allocation2 + $0x80] sm:$0xff] }
  0x30   : > { %v573_v44 = vadd.f32 %v541_v31, %v470_v18  ;;  %v439_v46 = vadd.f32 %v3237_v2, %v400_v33  ;;  %762 = vrot.lane.b32.xlu1 %v3388_v26, %s3111_s12  ;;  %601 = vst.msk [vmem:[#allocation2 + $0xb1] sm:$0xff] %vm296_vm0, %v568_v36  ;;  %v403_v50 = vmul.f32 %v3225_v1, %v364_v25  ;;  %v693_v56 = vld [vmem:[#allocation2 + $0x69] sm:$0xff]  ;;  %v696_v57 = vld [vmem:[#allocation2 + $0x91] sm:$0xff]  ;;  %663 = vst.msk [vmem:[#allocation3 + $0x58] sm:$0xff] %vm296_vm0, %v3416_v54 }
  0x31   : > { %768 = vrot.lane.b32.xlu0 %v694_v27, %s3111_s12  ;;  %604 = vst.msk [vmem:[#allocation2 + $0xd9] sm:$0xff] %vm296_vm0, %v571_v37  ;;  %v540_v49 = vmul.f32 %v3261_v23, %v502_v39  ;;  %v402_v51 = vmul.f32 %v3225_v1, %v363_v34  ;;  %v3418_v55 = vld [vmem:[#allocation2 + $0xa8] sm:$0xff]  ;;  %603 = vst.msk [vmem:[#allocation2 + $0xc9] sm:$0xff] %vm296_vm0, %v570_v43  ;;  %v472_v61 = vmax.f32 %v440_v45, 0.0  ;;  %v505_v62 = vmin.f32 %v440_v45, 0.0  ;;  %v370_v37 = vld [vmem:[%s3232_s9 + $0xe0] sm:$0xff] }
  0x32   : > { %606 = vst.msk [vmem:[#allocation2 + $0xf1] sm:$0xff] %vm296_vm0, %v573_v44  ;;  %v471_v63 = vmax.f32 %v439_v46, 0.0  ;;  %v504_v4 = vmin.f32 %v439_v46, 0.0  ;;  %666 = vst.msk [vmem:[#allocation3 + $0x70] sm:$0xff] %vm296_vm0, %v3418_v55  ;;  %v442_v6 = vadd.f32 %v3237_v2, %v403_v50  ;;  %v405_v8 = vmul.f32 %v3225_v1, %v366_v47  ;;  %v3429_v9 = vld [vmem:[#allocation2 + $0x98] sm:$0xff]  ;;  %v695_v22 = vld [vmem:[#allocation2 + $0x81] sm:$0xff] }
  0x33   : > { %v572_v5 = vadd.f32 %v540_v49, %v469_v38  ;;  %v441_v7 = vadd.f32 %v3237_v2, %v402_v51  ;;  %v543_v10 = vmul.f32 %v3261_v23, %v505_v62  ;;  %v404_v12 = vmul.f32 %v3225_v1, %v365_v48  ;;  %665 = vst.msk [vmem:[#allocation3 + $0x68] sm:$0xff] %vm296_vm0, %v3429_v9  ;;  %v3438_v16 = vld [vmem:[#allocation2 + $0xc0] sm:$0xff]  ;;  %v698_v24 = vld [vmem:[#allocation2 + $0xa9] sm:$0xff]  ;;  %v369_v45 = vld [vmem:[%s3232_s9 + $0xd8] sm:$0xff] }
  0x34   : > { %v542_v11 = vmul.f32 %v3261_v23, %v504_v4  ;;  %v407_v13 = vmul.f32 %v3225_v1, %v368_v52  ;;  %766 = vrot.lane.b32.xlu1 %v693_v56, %s3111_s12  ;;  %v474_v17 = vmax.f32 %v442_v6, 0.0  ;;  %v507_v18 = vmin.f32 %v442_v6, 0.0  ;;  %668 = vst.msk [vmem:[#allocation3 + $0x80] sm:$0xff] %vm296_vm0, %v3438_v16  ;;  %v371_v46 = vld [vmem:[%s3232_s9 + $0xe8] sm:$0xff]  ;;  %v697_v51 = vld [vmem:[#allocation2 + $0x99] sm:$0xff] }
  0x35   : > { %772 = vrot.lane.b32.xlu0 %v696_v57, %s3111_s12  ;;  %605 = vst.msk [vmem:[#allocation2 + $0xe1] sm:$0xff] %vm296_vm0, %v572_v5  ;;  %v473_v19 = vmax.f32 %v441_v7, 0.0  ;;  %v506_v21 = vmin.f32 %v441_v7, 0.0  ;;  %v575_v25 = vadd.f32 %v543_v10, %v472_v61  ;;  %v444_v28 = vadd.f32 %v3237_v2, %v405_v8  ;;  %v700_v52 = vld [vmem:[#allocation2 + $0xc1] sm:$0xff] }
  0x36   : > { %v574_v27 = vadd.f32 %v542_v11, %v471_v63  ;;  %v443_v31 = vadd.f32 %v3237_v2, %v404_v12  ;;  %v545_v32 = vmul.f32 %v3261_v23, %v507_v18  ;;  %v446_v34 = vadd.f32 %v3237_v2, %v407_v13 }
  0x37   : > { %v544_v33 = vmul.f32 %v3261_v23, %v506_v21  ;;  %v406_v36 = vmul.f32 %v3225_v1, %v367_v14  ;;  %608 = vst.msk [vmem:[#allocation2 + $0x109] sm:$0xff] %vm296_vm0, %v575_v25  ;;  %v476_v38 = vmax.f32 %v444_v28, 0.0  ;;  %v509_v39 = vmin.f32 %v444_v28, 0.0  ;;  %v3467_v6 = vld [vmem:[#allocation2 + $0xb0] sm:$0xff] }
  0x38   : > { %607 = vst.msk [vmem:[#allocation2 + $0xf9] sm:$0xff] %vm296_vm0, %v574_v27  ;;  %v475_v43 = vmax.f32 %v443_v31, 0.0  ;;  %v508_v44 = vmin.f32 %v443_v31, 0.0  ;;  %770 = vrot.lane.b32.xlu1 %v695_v22, %s3111_s12  ;;  %v577_v47 = vadd.f32 %v545_v32, %v474_v17  ;;  %v478_v49 = vmax.f32 %v446_v34, 0.0  ;;  %v3469_v7 = vld [vmem:[#allocation2 + $0xd8] sm:$0xff]  ;;  %v3471_v8 = vld [vmem:[#allocation2 + $0xc8] sm:$0xff] }
  0x39   : > { %776 = vrot.lane.b32.xlu0 %v698_v24, %s3111_s12  ;;  %v576_v48 = vadd.f32 %v544_v33, %v473_v19  ;;  %v511_v50 = vmin.f32 %v446_v34, 0.0  ;;  %v547_v56 = vmul.f32 %v3261_v23, %v509_v39  ;;  %v445_v61 = vadd.f32 %v3237_v2, %v406_v36  ;;  %667 = vst.msk [vmem:[#allocation3 + $0x78] sm:$0xff] %vm296_vm0, %v3467_v6  ;;  %v3483_v18 = vld [vmem:[#allocation2 + $0xf0] sm:$0xff]  ;;  %v702_v22 = vld [vmem:[#allocation2 + $0xd9] sm:$0xff] }
  0x3a   : > { %v546_v57 = vmul.f32 %v3261_v23, %v508_v44  ;;  %v409_v62 = vmul.f32 %v3225_v1, %v370_v37  ;;  %610 = vst.msk [vmem:[#allocation2 + $0x121] sm:$0xff] %vm296_vm0, %v577_v47  ;;  %v408_v4 = vmul.f32 %v3225_v1, %v369_v45  ;;  %v410_v5 = vmul.f32 %v3225_v1, %v371_v46  ;;  %v699_v21 = vld [vmem:[#allocation2 + $0xb1] sm:$0xff] }
  0x3b   : > { %609 = vst.msk [vmem:[#allocation2 + $0x111] sm:$0xff] %vm296_vm0, %v576_v48  ;;  %v549_v63 = vmul.f32 %v3261_v23, %v511_v50  ;;  %v579_v10 = vadd.f32 %v547_v56, %v476_v38  ;;  %v477_v12 = vmax.f32 %v445_v61, 0.0  ;;  %v510_v13 = vmin.f32 %v445_v61, 0.0  ;;  %670 = vst.msk [vmem:[#allocation3 + $0x90] sm:$0xff] %vm296_vm0, %v3469_v7  ;;  %v704_v44 = vld [vmem:[#allocation2 + $0xf1] sm:$0xff] }
  0x3c   : > { %v578_v11 = vadd.f32 %v546_v57, %v475_v43  ;;  %669 = vst.msk [vmem:[#allocation3 + $0x88] sm:$0xff] %vm296_vm0, %v3471_v8  ;;  %774 = vrot.lane.b32.xlu1 %v697_v51, %s3111_s12  ;;  %v448_v14 = vadd.f32 %v3237_v2, %v409_v62  ;;  %v447_v17 = vadd.f32 %v3237_v2, %v408_v4  ;;  %v3485_v19 = vld [vmem:[#allocation2 + $0xe0] sm:$0xff]  ;;  %672 = vst.msk [vmem:[#allocation3 + $0xa0] sm:$0xff] %vm296_vm0, %v3483_v18  ;;  %v701_v43 = vld [vmem:[#allocation2 + $0xc9] sm:$0xff] }
  0x3d   : > { %780 = vrot.lane.b32.xlu0 %v700_v52, %s3111_s12  ;;  %v581_v1 = vadd.f32 %v549_v63, %v478_v49  ;;  %612 = vst.msk [vmem:[#allocation2 + $0x139] sm:$0xff] %vm296_vm0, %v579_v10  ;;  %v548_v24 = vmul.f32 %v3261_v23, %v510_v13  ;;  %v449_v25 = vadd.f32 %v3237_v2, %v410_v5  ;;  %671 = vst.msk [vmem:[#allocation3 + $0x98] sm:$0xff] %vm296_vm0, %v3485_v19 }
  0x3e   : > { %611 = vst.msk [vmem:[#allocation2 + $0x129] sm:$0xff] %vm296_vm0, %v578_v11  ;;  %v480_v27 = vmax.f32 %v448_v14, 0.0  ;;  %v513_v28 = vmin.f32 %v448_v14, 0.0  ;;  %v479_v31 = vmax.f32 %v447_v17, 0.0  ;;  %v512_v32 = vmin.f32 %v447_v17, 0.0  ;;  %v3496_v37 = vld [vmem:[#allocation2 + $0x108] sm:$0xff] }
  0x3f   : > { %614 = vst.msk [vmem:[#allocation2 + $0x151] sm:$0xff] %vm296_vm0, %v581_v1  ;;  %v580_v33 = vadd.f32 %v548_v24, %v477_v12  ;;  %v481_v34 = vmax.f32 %v449_v25, 0.0  ;;  %v514_v36 = vmin.f32 %v449_v25, 0.0  ;;  %674 = vst.msk [vmem:[#allocation3 + $0xb0] sm:$0xff] %vm296_vm0, %v3496_v37  ;;  %v3504_v39 = vld [vmem:[#allocation2 + $0xf8] sm:$0xff]  ;;  %v706_v51 = vld [vmem:[#allocation2 + $0x109] sm:$0xff] }
  0x40   : > { %778 = vrot.lane.b32.xlu1 %v699_v21, %s3111_s12  ;;  %v551_v2 = vmul.f32 %v3261_v23, %v513_v28  ;;  %v550_v38 = vmul.f32 %v3261_v23, %v512_v32  ;;  %673 = vst.msk [vmem:[#allocation3 + $0xa8] sm:$0xff] %vm296_vm0, %v3504_v39  ;;  %v705_v61 = vld [vmem:[#allocation2 + $0xf9] sm:$0xff]  ;;  %v3557_v32 = vld [vmem:[#allocation2 + $0x4a] sm:$0xff] }
  0x41   : > { %784 = vrot.lane.b32.xlu0 %v702_v22, %s3111_s12  ;;  %613 = vst.msk [vmem:[#allocation2 + $0x141] sm:$0xff] %vm296_vm0, %v580_v33  ;;  %v552_v45 = vmul.f32 %v3261_v23, %v514_v36  ;;  %v3510_v48 = vld [vmem:[#allocation2 + $0x120] sm:$0xff]  ;;  %v3550_v28 = vld [vmem:[#allocation2 + $0x32] sm:$0xff] }
  0x42   : > { %v583_v46 = vadd.f32 %v551_v2, %v480_v27  ;;  %v582_v47 = vadd.f32 %v550_v38, %v479_v31  ;;  %v3512_v49 = vld [vmem:[#allocation2 + $0x110] sm:$0xff]  ;;  %676 = vst.msk [vmem:[#allocation3 + $0xc0] sm:$0xff] %vm296_vm0, %v3510_v48  ;;  %v703_v23 = vld [vmem:[#allocation2 + $0xe1] sm:$0xff] }
  0x43   : > { %v584_v50 = vadd.f32 %v552_v45, %v481_v34  ;;  %675 = vst.msk [vmem:[#allocation3 + $0xb8] sm:$0xff] %vm296_vm0, %v3512_v49  ;;  %v708_v62 = vld [vmem:[#allocation2 + $0x121] sm:$0xff]  ;;  %v707_v4 = vld [vmem:[#allocation2 + $0x111] sm:$0xff] }
  0x44   : > { %782 = vrot.lane.b32.xlu1 %v701_v43, %s3111_s12  ;;  %616 = vst.msk [vmem:[#allocation2 + $0x169] sm:$0xff] %vm296_vm0, %v583_v46  ;;  %615 = vst.msk [vmem:[#allocation2 + $0x159] sm:$0xff] %vm296_vm0, %v582_v47  ;;  %v646_v52 = vld [vmem:[#allocation2 + $0x138] sm:$0xff]  ;;  %v877_v22 = vld [vmem:[#allocation2 + $0x2] sm:$0xff] }
  0x45   : > { %788 = vrot.lane.b32.xlu0 %v704_v44, %s3111_s12  ;;  %617 = vst.msk [vmem:[#allocation2 + $0x171] sm:$0xff] %vm296_vm0, %v584_v50  ;;  %678 = vst.msk [vmem:[#allocation3 + $0xd0] sm:$0xff] %vm296_vm0, %v646_v52  ;;  %v3524_v56 = vld [vmem:[#allocation2 + $0x128] sm:$0xff]  ;;  %v710_v5 = vld [vmem:[#allocation2 + $0x139] sm:$0xff] }
  0x46   : > { %677 = vst.msk [vmem:[#allocation3 + $0xc8] sm:$0xff] %vm296_vm0, %v3524_v56  ;;  %v648_v57 = vld [vmem:[#allocation2 + $0x150] sm:$0xff]  ;;  %v3545_v25 = vld [vmem:[#allocation2 + $0x1a] sm:$0xff]  ;;  %v3555_v31 = vld [vmem:[#allocation2 + $0x22] sm:$0xff] }
  0x47   : > { %680 = vst.msk [vmem:[#allocation3 + $0xe0] sm:$0xff] %vm296_vm0, %v648_v57  ;;  %v709_v13 = vld [vmem:[#allocation2 + $0x129] sm:$0xff]  ;;  %v712_v1 = vld [vmem:[#allocation2 + $0x151] sm:$0xff]  ;;  %v3563_v33 = vld [vmem:[#allocation2 + $0x3a] sm:$0xff] }
  0x48   : > { %786 = vrot.lane.b32.xlu1 %v703_v23, %s3111_s12  ;;  %v647_v63 = vld [vmem:[#allocation2 + $0x140] sm:$0xff]  ;;  %v878_v27 = vld [vmem:[#allocation2 + $0xa] sm:$0xff]  ;;  %v3571_v36 = vld [vmem:[#allocation2 + $0x52] sm:$0xff] }
  0x49   : > { %792 = vrot.lane.b32.xlu0 %v706_v51, %s3111_s12  ;;  %679 = vst.msk [vmem:[#allocation3 + $0xd8] sm:$0xff] %vm296_vm0, %v647_v63  ;;  %v711_v14 = vld [vmem:[#allocation2 + $0x141] sm:$0xff]  ;;  %v3579_v38 = vld [vmem:[#allocation2 + $0x6a] sm:$0xff]  ;;  %v3581_v43 = vld [vmem:[#allocation2 + $0x92] sm:$0xff] }
  0x4a   : > { %v3565_v34 = vld [vmem:[#allocation2 + $0x62] sm:$0xff]  ;;  %v3573_v2 = vld [vmem:[#allocation2 + $0x7a] sm:$0xff]  ;;  %v3589_v45 = vld [vmem:[#allocation2 + $0xaa] sm:$0xff] }
  0x4b   : > { %v650_v10 = vld [vmem:[#allocation2 + $0x168] sm:$0xff]  ;;  %v649_v11 = vld [vmem:[#allocation2 + $0x158] sm:$0xff] }
  0x4c   : > { %790 = vrot.lane.b32.xlu1 %v705_v61, %s3111_s12  ;;  %682 = vst.msk [vmem:[#allocation3 + $0xf0] sm:$0xff] %vm296_vm0, %v650_v10  ;;  %681 = vst.msk [vmem:[#allocation3 + $0xe8] sm:$0xff] %vm296_vm0, %v649_v11  ;;  %v651_v12 = vld [vmem:[#allocation2 + $0x170] sm:$0xff]  ;;  %v713_v21 = vld [vmem:[#allocation2 + $0x159] sm:$0xff] }
  0x4d   : > { %796 = vrot.lane.b32.xlu0 %v708_v62, %s3111_s12  ;;  %683 = vst.msk [vmem:[#allocation3 + $0xf8] sm:$0xff] %vm296_vm0, %v651_v12  ;;  %v714_v17 = vld [vmem:[#allocation2 + $0x169] sm:$0xff]  ;;  %v715_v24 = vld [vmem:[#allocation2 + $0x171] sm:$0xff]  ;;  %v3595_v46 = vld [vmem:[#allocation2 + $0x9a] sm:$0xff] }
  0x4e   : > { %v3587_v44 = vld [vmem:[#allocation2 + $0x82] sm:$0xff]  ;;  %v3603_v50 = vld [vmem:[#allocation2 + $0xb2] sm:$0xff]  ;;  %v895_v23 = vld [vmem:[#allocation2 + $0xda] sm:$0xff] }
  0x4f   : > { %v3597_v47 = vld [vmem:[#allocation2 + $0xc2] sm:$0xff]  ;;  %v3608_v51 = vld [vmem:[#allocation2 + $0xca] sm:$0xff]  ;;  %v897_v52 = vld [vmem:[#allocation2 + $0xf2] sm:$0xff] }
  0x50   : > { %794 = vrot.lane.b32.xlu1 %v707_v4, %s3111_s12  ;;  %v896_v57 = vld [vmem:[#allocation2 + $0xe2] sm:$0xff]  ;;  %v899_v61 = vld [vmem:[#allocation2 + $0x10a] sm:$0xff]  ;;  %v898_v63 = vld [vmem:[#allocation2 + $0xfa] sm:$0xff] }
  0x51   : > { %800 = vrot.lane.b32.xlu0 %v710_v5, %s3111_s12  ;;  %v901_v4 = vld [vmem:[#allocation2 + $0x122] sm:$0xff]  ;;  %v900_v10 = vld [vmem:[#allocation2 + $0x112] sm:$0xff]  ;;  %v903_v11 = vld [vmem:[#allocation2 + $0x13a] sm:$0xff] }
  0x52   : > { %v902_v12 = vld [vmem:[#allocation2 + $0x12a] sm:$0xff] }
  0x54   : > { %798 = vrot.lane.b32.xlu1 %v709_v13, %s3111_s12  ;;  %v905_v13 = vld [vmem:[#allocation2 + $0x152] sm:$0xff] }
  0x55   : > { %804 = vrot.lane.b32.xlu0 %v712_v1, %s3111_s12  ;;  %v904_v1 = vld [vmem:[#allocation2 + $0x142] sm:$0xff] }
  0x58   : > { %802 = vrot.lane.b32.xlu1 %v711_v14, %s3111_s12  ;;  %v907_v14 = vld [vmem:[#allocation2 + $0x16a] sm:$0xff] }
  0x59   : > { %808 = vrot.lane.b32.xlu0 %v714_v17, %s3111_s12 }
  0x5c   : > { %806 = vrot.lane.b32.xlu1 %v713_v21, %s3111_s12 }
  0x5d   : > { %941 = vrot.lane.b32.xlu0 %v877_v22, %s3112_s15  ;;  %v906_v22 = vld [vmem:[#allocation2 + $0x15a] sm:$0xff] }
  0x60   : > { %810 = vrot.lane.b32.xlu1 %v715_v24, %s3111_s12 }
  0x61   : > { %945 = vrot.lane.b32.xlu0 %v3545_v25, %s3112_s15 }
  0x64   : > { %943 = vrot.lane.b32.xlu1 %v878_v27, %s3112_s15 }
  0x65   : > { %949 = vrot.lane.b32.xlu0 %v3550_v28, %s3112_s15 }
  0x68   : > { %947 = vrot.lane.b32.xlu1 %v3555_v31, %s3112_s15 }
  0x69   : > { %953 = vrot.lane.b32.xlu0 %v3557_v32, %s3112_s15 }
  0x6c   : > { %951 = vrot.lane.b32.xlu1 %v3563_v33, %s3112_s15 }
  0x6d   : > { %957 = vrot.lane.b32.xlu0 %v3565_v34, %s3112_s15 }
  0x70   : > { %955 = vrot.lane.b32.xlu1 %v3571_v36, %s3112_s15 }
  0x71   : > { %961 = vrot.lane.b32.xlu0 %v3573_v2, %s3112_s15 }
  0x74   : > { %959 = vrot.lane.b32.xlu1 %v3579_v38, %s3112_s15 }
  0x75   : > { %965 = vrot.lane.b32.xlu0 %v3581_v43, %s3112_s15 }
  0x78   : > { %963 = vrot.lane.b32.xlu1 %v3587_v44, %s3112_s15 }
  0x79   : > { %969 = vrot.lane.b32.xlu0 %v3589_v45, %s3112_s15 }
  0x7c   : > { %967 = vrot.lane.b32.xlu1 %v3595_v46, %s3112_s15 }
  0x7d   : > { %973 = vrot.lane.b32.xlu0 %v3597_v47, %s3112_s15 }
  0x80   : > { %971 = vrot.lane.b32.xlu1 %v3603_v50, %s3112_s15  ;;  %v749_v62 = vpop.permute.xlu0 %748 }
  0x81   : > { %977 = vrot.lane.b32.xlu0 %v895_v23, %s3112_s15  ;;  %845 = vst.msk [vmem:[#allocation3] sm:$0xff] %vm844_vm3, %v749_v62  ;;  %v908_v23 = vld [vmem:[#allocation2 + $0x172] sm:$0xff] }
  0x84   : > { %975 = vrot.lane.b32.xlu1 %v3608_v51, %s3112_s15 }
  0x85   : > { %981 = vrot.lane.b32.xlu0 %v897_v52, %s3112_s15 }
  0x88   : > { %979 = vrot.lane.b32.xlu1 %v896_v57, %s3112_s15 }
  0x89   : > { %985 = vrot.lane.b32.xlu0 %v899_v61, %s3112_s15 }
  0x8c   : > { %983 = vrot.lane.b32.xlu1 %v898_v63, %s3112_s15 }
  0x8d   : > { %989 = vrot.lane.b32.xlu0 %v901_v4, %s3112_s15 }
  0x90   : > { %987 = vrot.lane.b32.xlu1 %v900_v10, %s3112_s15 }
  0x91   : > { %993 = vrot.lane.b32.xlu0 %v903_v11, %s3112_s15 }
  0x92   : > { %v751_v5 = vpop.permute.xlu0 %750 }
  0x93   : > { %846 = vst.msk [vmem:[#allocation3 + $0x8] sm:$0xff] %vm844_vm3, %v751_v5 }
  0x94   : > { %991 = vrot.lane.b32.xlu1 %v902_v12, %s3112_s15 }
  0x95   : > { %997 = vrot.lane.b32.xlu0 %v905_v13, %s3112_s15 }
  0x96   : > { %v753_v17 = vpop.permute.xlu1 %752 }
  0x97   : > { %v757_v21 = vpop.permute.xlu0 %756  ;;  %847 = vst.msk [vmem:[#allocation3 + $0x10] sm:$0xff] %vm844_vm3, %v753_v17  ;;  %v2262_v17 = vld [vmem:[%s4376_s1 + $0x8] sm:$0xff] }
  0x98   : > { %849 = vst.msk [vmem:[#allocation3 + $0x20] sm:$0xff] %vm844_vm3, %v757_v21  ;;  %995 = vrot.lane.b32.xlu1 %v904_v1, %s3112_s15 }
  0x99   : > { %1001 = vrot.lane.b32.xlu0 %v907_v14, %s3112_s15  ;;  %v2261_v14 = vld [vmem:[%s4376_s1] sm:$0xff] }
  0x9a   : > { %v755_v24 = vpop.permute.xlu1 %754  ;;  %v3056_v21 = vpack.c.bf16 %v2262_v17, %v2261_v14 }
  0x9b   : > { %v761_v27 = vpop.permute.xlu0 %760  ;;  %848 = vst.msk [vmem:[#allocation3 + $0x18] sm:$0xff] %vm844_vm3, %v755_v24  ;;  %v2263_v24 = vld [vmem:[%s4376_s1 + $0x10] sm:$0xff] }
  0x9c   : > { %851 = vst.msk [vmem:[#allocation3 + $0x30] sm:$0xff] %vm844_vm3, %v761_v27  ;;  %999 = vrot.lane.b32.xlu1 %v906_v22, %s3112_s15  ;;  %3057 = vmatprep.subr.bf16.mxu0 %v3056_v21  ;;  %v2264_v27 = vld [vmem:[%s4376_s1 + $0x18] sm:$0xff] }
  0x9d   : > { %1134 = vrot.lane.b32.xlu0 %v3314_v35, %s3113_s16  ;;  %3072 = vmatprep.subr.bf16.mxu1 %v3056_v21 }
  0x9e   : > { %v759_v52 = vpop.permute.xlu1 %758  ;;  %3059 = vmatpush3.bf16.msra.mxu0 %v3056_v21  ;;  %3077 = vmatpush3.bf16.msra.mxu1 %v3056_v21 }
  0x9f   : > { %v765_v57 = vpop.permute.xlu0 %764  ;;  %850 = vst.msk [vmem:[#allocation3 + $0x28] sm:$0xff] %vm844_vm3, %v759_v52  ;;  %v2265_v52 = vld [vmem:[%s4376_s1 + $0x20] sm:$0xff] }
  0xa0   : > { %853 = vst.msk [vmem:[#allocation3 + $0x40] sm:$0xff] %vm844_vm3, %v765_v57  ;;  %1003 = vrot.lane.b32.xlu1 %v908_v23, %s3112_s15  ;;  %v2266_v57 = vld [vmem:[%s4376_s1 + $0x28] sm:$0xff] }
  0xa1   : > { %1138 = vrot.lane.b32.xlu0 %v3333_v53, %s3113_s16 }
  0xa2   : > { %v763_v61 = vpop.permute.xlu1 %762 }
  0xa3   : > { %v769_v62 = vpop.permute.xlu0 %768  ;;  %852 = vst.msk [vmem:[#allocation3 + $0x38] sm:$0xff] %vm844_vm3, %v763_v61 }
  0xa4   : > { %855 = vst.msk [vmem:[#allocation3 + $0x50] sm:$0xff] %vm844_vm3, %v769_v62  ;;  %1136 = vrot.lane.b32.xlu1 %v3341_v58, %s3113_s16  ;;  %v2267_v62 = vld [vmem:[%s4376_s1 + $0x30] sm:$0xff] }
  0xa5   : > { %1142 = vrot.lane.b32.xlu0 %v3343_v59, %s3113_s16 }
  0xa6   : > { %v767_v35 = vpop.permute.xlu1 %766 }
  0xa7   : > { %v773_v63 = vpop.permute.xlu0 %772  ;;  %854 = vst.msk [vmem:[#allocation3 + $0x48] sm:$0xff] %vm844_vm3, %v767_v35  ;;  %v2268_v35 = vld [vmem:[%s4376_s1 + $0x38] sm:$0xff] }
  0xa8   : > { %857 = vst.msk [vmem:[#allocation3 + $0x60] sm:$0xff] %vm844_vm3, %v773_v63  ;;  %1140 = vrot.lane.b32.xlu1 %v3345_v60, %s3113_s16 }
  0xa9   : > { %1146 = vrot.lane.b32.xlu0 %v3359_v0, %s3113_s16 }
  0xaa   : > { %v771_v4 = vpop.permute.xlu1 %770 }
  0xab   : > { %v777_v5 = vpop.permute.xlu0 %776  ;;  %856 = vst.msk [vmem:[#allocation3 + $0x58] sm:$0xff] %vm844_vm3, %v771_v4 }
  0xac   : > { %859 = vst.msk [vmem:[#allocation3 + $0x70] sm:$0xff] %vm844_vm3, %v777_v5  ;;  %1144 = vrot.lane.b32.xlu1 %v3372_v15, %s3113_s16 }
  0xad   : > { %1150 = vrot.lane.b32.xlu0 %v3377_v20, %s3113_s16 }
  0xae   : > { %v775_v58 = vpop.permute.xlu1 %774 }
  0xaf   : > { %v781_v10 = vpop.permute.xlu0 %780  ;;  %858 = vst.msk [vmem:[#allocation3 + $0x68] sm:$0xff] %vm844_vm3, %v775_v58 }
  0xb0   : > { %861 = vst.msk [vmem:[#allocation3 + $0x80] sm:$0xff] %vm844_vm3, %v781_v10  ;;  %1148 = vrot.lane.b32.xlu1 %v3395_v40, %s3113_s16 }
  0xb1   : > { %1154 = vrot.lane.b32.xlu0 %v3397_v41, %s3113_s16 }
  0xb2   : > { %v779_v11 = vpop.permute.xlu1 %778 }
  0xb3   : > { %v785_v12 = vpop.permute.xlu0 %784  ;;  %860 = vst.msk [vmem:[#allocation3 + $0x78] sm:$0xff] %vm844_vm3, %v779_v11  ;;  %v1267_v11 = vld [vmem:[#allocation2 + $0x49] sm:$0xff] }
  0xb4   : > { %863 = vst.msk [vmem:[#allocation3 + $0x90] sm:$0xff] %vm844_vm3, %v785_v12  ;;  %1152 = vrot.lane.b32.xlu1 %v3416_v54, %s3113_s16 }
  0xb5   : > { %1329 = vrot.lane.b32.xlu0 %v3325_v42, %s3114_s17 }
  0xb6   : > { %v783_v13 = vpop.permute.xlu1 %782 }
  0xb7   : > { %v789_v1 = vpop.permute.xlu0 %788  ;;  %862 = vst.msk [vmem:[#allocation3 + $0x88] sm:$0xff] %vm844_vm3, %v783_v13 }
  0xb8   : > { %865 = vst.msk [vmem:[#allocation3 + $0xa0] sm:$0xff] %vm844_vm3, %v789_v1  ;;  %1327 = vrot.lane.b32.xlu1 %v3307_v29, %s3114_s17  ;;  %v3060_v29 = vpack.c.bf16 %v2264_v27, %v2263_v24 }
  0xb9   : > { %1522 = vrot.lane.b32.xlu0 %v3555_v31, %s3115_s22 }
  0xba   : > { %v787_v42 = vpop.permute.xlu1 %786  ;;  %3061 = vmatprep.subr.bf16.mxu0 %v3060_v29  ;;  %3073 = vmatprep.subr.bf16.mxu1 %v3060_v29 }
  0xbb   : > { %v793_v22 = vpop.permute.xlu0 %792  ;;  %864 = vst.msk [vmem:[#allocation3 + $0x98] sm:$0xff] %vm844_vm3, %v787_v42  ;;  %3063 = vmatpush3.bf16.msra.mxu0 %v3060_v29  ;;  %3078 = vmatpush3.bf16.msra.mxu1 %v3060_v29 }
  0xbc   : > { %867 = vst.msk [vmem:[#allocation3 + $0xb0] sm:$0xff] %vm844_vm3, %v793_v22  ;;  %1520 = vrot.lane.b32.xlu1 %v3545_v25, %s3115_s22  ;;  %v3064_v25 = vpack.c.bf16 %v2266_v57, %v2265_v52 }
  0xbd   : > { %1716 = vrot.lane.b32.xlu0 %v3345_v60, %s3116_s30 }
  0xbe   : > { %v791_v31 = vpop.permute.xlu1 %790  ;;  %3065 = vmatprep.subr.bf16.mxu0 %v3064_v25  ;;  %3074 = vmatprep.subr.bf16.mxu1 %v3064_v25 }
  0xbf   : > { %v797_v23 = vpop.permute.xlu0 %796  ;;  %866 = vst.msk [vmem:[#allocation3 + $0xa8] sm:$0xff] %vm844_vm3, %v791_v31  ;;  %3067 = vmatpush3.bf16.msra.mxu0 %v3064_v25  ;;  %3079 = vmatpush3.bf16.msra.mxu1 %v3064_v25 }
  0xc0   : > { %869 = vst.msk [vmem:[#allocation3 + $0xc0] sm:$0xff] %vm844_vm3, %v797_v23  ;;  %1714 = vrot.lane.b32.xlu1 %v3333_v53, %s3116_s30  ;;  %v3068_v53 = vpack.c.bf16 %v2268_v35, %v2267_v62 }
  0xc1   : > { %1331 = vrot.lane.b32.xlu0 %v3309_v30, %s3114_s17 }
  0xc2   : > { %v795_v60 = vpop.permute.xlu1 %794  ;;  %3069 = vmatprep.subr.bf16.mxu0 %v3068_v53  ;;  %3075 = vmatprep.subr.bf16.mxu1 %v3068_v53 }
  0xc3   : > { %v801_v61 = vpop.permute.xlu0 %800  ;;  %868 = vst.msk [vmem:[#allocation3 + $0xb8] sm:$0xff] %vm844_vm3, %v795_v60  ;;  %3071 = vmatpush3.bf16.msra.mxu0 %v3068_v53  ;;  %3080 = vmatpush3.bf16.msra.mxu1 %v3068_v53 }
  0xc4   : > { %871 = vst.msk [vmem:[#allocation3 + $0xd0] sm:$0xff] %vm844_vm3, %v801_v61  ;;  %1907 = vrot.lane.b32.xlu1 %v3309_v30, %s3117_s19  ;;  %v2269_v30 = vld [vmem:[%s4376_s1 + $0x40] sm:$0xff] }
  0xc5   : > { %2100 = vrot.lane.b32.xlu0 %v3550_v28, %s3118_s20  ;;  %3006 = vmatprep.subr.mxu0 %v2269_v30 }
  0xc6   : > { %v799_v63 = vpop.permute.xlu1 %798  ;;  %3076 = vmatprep.subr.mxu1 %v2269_v30 }
  0xc7   : > { %v805_v4 = vpop.permute.xlu0 %804  ;;  %870 = vst.msk [vmem:[#allocation3 + $0xc8] sm:$0xff] %vm844_vm3, %v799_v63  ;;  %3007 = vmatpush3.msra.mxu0 %v2269_v30  ;;  %3081 = vmatpush3.msra.mxu1 %v2269_v30  ;;  %v1851_v30 = vld [vmem:[#allocation2 + $0x91] sm:$0xff] }
  0xc8   : > { %873 = vst.msk [vmem:[#allocation3 + $0xe0] sm:$0xff] %vm844_vm3, %v805_v4  ;;  %1909 = vrot.lane.b32.xlu1 %v3361_v3, %s3117_s19 }
  0xc9   : > { %1524 = vrot.lane.b32.xlu0 %v3550_v28, %s3115_s22 }
  0xca   : > { %v803_v5 = vpop.permute.xlu1 %802 }
  0xcb   : > { %v809_v58 = vpop.permute.xlu0 %808  ;;  %872 = vst.msk [vmem:[#allocation3 + $0xd8] sm:$0xff] %vm844_vm3, %v803_v5  ;;  %v1852_v5 = vld [vmem:[#allocation2 + $0x99] sm:$0xff] }
  0xcc   : > { %875 = vst.msk [vmem:[#allocation3 + $0xf0] sm:$0xff] %vm844_vm3, %v809_v58  ;;  %1333 = vrot.lane.b32.xlu1 %v3361_v3, %s3114_s17 }
  0xcd   : > { %1526 = vrot.lane.b32.xlu0 %v3563_v33, %s3115_s22 }
  0xce   : > { %v807_v28 = vpop.permute.xlu1 %806 }
  0xcf   : > { %v942_v10 = vpop.permute.xlu0 %941  ;;  %874 = vst.msk [vmem:[#allocation3 + $0xe8] sm:$0xff] %vm844_vm3, %v807_v28 }
  0xd0   : > { %1038 = vst.msk [vmem:[#allocation3] sm:$0xff] %vm1037_vm4, %v942_v10  ;;  %2102 = vrot.lane.b32.xlu1 %v3563_v33, %s3118_s20 }
  0xd1   : > { %1720 = vrot.lane.b32.xlu0 %v3372_v15, %s3116_s30 }
  0xd2   : > { %v811_v12 = vpop.permute.xlu1 %810 }
  0xd3   : > { %v946_v13 = vpop.permute.xlu0 %945  ;;  %876 = vst.msk [vmem:[#allocation3 + $0xf8] sm:$0xff] %vm844_vm3, %v811_v12 }
  0xd4   : > { %1040 = vst.msk [vmem:[#allocation3 + $0x10] sm:$0xff] %vm1037_vm4, %v946_v13  ;;  %1718 = vrot.lane.b32.xlu1 %v3343_v59, %s3116_s30  ;;  %v1268_v59 = vld [vmem:[#allocation2 + $0x51] sm:$0xff] }
  0xd5   : > { %1335 = vrot.lane.b32.xlu0 %v1267_v11, %s3114_s17 }
  0xd6   : > { %v944_v3 = vpop.permute.xlu1 %943 }
  0xd7   : > { %v950_v1 = vpop.permute.xlu0 %949  ;;  %1039 = vst.msk [vmem:[#allocation3 + $0x8] sm:$0xff] %vm1037_vm4, %v944_v3 }
  0xd8   : > { %1042 = vst.msk [vmem:[#allocation3 + $0x20] sm:$0xff] %vm1037_vm4, %v950_v1  ;;  %1911 = vrot.lane.b32.xlu1 %v1267_v11, %s3117_s19 }
  0xd9   : > { %2104 = vrot.lane.b32.xlu0 %v3557_v32, %s3118_s20 }
  0xda   : > { %v948_v15 = vpop.permute.xlu1 %947 }
  0xdb   : > { %v954_v33 = vpop.permute.xlu0 %953  ;;  %1041 = vst.msk [vmem:[#allocation3 + $0x18] sm:$0xff] %vm1037_vm4, %v948_v15 }
  0xdc   : > { %1044 = vst.msk [vmem:[#allocation3 + $0x30] sm:$0xff] %vm1037_vm4, %v954_v33  ;;  %1913 = vrot.lane.b32.xlu1 %v3388_v26, %s3117_s19  ;;  %v1269_v26 = vld [vmem:[#allocation2 + $0x61] sm:$0xff]  ;;  %v1854_v33 = vld [vmem:[#allocation2 + $0xb1] sm:$0xff] }
  0xdd   : > { %1528 = vrot.lane.b32.xlu0 %v3557_v32, %s3115_s22 }
  0xde   : > { %v952_v14 = vpop.permute.xlu1 %951 }
  0xdf   : > { %v958_v17 = vpop.permute.xlu0 %957  ;;  %1043 = vst.msk [vmem:[#allocation3 + $0x28] sm:$0xff] %vm1037_vm4, %v952_v14 }
  0xe0   : > { %1046 = vst.msk [vmem:[#allocation3 + $0x40] sm:$0xff] %vm1037_vm4, %v958_v17  ;;  %1337 = vrot.lane.b32.xlu1 %v1268_v59, %s3114_s17 }
  0xe1   : > { %1530 = vrot.lane.b32.xlu0 %v3571_v36, %s3115_s22 }
  0xe2   : > { %v956_v21 = vpop.permute.xlu1 %955 }
  0xe3   : > { %v962_v42 = vpop.permute.xlu0 %961  ;;  %1045 = vst.msk [vmem:[#allocation3 + $0x38] sm:$0xff] %vm1037_vm4, %v956_v21 }
  0xe4   : > { %1048 = vst.msk [vmem:[#allocation3 + $0x50] sm:$0xff] %vm1037_vm4, %v962_v42  ;;  %2106 = vrot.lane.b32.xlu1 %v3571_v36, %s3118_s20 }
  0xe5   : > { %1724 = vrot.lane.b32.xlu0 %v3395_v40, %s3116_s30  ;;  %v1848_v40 = vld [vmem:[#allocation2 + $0x69] sm:$0xff] }
  0xe6   : > { %v960_v32 = vpop.permute.xlu1 %959 }
  0xe7   : > { %v966_v22 = vpop.permute.xlu0 %965  ;;  %1047 = vst.msk [vmem:[#allocation3 + $0x48] sm:$0xff] %vm1037_vm4, %v960_v32 }
  0xe8   : > { %1050 = vst.msk [vmem:[#allocation3 + $0x60] sm:$0xff] %vm1037_vm4, %v966_v22  ;;  %1722 = vrot.lane.b32.xlu1 %v3359_v0, %s3116_s30 }
  0xe9   : > { %1339 = vrot.lane.b32.xlu0 %v1269_v26, %s3114_s17 }
  0xea   : > { %v964_v24 = vpop.permute.xlu1 %963 }
  0xeb   : > { %v970_v27 = vpop.permute.xlu0 %969  ;;  %1049 = vst.msk [vmem:[#allocation3 + $0x58] sm:$0xff] %vm1037_vm4, %v964_v24 }
  0xec   : > { %1052 = vst.msk [vmem:[#allocation3 + $0x70] sm:$0xff] %vm1037_vm4, %v970_v27  ;;  %1915 = vrot.lane.b32.xlu1 %v1269_v26, %s3117_s19  ;;  %v1855_v27 = vld [vmem:[#allocation2 + $0xc1] sm:$0xff] }
  0xed   : > { %2108 = vrot.lane.b32.xlu0 %v3565_v34, %s3118_s20 }
  0xee   : > { %v968_v36 = vpop.permute.xlu1 %967 }
  0xef   : > { %v974_v29 = vpop.permute.xlu0 %973  ;;  %1051 = vst.msk [vmem:[#allocation3 + $0x68] sm:$0xff] %vm1037_vm4, %v968_v36 }
  0xf0   : > { %1054 = vst.msk [vmem:[#allocation3 + $0x80] sm:$0xff] %vm1037_vm4, %v974_v29  ;;  %1917 = vrot.lane.b32.xlu1 %v1848_v40, %s3117_s19 }
  0xf1   : > { %1532 = vrot.lane.b32.xlu0 %v3565_v34, %s3115_s22  ;;  %v1271_v34 = vld [vmem:[#allocation2 + $0x79] sm:$0xff] }
  0xf2   : > { %v972_v0 = vpop.permute.xlu1 %971 }
  0xf3   : > { %v978_v31 = vpop.permute.xlu0 %977  ;;  %1053 = vst.msk [vmem:[#allocation3 + $0x78] sm:$0xff] %vm1037_vm4, %v972_v0 }
  0xf4   : > { %1056 = vst.msk [vmem:[#allocation3 + $0x90] sm:$0xff] %vm1037_vm4, %v978_v31  ;;  %1341 = vrot.lane.b32.xlu1 %v1848_v40, %s3114_s17  ;;  %v1856_v40 = vld [vmem:[#allocation2 + $0xc9] sm:$0xff] }
  0xf5   : > { %1534 = vrot.lane.b32.xlu0 %v3579_v38, %s3115_s22 }
  0xf6   : > { %v976_v23 = vpop.permute.xlu1 %975 }
  0xf7   : > { %v982_v52 = vpop.permute.xlu0 %981  ;;  %1055 = vst.msk [vmem:[#allocation3 + $0x88] sm:$0xff] %vm1037_vm4, %v976_v23 }
  0xf8   : > { %1058 = vst.msk [vmem:[#allocation3 + $0xa0] sm:$0xff] %vm1037_vm4, %v982_v52  ;;  %2110 = vrot.lane.b32.xlu1 %v3579_v38, %s3118_s20 }
  0xf9   : > { %1728 = vrot.lane.b32.xlu0 %v3416_v54, %s3116_s30  ;;  %v1850_v54 = vld [vmem:[#allocation2 + $0x81] sm:$0xff] }
  0xfa   : > { %v980_v57 = vpop.permute.xlu1 %979 }
  0xfb   : > { %v986_v25 = vpop.permute.xlu0 %985  ;;  %1057 = vst.msk [vmem:[#allocation3 + $0x98] sm:$0xff] %vm1037_vm4, %v980_v57 }
  0xfc   : > { %1060 = vst.msk [vmem:[#allocation3 + $0xb0] sm:$0xff] %vm1037_vm4, %v986_v25  ;;  %1726 = vrot.lane.b32.xlu1 %v3377_v20, %s3116_s30 }
  0xfd   : > { %1343 = vrot.lane.b32.xlu0 %v1271_v34, %s3114_s17 }
  0xfe   : > { %v984_v60 = vpop.permute.xlu1 %983 }
  0xff   : > { %v990_v61 = vpop.permute.xlu0 %989  ;;  %1059 = vst.msk [vmem:[#allocation3 + $0xa8] sm:$0xff] %vm1037_vm4, %v984_v60 }
 0x100   : > { %1062 = vst.msk [vmem:[#allocation3 + $0xc0] sm:$0xff] %vm1037_vm4, %v990_v61  ;;  %1919 = vrot.lane.b32.xlu1 %v1271_v34, %s3117_s19  ;;  %v1857_v61 = vld [vmem:[#allocation2 + $0xd9] sm:$0xff] }
 0x101   : > { %2112 = vrot.lane.b32.xlu0 %v3573_v2, %s3118_s20 }
 0x102   : > { %v988_v38 = vpop.permute.xlu1 %987 }
 0x103   : > { %v994_v62 = vpop.permute.xlu0 %993  ;;  %1061 = vst.msk [vmem:[#allocation3 + $0xb8] sm:$0xff] %vm1037_vm4, %v988_v38 }
 0x104   : > { %1064 = vst.msk [vmem:[#allocation3 + $0xd0] sm:$0xff] %vm1037_vm4, %v994_v62  ;;  %1921 = vrot.lane.b32.xlu1 %v1850_v54, %s3117_s19 }
 0x105   : > { %1536 = vrot.lane.b32.xlu0 %v3573_v2, %s3115_s22 }
 0x106   : > { %v992_v20 = vpop.permute.xlu1 %991 }
 0x107   : > { %v998_v35 = vpop.permute.xlu0 %997  ;;  %1063 = vst.msk [vmem:[#allocation3 + $0xc8] sm:$0xff] %vm1037_vm4, %v992_v20 }
 0x108   : > { %1066 = vst.msk [vmem:[#allocation3 + $0xe0] sm:$0xff] %vm1037_vm4, %v998_v35  ;;  %1345 = vrot.lane.b32.xlu1 %v1850_v54, %s3114_s17  ;;  %v1858_v54 = vld [vmem:[#allocation2 + $0xe1] sm:$0xff] }
 0x109   : > { %1538 = vrot.lane.b32.xlu0 %v3587_v44, %s3115_s22 }
 0x10a   : > { %v996_v53 = vpop.permute.xlu1 %995 }
 0x10b   : > { %v1002_v63 = vpop.permute.xlu0 %1001  ;;  %1065 = vst.msk [vmem:[#allocation3 + $0xd8] sm:$0xff] %vm1037_vm4, %v996_v53 }
 0x10c   : > { %1068 = vst.msk [vmem:[#allocation3 + $0xf0] sm:$0xff] %vm1037_vm4, %v1002_v63  ;;  %2114 = vrot.lane.b32.xlu1 %v3587_v44, %s3118_s20 }
 0x10d   : > { %1732 = vrot.lane.b32.xlu0 %v3429_v9, %s3116_s30 }
 0x10e   : > { %v1000_v2 = vpop.permute.xlu1 %999 }
 0x10f   : > { %v1135_v4 = vpop.permute.xlu0 %1134  ;;  %1067 = vst.msk [vmem:[#allocation3 + $0xe8] sm:$0xff] %vm1037_vm4, %v1000_v2 }
 0x110   : > { %1231 = vst.msk [vmem:[#allocation3] sm:$0xff] %vm1230_vm5, %v1135_v4  ;;  %1730 = vrot.lane.b32.xlu1 %v3397_v41, %s3116_s30 }
 0x111   : > { %1156 = vrot.lane.b32.xlu0 %v3429_v9, %s3113_s16 }
 0x112   : > { %v1004_v58 = vpop.permute.xlu1 %1003 }
 0x113   : > { %v1139_v44 = vpop.permute.xlu0 %1138  ;;  %1069 = vst.msk [vmem:[#allocation3 + $0xf8] sm:$0xff] %vm1037_vm4, %v1004_v58  ;;  %v3099_v58 = vld [vmem:[%s4377_s2] ss:$0 sm:$0xff] }
 0x114   : > { %1233 = vst.msk [vmem:[#allocation3 + $0x10] sm:$0xff] %vm1230_vm5, %v1139_v44  ;;  %1923 = vrot.lane.b32.xlu1 %v1851_v30, %s3117_s19 }
 0x115   : > { %1925 = vrot.lane.b32.xlu0 %v1852_v5, %s3117_s19 }
 0x116   : > { %v1137_v28 = vpop.permute.xlu1 %1136 }
 0x117   : > { %v1143_v10 = vpop.permute.xlu0 %1142  ;;  %1232 = vst.msk [vmem:[#allocation3 + $0x8] sm:$0xff] %vm1230_vm5, %v1137_v28  ;;  %v3100_v28 = vld [vmem:[%s4378_s3] ss:$0 sm:$0xff] }
 0x118   : > { %1235 = vst.msk [vmem:[#allocation3 + $0x20] sm:$0xff] %vm1230_vm5, %v1143_v10  ;;  %1347 = vrot.lane.b32.xlu1 %v1851_v30, %s3114_s17  ;;  %v372_v30 = vld [vmem:[%s3232_s9 + $0xf0] sm:$0xff] }
 0x119   : > { %1349 = vrot.lane.b32.xlu0 %v1852_v5, %s3114_s17  ;;  %v411_v44 = vmul.f32 %v3099_v58, %v372_v30  ;;  %v1864_v30 = vld [vmem:[#allocation2 + $0x129] sm:$0xff] }
 0x11a   : > { %v1141_v41 = vpop.permute.xlu1 %1140 }
 0x11b   : > { %v1147_v9 = vpop.permute.xlu0 %1146  ;;  %1234 = vst.msk [vmem:[#allocation3 + $0x18] sm:$0xff] %vm1230_vm5, %v1141_v41  ;;  %v450_v10 = vadd.f32 %v3100_v28, %v411_v44 }
 0x11c   : > { %1237 = vst.msk [vmem:[#allocation3 + $0x30] sm:$0xff] %vm1230_vm5, %v1147_v9  ;;  %2116 = vrot.lane.b32.xlu1 %v3581_v43, %s3118_s20 }
 0x11d   : > { %2118 = vrot.lane.b32.xlu0 %v3595_v46, %s3118_s20 }
 0x11e   : > { %v1145_v11 = vpop.permute.xlu1 %1144 }
 0x11f   : > { %v1151_v12 = vpop.permute.xlu0 %1150  ;;  %1236 = vst.msk [vmem:[#allocation3 + $0x28] sm:$0xff] %vm1230_vm5, %v1145_v11  ;;  %v373_v11 = vld [vmem:[%s3232_s9 + $0xf8] sm:$0xff] }
 0x120   : > { %1239 = vst.msk [vmem:[#allocation3 + $0x40] sm:$0xff] %vm1230_vm5, %v1151_v12  ;;  %1540 = vrot.lane.b32.xlu1 %v3581_v43, %s3115_s22  ;;  %v1853_v43 = vld [vmem:[#allocation2 + $0xa9] sm:$0xff]  ;;  %v515_v12 = vmin.f32 %v450_v10, 0.0 }
 0x121   : > { %1734 = vrot.lane.b32.xlu0 %v3418_v55, %s3116_s30 }
 0x122   : > { %v1149_v13 = vpop.permute.xlu1 %1148 }
 0x123   : > { %v1155_v3 = vpop.permute.xlu0 %1154  ;;  %1238 = vst.msk [vmem:[#allocation3 + $0x38] sm:$0xff] %vm1230_vm5, %v1149_v13  ;;  %v412_v13 = vmul.f32 %v3099_v58, %v373_v11 }
 0x124   : > { %1241 = vst.msk [vmem:[#allocation3 + $0x50] sm:$0xff] %vm1230_vm5, %v1155_v3  ;;  %1542 = vrot.lane.b32.xlu1 %v3595_v46, %s3115_s22  ;;  %v482_v3 = vmax.f32 %v450_v10, 0.0  ;;  %v2057_v10 = vld [vmem:[#allocation2 + $0x12a] sm:$0xff] }
 0x125   : > { %1736 = vrot.lane.b32.xlu0 %v3467_v6, %s3116_s30 }
 0x126   : > { %v1153_v1 = vpop.permute.xlu1 %1152 }
 0x127   : > { %v1330_v15 = vpop.permute.xlu0 %1329  ;;  %1240 = vst.msk [vmem:[#allocation3 + $0x48] sm:$0xff] %vm1230_vm5, %v1153_v1  ;;  %v3101_v1 = vld [vmem:[%s4379_s4] ss:$0 sm:$0xff] }
 0x128   : > { %1425 = vst.msk [vmem:[#allocation3 + $0x8] sm:$0xff] %vm1423_vm6, %v1330_v15  ;;  %1158 = vrot.lane.b32.xlu1 %v3418_v55, %s3113_s16  ;;  %v553_v15 = vmul.f32 %v3101_v1, %v515_v12 }
 0x129   : > { %1160 = vrot.lane.b32.xlu0 %v3467_v6, %s3113_s16 }
 0x12a   : > { %v1328_v59 = vpop.permute.xlu1 %1327 }
 0x12b   : > { %v1523_v46 = vpop.permute.xlu0 %1522  ;;  %1424 = vst.msk [vmem:[#allocation3] sm:$0xff] %vm1423_vm6, %v1328_v59 }
 0x12c   : > { %1618 = vst.msk [vmem:[#allocation3 + $0x8] sm:$0xff] %vm1616_vm7, %v1523_v46  ;;  %1927 = vrot.lane.b32.xlu1 %v1853_v43, %s3117_s19  ;;  %v585_v46 = vadd.f32 %v553_v15, %v482_v3  ;;  %v1673_v15 = vld [vmem:[#allocation2 + $0x140] sm:$0xff] }
 0x12d   : > { %1929 = vrot.lane.b32.xlu0 %v1854_v33, %s3117_s19 }
 0x12e   : > { %v1521_v14 = vpop.permute.xlu1 %1520  ;;  %618 = vst.msk [vmem:[#allocation2 + $0x181] sm:$0xff] %vm296_vm0, %v585_v46 }
 0x12f   : > { %v1717_v17 = vpop.permute.xlu0 %1716  ;;  %1617 = vst.msk [vmem:[#allocation3] sm:$0xff] %vm1616_vm7, %v1521_v14 }
 0x130   : > { %1812 = vst.msk [vmem:[#allocation3 + $0x8] sm:$0xff] %vm1810_vm8, %v1717_v17  ;;  %1351 = vrot.lane.b32.xlu1 %v1853_v43, %s3114_s17  ;;  %v451_v43 = vadd.f32 %v3100_v28, %v412_v13  ;;  %v1859_v17 = vld [vmem:[#allocation2 + $0xf1] sm:$0xff] }
 0x131   : > { %1353 = vrot.lane.b32.xlu0 %v1854_v33, %s3114_s17  ;;  %v1672_v13 = vld [vmem:[#allocation2 + $0x138] sm:$0xff] }
 0x132   : > { %v1715_v55 = vpop.permute.xlu1 %1714  ;;  %v516_v14 = vmin.f32 %v451_v43, 0.0 }
 0x133   : > { %v1332_v6 = vpop.permute.xlu0 %1331  ;;  %1811 = vst.msk [vmem:[#allocation3] sm:$0xff] %vm1810_vm8, %v1715_v55  ;;  %v1860_v55 = vld [vmem:[#allocation2 + $0xf9] sm:$0xff] }
 0x134   : > { %1426 = vst.msk [vmem:[#allocation3 + $0x10] sm:$0xff] %vm1423_vm6, %v1332_v6  ;;  %2120 = vrot.lane.b32.xlu1 %v3589_v45, %s3118_s20  ;;  %v483_v6 = vmax.f32 %v451_v43, 0.0 }
 0x135   : > { %2122 = vrot.lane.b32.xlu0 %v3603_v50, %s3118_s20 }
 0x136   : > { %v1908_v21 = vpop.permute.xlu1 %1907 }
 0x137   : > { %v2101_v42 = vpop.permute.xlu0 %2100  ;;  %2004 = vst.msk [vmem:[#allocation3] sm:$0xff] %vm2003_vm9, %v1908_v21  ;;  %v554_v21 = vmul.f32 %v3101_v1, %v516_v14 }
 0x138   : > { %2197 = vst.msk [vmem:[#allocation3] sm:$0xff] %vm2196_vm10, %v2101_v42  ;;  %1544 = vrot.lane.b32.xlu1 %v3589_v45, %s3115_s22 }
 0x139   : > { %1738 = vrot.lane.b32.xlu0 %v3438_v16, %s3116_s30 }
 0x13a   : > { %v1910_v26 = vpop.permute.xlu1 %1909 }
 0x13b   : > { %v1525_v32 = vpop.permute.xlu0 %1524  ;;  %2005 = vst.msk [vmem:[#allocation3 + $0x8] sm:$0xff] %vm2003_vm9, %v1910_v26 }
 0x13c   : > { %1619 = vst.msk [vmem:[#allocation3 + $0x10] sm:$0xff] %vm1616_vm7, %v1525_v32  ;;  %1546 = vrot.lane.b32.xlu1 %v3603_v50, %s3115_s22 }
 0x13d   : > { %1740 = vrot.lane.b32.xlu0 %v3471_v8, %s3116_s30 }
 0x13e   : > { %v1334_v22 = vpop.permute.xlu1 %1333 }
 0x13f   : > { %v1527_v24 = vpop.permute.xlu0 %1526  ;;  %1427 = vst.msk [vmem:[#allocation3 + $0x18] sm:$0xff] %vm1423_vm6, %v1334_v22  ;;  %v2229_v45 = vld [vmem:[#allocation3] sm:$0xff]  ;;  %v586_v22 = vadd.f32 %v554_v21, %v483_v6  ;;  %v2058_v21 = vld [vmem:[#allocation2 + $0x13a] sm:$0xff] }
 0x140   : > { %1620 = vst.msk [vmem:[#allocation3 + $0x18] sm:$0xff] %vm1616_vm7, %v1527_v24  ;;  %1162 = vrot.lane.b32.xlu1 %v3438_v16, %s3113_s16  ;;  %3008 = vmatprep.mubr.msk.f32.mxu0 %vm2270_vm11, %v2229_v45  ;;  %v2052_v24 = vld [vmem:[#allocation2 + $0xf2] sm:$0xff]  ;;  %v2053_v45 = vld [vmem:[#allocation2 + $0xfa] sm:$0xff] }
 0x141   : > { %1164 = vrot.lane.b32.xlu0 %v3471_v8, %s3113_s16  ;;  %619 = vst.msk [vmem:[#allocation2 + $0x189] sm:$0xff] %vm296_vm0, %v586_v22 }
 0x142   : > { %v2103_v50 = vpop.permute.xlu1 %2102 }
 0x143   : > { %v1721_v36 = vpop.permute.xlu0 %1720  ;;  %2198 = vst.msk [vmem:[#allocation3 + $0x8] sm:$0xff] %vm2196_vm10, %v2103_v50 }
 0x144   : > { %1814 = vst.msk [vmem:[#allocation3 + $0x18] sm:$0xff] %vm1810_vm8, %v1721_v36  ;;  %1931 = vrot.lane.b32.xlu1 %v1855_v27, %s3117_s19 }
 0x145   : > { %1933 = vrot.lane.b32.xlu0 %v1856_v40, %s3117_s19 }
 0x146   : > { %v1719_v29 = vpop.permute.xlu1 %1718 }
 0x147   : > { %v1336_v0 = vpop.permute.xlu0 %1335  ;;  %1813 = vst.msk [vmem:[#allocation3 + $0x10] sm:$0xff] %vm1810_vm8, %v1719_v29 }
 0x148   : > { %1428 = vst.msk [vmem:[#allocation3 + $0x20] sm:$0xff] %vm1423_vm6, %v1336_v0  ;;  %1355 = vrot.lane.b32.xlu1 %v1855_v27, %s3114_s17 }
 0x149   : > { %1357 = vrot.lane.b32.xlu0 %v1856_v40, %s3114_s17 }
 0x14a   : > { %v1912_v16 = vpop.permute.xlu1 %1911  ;;  %v2230_v31 = vld [vmem:[#allocation3 + $0x8] sm:$0xff] }
 0x14b   : > { %v2105_v8 = vpop.permute.xlu0 %2104  ;;  %2006 = vst.msk [vmem:[#allocation3 + $0x10] sm:$0xff] %vm2003_vm9, %v1912_v16  ;;  %3009 = vmatmul.mubr.msk.f32.vlgmr.msra.gmra.mrb[0].mxu0 %vm2270_vm11, %v2230_v31 }
 0x14c   : > { %2199 = vst.msk [vmem:[#allocation3 + $0x10] sm:$0xff] %vm2196_vm10, %v2105_v8  ;;  %2124 = vrot.lane.b32.xlu1 %v3597_v47, %s3118_s20 }
 0x14d   : > { %2126 = vrot.lane.b32.xlu0 %v3608_v51, %s3118_s20 }
 0x14e   : > { %v1914_v23 = vpop.permute.xlu1 %1913 }
 0x14f   : > { %v1529_v52 = vpop.permute.xlu0 %1528  ;;  %2007 = vst.msk [vmem:[#allocation3 + $0x18] sm:$0xff] %vm2003_vm9, %v1914_v23 }
 0x150   : > { %1621 = vst.msk [vmem:[#allocation3 + $0x20] sm:$0xff] %vm1616_vm7, %v1529_v52  ;;  %1548 = vrot.lane.b32.xlu1 %v3597_v47, %s3115_s22  ;;  %v1861_v52 = vld [vmem:[#allocation2 + $0x109] sm:$0xff] }
 0x151   : > { %1742 = vrot.lane.b32.xlu0 %v3469_v7, %s3116_s30 }
 0x152   : > { %v1338_v34 = vpop.permute.xlu1 %1337 }
 0x153   : > { %v1531_v57 = vpop.permute.xlu0 %1530  ;;  %1429 = vst.msk [vmem:[#allocation3 + $0x28] sm:$0xff] %vm1423_vm6, %v1338_v34  ;;  %v2231_v25 = vld [vmem:[#allocation3 + $0x10] sm:$0xff]  ;;  %v1862_v34 = vld [vmem:[#allocation2 + $0x111] sm:$0xff] }
 0x154   : > { %1622 = vst.msk [vmem:[#allocation3 + $0x28] sm:$0xff] %vm1616_vm7, %v1531_v57  ;;  %1550 = vrot.lane.b32.xlu1 %v3608_v51, %s3115_s22  ;;  %3011 = vmatprep.mubr.msk.f32.mxu0 %vm2270_vm11, %v2231_v25 }
 0x155   : > { %1744 = vrot.lane.b32.xlu0 %v3485_v19, %s3116_s30 }
 0x156   : > { %v2107_v60 = vpop.permute.xlu1 %2106 }
 0x157   : > { %v1725_v47 = vpop.permute.xlu0 %1724  ;;  %2200 = vst.msk [vmem:[#allocation3 + $0x18] sm:$0xff] %vm2196_vm10, %v2107_v60 }
 0x158   : > { %1816 = vst.msk [vmem:[#allocation3 + $0x28] sm:$0xff] %vm1810_vm8, %v1725_v47  ;;  %1166 = vrot.lane.b32.xlu1 %v3469_v7, %s3113_s16  ;;  %v2050_v7 = vld [vmem:[#allocation2 + $0xda] sm:$0xff] }
 0x159   : > { %1168 = vrot.lane.b32.xlu0 %v3485_v19, %s3113_s16  ;;  %v2051_v19 = vld [vmem:[#allocation2 + $0xe2] sm:$0xff] }
 0x15a   : > { %v1723_v51 = vpop.permute.xlu1 %1722 }
 0x15b   : > { %v1340_v38 = vpop.permute.xlu0 %1339  ;;  %1815 = vst.msk [vmem:[#allocation3 + $0x20] sm:$0xff] %vm1810_vm8, %v1723_v51 }
 0x15c   : > { %1430 = vst.msk [vmem:[#allocation3 + $0x30] sm:$0xff] %vm1423_vm6, %v1340_v38  ;;  %1935 = vrot.lane.b32.xlu1 %v1857_v61, %s3117_s19 }
 0x15d   : > { %1937 = vrot.lane.b32.xlu0 %v1858_v54, %s3117_s19 }
 0x15e   : > { %v1916_v62 = vpop.permute.xlu1 %1915  ;;  %v2232_v35 = vld [vmem:[#allocation3 + $0x18] sm:$0xff] }
 0x15f   : > { %v2109_v20 = vpop.permute.xlu0 %2108  ;;  %2008 = vst.msk [vmem:[#allocation3 + $0x20] sm:$0xff] %vm2003_vm9, %v1916_v62  ;;  %3012 = vmatmul.mubr.msk.f32.gmra.mrb[2].mxu0 %vm2270_vm11, %v2232_v35 }
 0x160   : > { %2201 = vst.msk [vmem:[#allocation3 + $0x20] sm:$0xff] %vm2196_vm10, %v2109_v20  ;;  %1359 = vrot.lane.b32.xlu1 %v1857_v61, %s3114_s17 }
 0x161   : > { %1361 = vrot.lane.b32.xlu0 %v1858_v54, %s3114_s17 }
 0x162   : > { %v1918_v53 = vpop.permute.xlu1 %1917 }
 0x163   : > { %v1533_v63 = vpop.permute.xlu0 %1532  ;;  %2009 = vst.msk [vmem:[#allocation3 + $0x28] sm:$0xff] %vm2003_vm9, %v1918_v53 }
 0x164   : > { %1623 = vst.msk [vmem:[#allocation3 + $0x30] sm:$0xff] %vm1616_vm7, %v1533_v63  ;;  %2128 = vrot.lane.b32.xlu1 %v2050_v7, %s3118_s20 }
 0x165   : > { %2130 = vrot.lane.b32.xlu0 %v2051_v19, %s3118_s20 }
 0x166   : > { %v1342_v2 = vpop.permute.xlu1 %1341 }
 0x167   : > { %v1535_v4 = vpop.permute.xlu0 %1534  ;;  %1431 = vst.msk [vmem:[#allocation3 + $0x38] sm:$0xff] %vm1423_vm6, %v1342_v2  ;;  %v2233_v5 = vld [vmem:[#allocation3 + $0x20] sm:$0xff] }
 0x168   : > { %1624 = vst.msk [vmem:[#allocation3 + $0x38] sm:$0xff] %vm1616_vm7, %v1535_v4  ;;  %1552 = vrot.lane.b32.xlu1 %v2050_v7, %s3115_s22  ;;  %3014 = vmatprep.mubr.msk.f32.mxu0 %vm2270_vm11, %v2233_v5 }
 0x169   : > { %1746 = vrot.lane.b32.xlu0 %v3483_v18, %s3116_s30 }
 0x16a   : > { %v2111_v41 = vpop.permute.xlu1 %2110 }
 0x16b   : > { %v1729_v9 = vpop.permute.xlu0 %1728  ;;  %2202 = vst.msk [vmem:[#allocation3 + $0x28] sm:$0xff] %vm2196_vm10, %v2111_v41 }
 0x16c   : > { %1818 = vst.msk [vmem:[#allocation3 + $0x38] sm:$0xff] %vm1810_vm8, %v1729_v9  ;;  %1554 = vrot.lane.b32.xlu1 %v2051_v19, %s3115_s22  ;;  %v1092_v19 = vld [vmem:[#allocation2 + $0x120] sm:$0xff] }
 0x16d   : > { %1748 = vrot.lane.b32.xlu0 %v3504_v39, %s3116_s30 }
 0x16e   : > { %v1727_v33 = vpop.permute.xlu1 %1726 }
 0x16f   : > { %v1344_v59 = vpop.permute.xlu0 %1343  ;;  %1817 = vst.msk [vmem:[#allocation3 + $0x30] sm:$0xff] %vm1810_vm8, %v1727_v33 }
 0x170   : > { %1432 = vst.msk [vmem:[#allocation3 + $0x40] sm:$0xff] %vm1423_vm6, %v1344_v59  ;;  %1170 = vrot.lane.b32.xlu1 %v3483_v18, %s3113_s16  ;;  %v1865_v59 = vld [vmem:[#allocation2 + $0x139] sm:$0xff] }
 0x171   : > { %1172 = vrot.lane.b32.xlu0 %v3504_v39, %s3113_s16 }
 0x172   : > { %v1920_v42 = vpop.permute.xlu1 %1919  ;;  %v2234_v32 = vld [vmem:[#allocation3 + $0x28] sm:$0xff] }
 0x173   : > { %v2113_v26 = vpop.permute.xlu0 %2112  ;;  %2010 = vst.msk [vmem:[#allocation3 + $0x30] sm:$0xff] %vm2003_vm9, %v1920_v42  ;;  %3015 = vmatmul.mubr.msk.f32.gmra.mrb[4].mxu0 %vm2270_vm11, %v2234_v32  ;;  %v2059_v32 = vld [vmem:[#allocation2 + $0x142] sm:$0xff] }
 0x174   : > { %2203 = vst.msk [vmem:[#allocation3 + $0x30] sm:$0xff] %vm2196_vm10, %v2113_v26  ;;  %1939 = vrot.lane.b32.xlu1 %v1859_v17, %s3117_s19 }
 0x175   : > { %1941 = vrot.lane.b32.xlu0 %v1860_v55, %s3117_s19 }
 0x176   : > { %v1922_v18 = vpop.permute.xlu1 %1921 }
 0x177   : > { %v1537_v39 = vpop.permute.xlu0 %1536  ;;  %2011 = vst.msk [vmem:[#allocation3 + $0x38] sm:$0xff] %vm2003_vm9, %v1922_v18 }
 0x178   : > { %1625 = vst.msk [vmem:[#allocation3 + $0x40] sm:$0xff] %vm1616_vm7, %v1537_v39  ;;  %1363 = vrot.lane.b32.xlu1 %v1859_v17, %s3114_s17  ;;  %v1866_v17 = vld [vmem:[#allocation2 + $0x141] sm:$0xff] }
 0x179   : > { %1365 = vrot.lane.b32.xlu0 %v1860_v55, %s3114_s17 }
 0x17a   : > { %v1346_v27 = vpop.permute.xlu1 %1345 }
 0x17b   : > { %v1539_v40 = vpop.permute.xlu0 %1538  ;;  %1433 = vst.msk [vmem:[#allocation3 + $0x48] sm:$0xff] %vm1423_vm6, %v1346_v27  ;;  %v2235_v50 = vld [vmem:[#allocation3 + $0x30] sm:$0xff] }
 0x17c   : > { %1626 = vst.msk [vmem:[#allocation3 + $0x48] sm:$0xff] %vm1616_vm7, %v1539_v40  ;;  %2132 = vrot.lane.b32.xlu1 %v2052_v24, %s3118_s20  ;;  %3017 = vmatprep.mubr.msk.f32.mxu0 %vm2270_vm11, %v2235_v50  ;;  %v1675_v50 = vld [vmem:[#allocation2 + $0x158] sm:$0xff] }
 0x17d   : > { %2134 = vrot.lane.b32.xlu0 %v2053_v45, %s3118_s20 }
 0x17e   : > { %v2115_v36 = vpop.permute.xlu1 %2114 }
 0x17f   : > { %v1733_v29 = vpop.permute.xlu0 %1732  ;;  %2204 = vst.msk [vmem:[#allocation3 + $0x38] sm:$0xff] %vm2196_vm10, %v2115_v36 }
 0x180   : > { %1820 = vst.msk [vmem:[#allocation3 + $0x48] sm:$0xff] %vm1810_vm8, %v1733_v29  ;;  %1556 = vrot.lane.b32.xlu1 %v2052_v24, %s3115_s22 }
 0x181   : > { %1750 = vrot.lane.b32.xlu0 %v3496_v37, %s3116_s30 }
 0x182   : > { %v1731_v0 = vpop.permute.xlu1 %1730 }
 0x183   : > { %v1157_v16 = vpop.permute.xlu0 %1156  ;;  %1819 = vst.msk [vmem:[#allocation3 + $0x40] sm:$0xff] %vm1810_vm8, %v1731_v0  ;;  %v1867_v0 = vld [vmem:[#allocation2 + $0x151] sm:$0xff] }
 0x184   : > { %1242 = vst.msk [vmem:[#allocation3 + $0x58] sm:$0xff] %vm1230_vm5, %v1157_v16  ;;  %1558 = vrot.lane.b32.xlu1 %v2053_v45, %s3115_s22  ;;  %v1674_v45 = vld [vmem:[#allocation2 + $0x150] sm:$0xff] }
 0x185   : > { %1752 = vrot.lane.b32.xlu0 %v3512_v49, %s3116_s30 }
 0x186   : > { %v1924_v8 = vpop.permute.xlu1 %1923  ;;  %v2236_v23 = vld [vmem:[#allocation3 + $0x38] sm:$0xff] }
 0x187   : > { %v1926_v31 = vpop.permute.xlu0 %1925  ;;  %2012 = vst.msk [vmem:[#allocation3 + $0x40] sm:$0xff] %vm2003_vm9, %v1924_v8  ;;  %3018 = vmatmul.mubr.msk.f32.gmra.mrb[6].mxu0 %vm2270_vm11, %v2236_v23 }
 0x188   : > { %2013 = vst.msk [vmem:[#allocation3 + $0x48] sm:$0xff] %vm2003_vm9, %v1926_v31  ;;  %1174 = vrot.lane.b32.xlu1 %v3496_v37, %s3113_s16  ;;  %v2054_v37 = vld [vmem:[#allocation2 + $0x10a] sm:$0xff]  ;;  %v1868_v31 = vld [vmem:[#allocation2 + $0x159] sm:$0xff] }
 0x189   : > { %1176 = vrot.lane.b32.xlu0 %v3512_v49, %s3113_s16  ;;  %v2055_v49 = vld [vmem:[#allocation2 + $0x112] sm:$0xff] }
 0x18a   : > { %v1348_v57 = vpop.permute.xlu1 %1347 }
 0x18b   : > { %v1350_v25 = vpop.permute.xlu0 %1349  ;;  %1434 = vst.msk [vmem:[#allocation3 + $0x50] sm:$0xff] %vm1423_vm6, %v1348_v57 }
 0x18c   : > { %1435 = vst.msk [vmem:[#allocation3 + $0x58] sm:$0xff] %vm1423_vm6, %v1350_v25  ;;  %1943 = vrot.lane.b32.xlu1 %v1861_v52, %s3117_s19 }
 0x18d   : > { %1945 = vrot.lane.b32.xlu0 %v1862_v34, %s3117_s19 }
 0x18e   : > { %v2117_v60 = vpop.permute.xlu1 %2116 }
 0x18f   : > { %v2119_v47 = vpop.permute.xlu0 %2118  ;;  %2205 = vst.msk [vmem:[#allocation3 + $0x40] sm:$0xff] %vm2196_vm10, %v2117_v60  ;;  %v2061_v60 = vld [vmem:[#allocation2 + $0x15a] sm:$0xff] }
 0x190   : > { %2206 = vst.msk [vmem:[#allocation3 + $0x48] sm:$0xff] %vm2196_vm10, %v2119_v47  ;;  %1367 = vrot.lane.b32.xlu1 %v1861_v52, %s3114_s17 }
 0x191   : > { %1369 = vrot.lane.b32.xlu0 %v1862_v34, %s3114_s17  ;;  %v2060_v34 = vld [vmem:[#allocation2 + $0x152] sm:$0xff] }
 0x192   : > { %v1541_v61 = vpop.permute.xlu1 %1540 }
 0x193   : > { %v1735_v54 = vpop.permute.xlu0 %1734  ;;  %1627 = vst.msk [vmem:[#allocation3 + $0x50] sm:$0xff] %vm1616_vm7, %v1541_v61 }
 0x194   : > { %1821 = vst.msk [vmem:[#allocation3 + $0x50] sm:$0xff] %vm1810_vm8, %v1735_v54  ;;  %2136 = vrot.lane.b32.xlu1 %v2054_v37, %s3118_s20  ;;  %v1676_v54 = vld [vmem:[#allocation2 + $0x168] sm:$0xff] }
 0x195   : > { %2138 = vrot.lane.b32.xlu0 %v2055_v49, %s3118_s20 }
 0x196   : > { %v1543_v51 = vpop.permute.xlu1 %1542  ;;  %v2237_v62 = vld [vmem:[#allocation3 + $0x40] sm:$0xff] }
 0x197   : > { %v1737_v38 = vpop.permute.xlu0 %1736  ;;  %v2238_v20 = vld [vmem:[#allocation3 + $0x48] sm:$0xff]  ;;  %1628 = vst.msk [vmem:[#allocation3 + $0x58] sm:$0xff] %vm1616_vm7, %v1543_v51  ;;  %3020 = vmatprep.mubr.msk.f32.mxu0 %vm2270_vm11, %v2237_v62  ;;  %v1677_v62 = vld [vmem:[#allocation2 + $0x170] sm:$0xff] }
 0x198   : > { %1822 = vst.msk [vmem:[#allocation3 + $0x58] sm:$0xff] %vm1810_vm8, %v1737_v38  ;;  %1560 = vrot.lane.b32.xlu1 %v2054_v37, %s3115_s22  ;;  %3021 = vmatmul.mubr.msk.f32.gmra.mrb[8].mxu0 %vm2270_vm11, %v2238_v20 }
 0x199   : > { %1754 = vrot.lane.b32.xlu0 %v3510_v48, %s3116_s30  ;;  %v1863_v48 = vld [vmem:[#allocation2 + $0x121] sm:$0xff] }
 0x19a   : > { %v1159_v35 = vpop.permute.xlu1 %1158 }
 0x19b   : > { %v1161_v7 = vpop.permute.xlu0 %1160  ;;  %1243 = vst.msk [vmem:[#allocation3 + $0x60] sm:$0xff] %vm1230_vm5, %v1159_v35 }
 0x19c   : > { %1244 = vst.msk [vmem:[#allocation3 + $0x68] sm:$0xff] %vm1230_vm5, %v1161_v7  ;;  %1562 = vrot.lane.b32.xlu1 %v2055_v49, %s3115_s22  ;;  %v1869_v7 = vld [vmem:[#allocation2 + $0x169] sm:$0xff] }
 0x19d   : > { %1756 = vrot.lane.b32.xlu0 %v3524_v56, %s3116_s30 }
 0x19e   : > { %v1928_v53 = vpop.permute.xlu1 %1927 }
 0x19f   : > { %v1930_v63 = vpop.permute.xlu0 %1929  ;;  %2014 = vst.msk [vmem:[#allocation3 + $0x50] sm:$0xff] %vm2003_vm9, %v1928_v53 }
 0x1a0   : > { %2015 = vst.msk [vmem:[#allocation3 + $0x58] sm:$0xff] %vm2003_vm9, %v1930_v63  ;;  %1178 = vrot.lane.b32.xlu1 %v1092_v19, %s3113_s16  ;;  %v1870_v63 = vld [vmem:[#allocation2 + $0x171] sm:$0xff] }
 0x1a1   : > { %1180 = vrot.lane.b32.xlu0 %v3524_v56, %s3113_s16  ;;  %v2056_v56 = vld [vmem:[#allocation2 + $0x122] sm:$0xff] }
 0x1a2   : > { %v1352_v2 = vpop.permute.xlu1 %1351 }
 0x1a3   : > { %v1354_v4 = vpop.permute.xlu0 %1353  ;;  %1436 = vst.msk [vmem:[#allocation3 + $0x60] sm:$0xff] %vm1423_vm6, %v1352_v2 }
 0x1a4   : > { %1437 = vst.msk [vmem:[#allocation3 + $0x68] sm:$0xff] %vm1423_vm6, %v1354_v4  ;;  %1947 = vrot.lane.b32.xlu1 %v1863_v48, %s3117_s19  ;;  %v2062_v4 = vld [vmem:[#allocation2 + $0x16a] sm:$0xff] }
 0x1a5   : > { %1949 = vrot.lane.b32.xlu0 %v1864_v30, %s3117_s19 }
 0x1a6   : > { %v2121_v5 = vpop.permute.xlu1 %2120 }
 0x1a7   : > { %v2123_v58 = vpop.permute.xlu0 %2122  ;;  %2207 = vst.msk [vmem:[#allocation3 + $0x50] sm:$0xff] %vm2196_vm10, %v2121_v5 }
 0x1a8   : > { %2208 = vst.msk [vmem:[#allocation3 + $0x58] sm:$0xff] %vm2196_vm10, %v2123_v58  ;;  %1371 = vrot.lane.b32.xlu1 %v1863_v48, %s3114_s17  ;;  %v2063_v58 = vld [vmem:[#allocation2 + $0x172] sm:$0xff] }
 0x1a9   : > { %1373 = vrot.lane.b32.xlu0 %v1864_v30, %s3114_s17 }
 0x1aa   : > { %v1545_v44 = vpop.permute.xlu1 %1544 }
 0x1ab   : > { %v1739_v28 = vpop.permute.xlu0 %1738  ;;  %1629 = vst.msk [vmem:[#allocation3 + $0x60] sm:$0xff] %vm1616_vm7, %v1545_v44 }
 0x1ac   : > { %1823 = vst.msk [vmem:[#allocation3 + $0x60] sm:$0xff] %vm1810_vm8, %v1739_v28  ;;  %2140 = vrot.lane.b32.xlu1 %v2056_v56, %s3118_s20 }
 0x1ad   : > { %2142 = vrot.lane.b32.xlu0 %v2057_v10, %s3118_s20 }
 0x1ae   : > { %v1547_v41 = vpop.permute.xlu1 %1546  ;;  %v2239_v11 = vld [vmem:[#allocation3 + $0x50] sm:$0xff] }
 0x1af   : > { %v1741_v9 = vpop.permute.xlu0 %1740  ;;  %v2240_v12 = vld [vmem:[#allocation3 + $0x58] sm:$0xff]  ;;  %1630 = vst.msk [vmem:[#allocation3 + $0x68] sm:$0xff] %vm1616_vm7, %v1547_v41  ;;  %3023 = vmatprep.mubr.msk.f32.mxu0 %vm2270_vm11, %v2239_v11  ;;  %v1678_v41 = vld [vmem:[#allocation2 + $0x180] sm:$0xff] }
 0x1b0   : > { %1824 = vst.msk [vmem:[#allocation3 + $0x68] sm:$0xff] %vm1810_vm8, %v1741_v9  ;;  %1564 = vrot.lane.b32.xlu1 %v2056_v56, %s3115_s22  ;;  %3024 = vmatmul.mubr.msk.f32.gmra.mrb[10].mxu0 %vm2270_vm11, %v2240_v12  ;;  %v1679_v12 = vld [vmem:[#allocation2 + $0x188] sm:$0xff] }
 0x1b1   : > { %1758 = vrot.lane.b32.xlu0 %v1672_v13, %s3116_s30 }
 0x1b2   : > { %v1163_v3 = vpop.permute.xlu1 %1162 }
 0x1b3   : > { %v1165_v1 = vpop.permute.xlu0 %1164  ;;  %1245 = vst.msk [vmem:[#allocation3 + $0x70] sm:$0xff] %vm1230_vm5, %v1163_v3 }
 0x1b4   : > { %1246 = vst.msk [vmem:[#allocation3 + $0x78] sm:$0xff] %vm1230_vm5, %v1165_v1  ;;  %1566 = vrot.lane.b32.xlu1 %v2057_v10, %s3115_s22  ;;  %v1871_v1 = vld [vmem:[#allocation2 + $0x181] sm:$0xff] }
 0x1b5   : > { %1760 = vrot.lane.b32.xlu0 %v1673_v15, %s3116_s30 }
 0x1b6   : > { %v1932_v43 = vpop.permute.xlu1 %1931 }
 0x1b7   : > { %v1934_v33 = vpop.permute.xlu0 %1933  ;;  %2016 = vst.msk [vmem:[#allocation3 + $0x60] sm:$0xff] %vm2003_vm9, %v1932_v43 }
 0x1b8   : > { %2017 = vst.msk [vmem:[#allocation3 + $0x68] sm:$0xff] %vm2003_vm9, %v1934_v33  ;;  %1182 = vrot.lane.b32.xlu1 %v1672_v13, %s3113_s16  ;;  %v1872_v33 = vld [vmem:[#allocation2 + $0x189] sm:$0xff] }
 0x1b9   : > { %1184 = vrot.lane.b32.xlu0 %v1673_v15, %s3113_s16 }
 0x1ba   : > { %v1356_v46 = vpop.permute.xlu1 %1355 }
 0x1bb   : > { %v1358_v14 = vpop.permute.xlu0 %1357  ;;  %1438 = vst.msk [vmem:[#allocation3 + $0x70] sm:$0xff] %vm1423_vm6, %v1356_v46 }
 0x1bc   : > { %1439 = vst.msk [vmem:[#allocation3 + $0x78] sm:$0xff] %vm1423_vm6, %v1358_v14  ;;  %1951 = vrot.lane.b32.xlu1 %v1865_v59, %s3117_s19  ;;  %v2064_v14 = vld [vmem:[#allocation2 + $0x182] sm:$0xff] }
 0x1bd   : > { %1953 = vrot.lane.b32.xlu0 %v1866_v17, %s3117_s19 }
 0x1be   : > { %v2125_v55 = vpop.permute.xlu1 %2124 }
 0x1bf   : > { %v2127_v6 = vpop.permute.xlu0 %2126  ;;  %2209 = vst.msk [vmem:[#allocation3 + $0x60] sm:$0xff] %vm2196_vm10, %v2125_v55  ;;  %v2065_v55 = vld [vmem:[#allocation2 + $0x18a] sm:$0xff] }
 0x1c0   : > { %2210 = vst.msk [vmem:[#allocation3 + $0x68] sm:$0xff] %vm2196_vm10, %v2127_v6  ;;  %1375 = vrot.lane.b32.xlu1 %v1865_v59, %s3114_s17 }
 0x1c1   : > { %1377 = vrot.lane.b32.xlu0 %v1866_v17, %s3114_s17 }
 0x1c2   : > { %v1549_v42 = vpop.permute.xlu1 %1548 }
 0x1c3   : > { %v1743_v26 = vpop.permute.xlu0 %1742  ;;  %1631 = vst.msk [vmem:[#allocation3 + $0x70] sm:$0xff] %vm1616_vm7, %v1549_v42 }
 0x1c4   : > { %1825 = vst.msk [vmem:[#allocation3 + $0x70] sm:$0xff] %vm1810_vm8, %v1743_v26  ;;  %2144 = vrot.lane.b32.xlu1 %v2058_v21, %s3118_s20 }
 0x1c5   : > { %2146 = vrot.lane.b32.xlu0 %v2059_v32, %s3118_s20 }
 0x1c6   : > { %v1551_v22 = vpop.permute.xlu1 %1550  ;;  %v2241_v39 = vld [vmem:[#allocation3 + $0x60] sm:$0xff] }
 0x1c7   : > { %v1745_v18 = vpop.permute.xlu0 %1744  ;;  %v2242_v24 = vld [vmem:[#allocation3 + $0x68] sm:$0xff]  ;;  %1632 = vst.msk [vmem:[#allocation3 + $0x78] sm:$0xff] %vm1616_vm7, %v1551_v22  ;;  %3026 = vmatprep.mubr.msk.f32.mxu0 %vm2270_vm11, %v2241_v39 }
 0x1c8   : > { %1826 = vst.msk [vmem:[#allocation3 + $0x78] sm:$0xff] %vm1810_vm8, %v1745_v18  ;;  %1568 = vrot.lane.b32.xlu1 %v2058_v21, %s3115_s22  ;;  %3027 = vmatmul.mubr.msk.f32.gmra.mrb[12].mxu0 %vm2270_vm11, %v2242_v24  ;;  %v1873_v39 = vld [vmem:[#allocation2 + $0x199] sm:$0xff] }
 0x1c9   : > { %1762 = vrot.lane.b32.xlu0 %v1674_v45, %s3116_s30 }
 0x1ca   : > { %v1167_v27 = vpop.permute.xlu1 %1166 }
 0x1cb   : > { %v1169_v40 = vpop.permute.xlu0 %1168  ;;  %1247 = vst.msk [vmem:[#allocation3 + $0x80] sm:$0xff] %vm1230_vm5, %v1167_v27 }
 0x1cc   : > { %1248 = vst.msk [vmem:[#allocation3 + $0x88] sm:$0xff] %vm1230_vm5, %v1169_v40  ;;  %1570 = vrot.lane.b32.xlu1 %v2059_v32, %s3115_s22  ;;  %v1680_v32 = vld [vmem:[#allocation2 + $0x198] sm:$0xff] }
 0x1cd   : > { %1764 = vrot.lane.b32.xlu0 %v1675_v50, %s3116_s30  ;;  %v2066_v40 = vld [vmem:[#allocation2 + $0x19a] sm:$0xff] }
 0x1ce   : > { %v1936_v36 = vpop.permute.xlu1 %1935 }
 0x1cf   : > { %v1938_v29 = vpop.permute.xlu0 %1937  ;;  %2018 = vst.msk [vmem:[#allocation3 + $0x70] sm:$0xff] %vm2003_vm9, %v1936_v36  ;;  %v1874_v36 = vld [vmem:[#allocation2 + $0x1a1] sm:$0xff] }
 0x1d0   : > { %2019 = vst.msk [vmem:[#allocation3 + $0x78] sm:$0xff] %vm2003_vm9, %v1938_v29  ;;  %1186 = vrot.lane.b32.xlu1 %v1674_v45, %s3113_s16  ;;  %v1681_v45 = vld [vmem:[#allocation2 + $0x1a0] sm:$0xff] }
 0x1d1   : > { %1188 = vrot.lane.b32.xlu0 %v1675_v50, %s3113_s16 }
 0x1d2   : > { %v1360_v16 = vpop.permute.xlu1 %1359 }
 0x1d3   : > { %v1362_v8 = vpop.permute.xlu0 %1361  ;;  %1440 = vst.msk [vmem:[#allocation3 + $0x80] sm:$0xff] %vm1423_vm6, %v1360_v16  ;;  %v2067_v16 = vld [vmem:[#allocation2 + $0x1a2] sm:$0xff] }
 0x1d4   : > { %1441 = vst.msk [vmem:[#allocation3 + $0x88] sm:$0xff] %vm1423_vm6, %v1362_v8  ;;  %1955 = vrot.lane.b32.xlu1 %v1867_v0, %s3117_s19 }
 0x1d5   : > { %1957 = vrot.lane.b32.xlu0 %v1868_v31, %s3117_s19 }
 0x1d6   : > { %v2129_v23 = vpop.permute.xlu1 %2128 }
 0x1d7   : > { %v2131_v52 = vpop.permute.xlu0 %2130  ;;  %2211 = vst.msk [vmem:[#allocation3 + $0x70] sm:$0xff] %vm2196_vm10, %v2129_v23 }
 0x1d8   : > { %2212 = vst.msk [vmem:[#allocation3 + $0x78] sm:$0xff] %vm2196_vm10, %v2131_v52  ;;  %1379 = vrot.lane.b32.xlu1 %v1867_v0, %s3114_s17 }
 0x1d9   : > { %1381 = vrot.lane.b32.xlu0 %v1868_v31, %s3114_s17 }
 0x1da   : > { %v1553_v57 = vpop.permute.xlu1 %1552 }
 0x1db   : > { %v1747_v25 = vpop.permute.xlu0 %1746  ;;  %1633 = vst.msk [vmem:[#allocation3 + $0x80] sm:$0xff] %vm1616_vm7, %v1553_v57 }
 0x1dc   : > { %1827 = vst.msk [vmem:[#allocation3 + $0x80] sm:$0xff] %vm1810_vm8, %v1747_v25  ;;  %2148 = vrot.lane.b32.xlu1 %v2060_v34, %s3118_s20 }
 0x1dd   : > { %2150 = vrot.lane.b32.xlu0 %v2061_v60, %s3118_s20 }
 0x1de   : > { %v1555_v47 = vpop.permute.xlu1 %1554  ;;  %v2243_v49 = vld [vmem:[#allocation3 + $0x70] sm:$0xff] }
 0x1df   : > { %v1749_v37 = vpop.permute.xlu0 %1748  ;;  %v2244_v61 = vld [vmem:[#allocation3 + $0x78] sm:$0xff]  ;;  %1634 = vst.msk [vmem:[#allocation3 + $0x88] sm:$0xff] %vm1616_vm7, %v1555_v47  ;;  %3029 = vmatprep.mubr.msk.f32.mxu0 %vm2270_vm11, %v2243_v49 }
 0x1e0   : > { %1828 = vst.msk [vmem:[#allocation3 + $0x88] sm:$0xff] %vm1810_vm8, %v1749_v37  ;;  %1572 = vrot.lane.b32.xlu1 %v2060_v34, %s3115_s22  ;;  %3030 = vmatmul.mubr.msk.f32.gmra.mrb[14].mxu0 %vm2270_vm11, %v2244_v61 }
 0x1e1   : > { %1766 = vrot.lane.b32.xlu0 %v1676_v54, %s3116_s30 }
 0x1e2   : > { %v1171_v51 = vpop.permute.xlu1 %1170 }
 0x1e3   : > { %v1173_v38 = vpop.permute.xlu0 %1172  ;;  %1249 = vst.msk [vmem:[#allocation3 + $0x90] sm:$0xff] %vm1230_vm5, %v1171_v51 }
 0x1e4   : > { %1250 = vst.msk [vmem:[#allocation3 + $0x98] sm:$0xff] %vm1230_vm5, %v1173_v38  ;;  %1574 = vrot.lane.b32.xlu1 %v2061_v60, %s3115_s22 }
 0x1e5   : > { %1768 = vrot.lane.b32.xlu0 %v1677_v62, %s3116_s30 }
 0x1e6   : > { %v1940_v20 = vpop.permute.xlu1 %1939 }
 0x1e7   : > { %v1942_v35 = vpop.permute.xlu0 %1941  ;;  %2020 = vst.msk [vmem:[#allocation3 + $0x80] sm:$0xff] %vm2003_vm9, %v1940_v20 }
 0x1e8   : > { %2021 = vst.msk [vmem:[#allocation3 + $0x88] sm:$0xff] %vm2003_vm9, %v1942_v35  ;;  %1190 = vrot.lane.b32.xlu1 %v1676_v54, %s3113_s16 }
 0x1e9   : > { %1192 = vrot.lane.b32.xlu0 %v1677_v62, %s3113_s16 }
 0x1ea   : > { %v1364_v19 = vpop.permute.xlu1 %1363 }
 0x1eb   : > { %v1366_v53 = vpop.permute.xlu0 %1365  ;;  %1442 = vst.msk [vmem:[#allocation3 + $0x90] sm:$0xff] %vm1423_vm6, %v1364_v19 }
 0x1ec   : > { %1443 = vst.msk [vmem:[#allocation3 + $0x98] sm:$0xff] %vm1423_vm6, %v1366_v53  ;;  %1959 = vrot.lane.b32.xlu1 %v1869_v7, %s3117_s19 }
 0x1ed   : > { %1961 = vrot.lane.b32.xlu0 %v1870_v63, %s3117_s19 }
 0x1ee   : > { %v2133_v48 = vpop.permute.xlu1 %2132 }
 0x1ef   : > { %v2135_v2 = vpop.permute.xlu0 %2134  ;;  %2213 = vst.msk [vmem:[#allocation3 + $0x80] sm:$0xff] %vm2196_vm10, %v2133_v48 }
 0x1f0   : > { %2214 = vst.msk [vmem:[#allocation3 + $0x88] sm:$0xff] %vm2196_vm10, %v2135_v2  ;;  %1383 = vrot.lane.b32.xlu1 %v1869_v7, %s3114_s17 }
 0x1f1   : > { %1385 = vrot.lane.b32.xlu0 %v1870_v63, %s3114_s17 }
 0x1f2   : > { %v1557_v30 = vpop.permute.xlu1 %1556 }
 0x1f3   : > { %v1751_v5 = vpop.permute.xlu0 %1750  ;;  %1635 = vst.msk [vmem:[#allocation3 + $0x90] sm:$0xff] %vm1616_vm7, %v1557_v30 }
 0x1f4   : > { %1829 = vst.msk [vmem:[#allocation3 + $0x90] sm:$0xff] %vm1810_vm8, %v1751_v5  ;;  %2152 = vrot.lane.b32.xlu1 %v2062_v4, %s3118_s20 }
 0x1f5   : > { %2154 = vrot.lane.b32.xlu0 %v2063_v58, %s3118_s20 }
 0x1f6   : > { %v1559_v56 = vpop.permute.xlu1 %1558  ;;  %v2245_v28 = vld [vmem:[#allocation3 + $0x80] sm:$0xff] }
 0x1f7   : > { %v1753_v44 = vpop.permute.xlu0 %1752  ;;  %v2246_v10 = vld [vmem:[#allocation3 + $0x88] sm:$0xff]  ;;  %1636 = vst.msk [vmem:[#allocation3 + $0x98] sm:$0xff] %vm1616_vm7, %v1559_v56  ;;  %3032 = vmatprep.mubr.msk.f32.mxu1 %vm2270_vm11, %v2245_v28 }
 0x1f8   : > { %1830 = vst.msk [vmem:[#allocation3 + $0x98] sm:$0xff] %vm1810_vm8, %v1753_v44  ;;  %1576 = vrot.lane.b32.xlu1 %v2062_v4, %s3115_s22  ;;  %3033 = vmatmul.mubr.msk.f32.vlgmr.msra.gmra.mrb[0].mxu1 %vm2270_vm11, %v2246_v10 }
 0x1f9   : > { %1770 = vrot.lane.b32.xlu0 %v1678_v41, %s3116_s30 }
 0x1fa   : > { %v1175_v9 = vpop.permute.xlu1 %1174 }
 0x1fb   : > { %v1177_v11 = vpop.permute.xlu0 %1176  ;;  %1251 = vst.msk [vmem:[#allocation3 + $0xa0] sm:$0xff] %vm1230_vm5, %v1175_v9 }
 0x1fc   : > { %1252 = vst.msk [vmem:[#allocation3 + $0xa8] sm:$0xff] %vm1230_vm5, %v1177_v11  ;;  %1578 = vrot.lane.b32.xlu1 %v2063_v58, %s3115_s22 }
 0x1fd   : > { %1772 = vrot.lane.b32.xlu0 %v1679_v12, %s3116_s30 }
 0x1fe   : > { %v1944_v13 = vpop.permute.xlu1 %1943 }
 0x1ff   : > { %v1946_v3 = vpop.permute.xlu0 %1945  ;;  %2022 = vst.msk [vmem:[#allocation3 + $0x90] sm:$0xff] %vm2003_vm9, %v1944_v13 }
 0x200   : > { %2023 = vst.msk [vmem:[#allocation3 + $0x98] sm:$0xff] %vm2003_vm9, %v1946_v3  ;;  %1194 = vrot.lane.b32.xlu1 %v1678_v41, %s3113_s16 }
 0x201   : > { %1196 = vrot.lane.b32.xlu0 %v1679_v12, %s3113_s16 }
 0x202   : > { %v1368_v15 = vpop.permute.xlu1 %1367 }
 0x203   : > { %v1370_v43 = vpop.permute.xlu0 %1369  ;;  %1444 = vst.msk [vmem:[#allocation3 + $0xa0] sm:$0xff] %vm1423_vm6, %v1368_v15 }
 0x204   : > { %1445 = vst.msk [vmem:[#allocation3 + $0xa8] sm:$0xff] %vm1423_vm6, %v1370_v43  ;;  %1963 = vrot.lane.b32.xlu1 %v1871_v1, %s3117_s19 }
 0x205   : > { %1965 = vrot.lane.b32.xlu0 %v1872_v33, %s3117_s19 }
 0x206   : > { %v2137_v59 = vpop.permute.xlu1 %2136 }
 0x207   : > { %v2139_v46 = vpop.permute.xlu0 %2138  ;;  %2215 = vst.msk [vmem:[#allocation3 + $0x90] sm:$0xff] %vm2196_vm10, %v2137_v59 }
 0x208   : > { %2216 = vst.msk [vmem:[#allocation3 + $0x98] sm:$0xff] %vm2196_vm10, %v2139_v46  ;;  %1387 = vrot.lane.b32.xlu1 %v1871_v1, %s3114_s17 }
 0x209   : > { %1389 = vrot.lane.b32.xlu0 %v1872_v33, %s3114_s17  ;;  %s4161_s17 = scalar_lea.vmem %s4380_s5, %s2947_s27 }
 0x20a   : > { %v1561_v17 = vpop.permute.xlu1 %1560 }
 0x20b   : > { %1637 = vst.msk [vmem:[#allocation3 + $0xa0] sm:$0xff] %vm1616_vm7, %v1561_v17  ;;  %v1755_v6 = vpop.permute.xlu0 %1754 }
 0x20c   : > { %1831 = vst.msk [vmem:[#allocation3 + $0xa0] sm:$0xff] %vm1810_vm8, %v1755_v6  ;;  %2156 = vrot.lane.b32.xlu1 %v2064_v14, %s3118_s20 }
 0x20d   : > { %2158 = vrot.lane.b32.xlu0 %v2065_v55, %s3118_s20 }
 0x20e   : > { %v1563_v21 = vpop.permute.xlu1 %1562  ;;  %v2247_v42 = vld [vmem:[#allocation3 + $0x90] sm:$0xff] }
 0x20f   : > { %v2248_v26 = vld [vmem:[#allocation3 + $0x98] sm:$0xff]  ;;  %1638 = vst.msk [vmem:[#allocation3 + $0xa8] sm:$0xff] %vm1616_vm7, %v1563_v21  ;;  %v1757_v22 = vpop.permute.xlu0 %1756  ;;  %3035 = vmatprep.mubr.msk.f32.mxu1 %vm2270_vm11, %v2247_v42 }
 0x210   : > { %1832 = vst.msk [vmem:[#allocation3 + $0xa8] sm:$0xff] %vm1810_vm8, %v1757_v22  ;;  %1580 = vrot.lane.b32.xlu1 %v2064_v14, %s3115_s22  ;;  %3036 = vmatmul.mubr.msk.f32.gmra.mrb[2].mxu1 %vm2270_vm11, %v2248_v26 }
 0x211   : > { %1774 = vrot.lane.b32.xlu0 %v1680_v32, %s3116_s30 }
 0x212   : > { %v1179_v18 = vpop.permute.xlu1 %1178 }
 0x213   : > { %1253 = vst.msk [vmem:[#allocation3 + $0xb0] sm:$0xff] %vm1230_vm5, %v1179_v18  ;;  %v1181_v24 = vpop.permute.xlu0 %1180 }
 0x214   : > { %1254 = vst.msk [vmem:[#allocation3 + $0xb8] sm:$0xff] %vm1230_vm5, %v1181_v24  ;;  %1582 = vrot.lane.b32.xlu1 %v2065_v55, %s3115_s22 }
 0x215   : > { %1967 = vrot.lane.b32.xlu0 %v1873_v39, %s3117_s19 }
 0x216   : > { %v1948_v27 = vpop.permute.xlu1 %1947 }
 0x217   : > { %2024 = vst.msk [vmem:[#allocation3 + $0xa0] sm:$0xff] %vm2003_vm9, %v1948_v27  ;;  %v1950_v50 = vpop.permute.xlu0 %1949 }
 0x218   : > { %2025 = vst.msk [vmem:[#allocation3 + $0xa8] sm:$0xff] %vm2003_vm9, %v1950_v50  ;;  %1776 = vrot.lane.b32.xlu1 %v1681_v45, %s3116_s30  ;;  %s292_s30 = scalar_lea.vmem %s4381_s6, %s4385_s25 }
 0x219   : > { %2160 = vrot.lane.b32.xlu0 %v2066_v40, %s3118_s20 }
 0x21a   : > { %v1372_v29 = vpop.permute.xlu1 %1371 }
 0x21b   : > { %1446 = vst.msk [vmem:[#allocation3 + $0xb0] sm:$0xff] %vm1423_vm6, %v1372_v29  ;;  %v1374_v0 = vpop.permute.xlu0 %1373 }
 0x21c   : > { %1447 = vst.msk [vmem:[#allocation3 + $0xb8] sm:$0xff] %vm1423_vm6, %v1374_v0  ;;  %1969 = vrot.lane.b32.xlu1 %v1874_v36, %s3117_s19 }
 0x21e   : > { %v3010_v8 = vpop.f32.mrb[0].mxu0  ;;  %v2141_v31 = vpop.permute.xlu1 %2140 }
 0x21f   : > { %2593 = vst.msk [vmem:[%s4161_s17 + $0x8] sm:$0xff] %vm296_vm0, %v3010_v8  ;;  %v2625_v23 = vsel %vm296_vm0, %v3010_v8, 0.0  ;;  %v2695_v52 = vmul.f32 %v3010_v8, %v3010_v8  ;;  %v2143_v34 = vpop.permute.xlu0 %2142  ;;  %v2433_v57 = vpop.f32.mrb[1].mxu0 }
 0x220   : > { %2217 = vst.msk [vmem:[#allocation3 + $0xa0] sm:$0xff] %vm2196_vm10, %v2141_v31  ;;  %2218 = vst.msk [vmem:[#allocation3 + $0xa8] sm:$0xff] %vm2196_vm10, %v2143_v34  ;;  %v2624_v25 = vsel %vm296_vm0, %v2433_v57, 0.0  ;;  %v2694_v60 = vmul.f32 %v2433_v57, %v2433_v57  ;;  %2162 = vrot.lane.b32.xlu1 %v2067_v16, %s3118_s20 }
 0x221   : > { %2592 = vst.msk [vmem:[%s4161_s17] sm:$0xff] %vm296_vm0, %v2433_v57  ;;  %v2727_v47 = vsel %vm296_vm0, %v2695_v52, 0.0  ;;  %v2626_v37 = vadd.f32 %v2625_v23, %v2624_v25 }
 0x222   : > { %v2726_v49 = vsel %vm296_vm0, %v2694_v60, 0.0  ;;  %v1565_v61 = vpop.permute.xlu1 %1564 }
 0x223   : > { %v2728_v54 = vadd.f32 %v2727_v47, %v2726_v49  ;;  %1639 = vst.msk [vmem:[#allocation3 + $0xb0] sm:$0xff] %vm1616_vm7, %v1565_v61  ;;  %v1759_v51 = vpop.permute.xlu0 %1758 }
 0x224   : > { %1833 = vst.msk [vmem:[#allocation3 + $0xb0] sm:$0xff] %vm1810_vm8, %v1759_v51 }
 0x226   : > { %v1567_v38 = vpop.permute.xlu1 %1566 }
 0x227   : > { %v2249_v62 = vld [vmem:[#allocation3 + $0xa0] sm:$0xff]  ;;  %1640 = vst.msk [vmem:[#allocation3 + $0xb8] sm:$0xff] %vm1616_vm7, %v1567_v38  ;;  %v1761_v20 = vpop.permute.xlu0 %1760  ;;  %v2250_v35 = vld [vmem:[#allocation3 + $0xa8] sm:$0xff] }
 0x228   : > { %3038 = vmatprep.mubr.msk.f32.mxu1 %vm2270_vm11, %v2249_v62  ;;  %1834 = vst.msk [vmem:[#allocation3 + $0xb8] sm:$0xff] %vm1810_vm8, %v1761_v20 }
 0x229   : > { %3039 = vmatmul.mubr.msk.f32.gmra.mrb[4].mxu1 %vm2270_vm11, %v2250_v35 }
 0x22a   : > { %v1183_v7 = vpop.permute.xlu1 %1182 }
 0x22b   : > { %1255 = vst.msk [vmem:[#allocation3 + $0xc0] sm:$0xff] %vm1230_vm5, %v1183_v7  ;;  %v1185_v19 = vpop.permute.xlu0 %1184 }
 0x22c   : > { %1256 = vst.msk [vmem:[#allocation3 + $0xc8] sm:$0xff] %vm1230_vm5, %v1185_v19 }
 0x22e   : > { %v1952_v53 = vpop.permute.xlu1 %1951 }
 0x22f   : > { %2026 = vst.msk [vmem:[#allocation3 + $0xb0] sm:$0xff] %vm2003_vm9, %v1952_v53  ;;  %v1954_v63 = vpop.permute.xlu0 %1953 }
 0x230   : > { %2027 = vst.msk [vmem:[#allocation3 + $0xb8] sm:$0xff] %vm2003_vm9, %v1954_v63 }
 0x232   : > { %v1376_v48 = vpop.permute.xlu1 %1375  ;;  %v3013_v2 = vpop.f32.mrb[2].mxu0 }
 0x233   : > { %1448 = vst.msk [vmem:[#allocation3 + $0xc0] sm:$0xff] %vm1423_vm6, %v1376_v48  ;;  %v1378_v4 = vpop.permute.xlu0 %1377  ;;  %v2443_v30 = vpop.f32.mrb[3].mxu0  ;;  %v2697_v5 = vmul.f32 %v3013_v2, %v3013_v2  ;;  %v2629_v28 = vsel %vm296_vm0, %v3013_v2, 0.0 }
 0x234   : > { %2595 = vst.msk [vmem:[%s4161_s17 + $0x18] sm:$0xff] %vm296_vm0, %v3013_v2  ;;  %2594 = vst.msk [vmem:[%s4161_s17 + $0x10] sm:$0xff] %vm296_vm0, %v2443_v30  ;;  %v2627_v58 = vsel %vm296_vm0, %v2443_v30, 0.0  ;;  %v2696_v56 = vmul.f32 %v2443_v30, %v2443_v30 }
 0x235   : > { %1449 = vst.msk [vmem:[#allocation3 + $0xc8] sm:$0xff] %vm1423_vm6, %v1378_v4  ;;  %v2628_v44 = vadd.f32 %v2627_v58, %v2626_v37  ;;  %v2731_v13 = vsel %vm296_vm0, %v2697_v5, 0.0 }
 0x236   : > { %v2729_v10 = vsel %vm296_vm0, %v2696_v56, 0.0  ;;  %v2145_v41 = vpop.permute.xlu1 %2144 }
 0x237   : > { %v2730_v9 = vadd.f32 %v2729_v10, %v2728_v54  ;;  %2219 = vst.msk [vmem:[#allocation3 + $0xb0] sm:$0xff] %vm2196_vm10, %v2145_v41  ;;  %v2147_v11 = vpop.permute.xlu0 %2146  ;;  %v2630_v12 = vadd.f32 %v2629_v28, %v2628_v44 }
 0x238   : > { %2220 = vst.msk [vmem:[#allocation3 + $0xb8] sm:$0xff] %vm2196_vm10, %v2147_v11 }
 0x239   : > { %v2732_v3 = vadd.f32 %v2731_v13, %v2730_v9 }
 0x23a   : > { %v1569_v1 = vpop.permute.xlu1 %1568 }
 0x23b   : > { %1641 = vst.msk [vmem:[#allocation3 + $0xc0] sm:$0xff] %vm1616_vm7, %v1569_v1  ;;  %v1763_v15 = vpop.permute.xlu0 %1762 }
 0x23c   : > { %1835 = vst.msk [vmem:[#allocation3 + $0xc0] sm:$0xff] %vm1810_vm8, %v1763_v15 }
 0x23e   : > { %v1571_v43 = vpop.permute.xlu1 %1570  ;;  %v2251_v33 = vld [vmem:[#allocation3 + $0xb0] sm:$0xff] }
 0x23f   : > { %1642 = vst.msk [vmem:[#allocation3 + $0xc8] sm:$0xff] %vm1616_vm7, %v1571_v43  ;;  %v1765_v59 = vpop.permute.xlu0 %1764  ;;  %3041 = vmatprep.mubr.msk.f32.mxu1 %vm2270_vm11, %v2251_v33  ;;  %v2252_v46 = vld [vmem:[#allocation3 + $0xb8] sm:$0xff] }
 0x240   : > { %1836 = vst.msk [vmem:[#allocation3 + $0xc8] sm:$0xff] %vm1810_vm8, %v1765_v59  ;;  %3042 = vmatmul.mubr.msk.f32.gmra.mrb[6].mxu1 %vm2270_vm11, %v2252_v46 }
 0x242   : > { %v1187_v14 = vpop.permute.xlu1 %1186 }
 0x243   : > { %1257 = vst.msk [vmem:[#allocation3 + $0xd0] sm:$0xff] %vm1230_vm5, %v1187_v14  ;;  %v1189_v17 = vpop.permute.xlu0 %1188 }
 0x244   : > { %1258 = vst.msk [vmem:[#allocation3 + $0xd8] sm:$0xff] %vm1230_vm5, %v1189_v17 }
 0x246   : > { %v1956_v55 = vpop.permute.xlu1 %1955  ;;  %v3016_v6 = vpop.f32.mrb[4].mxu0 }
 0x247   : > { %2028 = vst.msk [vmem:[#allocation3 + $0xc0] sm:$0xff] %vm2003_vm9, %v1956_v55  ;;  %v1958_v21 = vpop.permute.xlu0 %1957  ;;  %v2453_v42 = vpop.f32.mrb[5].mxu0  ;;  %v2699_v26 = vmul.f32 %v3016_v6, %v3016_v6  ;;  %v2633_v39 = vsel %vm296_vm0, %v3016_v6, 0.0 }
 0x248   : > { %2597 = vst.msk [vmem:[%s4161_s17 + $0x28] sm:$0xff] %vm296_vm0, %v3016_v6  ;;  %2596 = vst.msk [vmem:[%s4161_s17 + $0x20] sm:$0xff] %vm296_vm0, %v2453_v42  ;;  %v2631_v32 = vsel %vm296_vm0, %v2453_v42, 0.0  ;;  %v2698_v22 = vmul.f32 %v2453_v42, %v2453_v42 }
 0x249   : > { %2029 = vst.msk [vmem:[#allocation3 + $0xc8] sm:$0xff] %vm2003_vm9, %v1958_v21  ;;  %v2632_v18 = vadd.f32 %v2631_v32, %v2630_v12  ;;  %v2735_v36 = vsel %vm296_vm0, %v2699_v26, 0.0 }
 0x24a   : > { %v2733_v24 = vsel %vm296_vm0, %v2698_v22, 0.0  ;;  %v1380_v45 = vpop.permute.xlu1 %1379 }
 0x24b   : > { %v2734_v27 = vadd.f32 %v2733_v24, %v2732_v3  ;;  %1450 = vst.msk [vmem:[#allocation3 + $0xd0] sm:$0xff] %vm1423_vm6, %v1380_v45  ;;  %v1382_v40 = vpop.permute.xlu0 %1381  ;;  %v2634_v50 = vadd.f32 %v2633_v39, %v2632_v18 }
 0x24c   : > { %1451 = vst.msk [vmem:[#allocation3 + $0xd8] sm:$0xff] %vm1423_vm6, %v1382_v40 }
 0x24d   : > { %v2736_v29 = vadd.f32 %v2735_v36, %v2734_v27 }
 0x24e   : > { %v2149_v0 = vpop.permute.xlu1 %2148 }
 0x24f   : > { %2221 = vst.msk [vmem:[#allocation3 + $0xc0] sm:$0xff] %vm2196_vm10, %v2149_v0  ;;  %v2151_v16 = vpop.permute.xlu0 %2150 }
 0x250   : > { %2222 = vst.msk [vmem:[#allocation3 + $0xc8] sm:$0xff] %vm2196_vm10, %v2151_v16 }
 0x252   : > { %v1573_v8 = vpop.permute.xlu1 %1572 }
 0x253   : > { %1643 = vst.msk [vmem:[#allocation3 + $0xd0] sm:$0xff] %vm1616_vm7, %v1573_v8  ;;  %v1767_v31 = vpop.permute.xlu0 %1766 }
 0x254   : > { %1837 = vst.msk [vmem:[#allocation3 + $0xd0] sm:$0xff] %vm1810_vm8, %v1767_v31 }
 0x256   : > { %v1575_v23 = vpop.permute.xlu1 %1574  ;;  %v2253_v52 = vld [vmem:[#allocation3 + $0xc0] sm:$0xff] }
 0x257   : > { %1644 = vst.msk [vmem:[#allocation3 + $0xd8] sm:$0xff] %vm1616_vm7, %v1575_v23  ;;  %v1769_v34 = vpop.permute.xlu0 %1768  ;;  %3044 = vmatprep.mubr.msk.f32.mxu1 %vm2270_vm11, %v2253_v52  ;;  %v2254_v57 = vld [vmem:[#allocation3 + $0xc8] sm:$0xff] }
 0x258   : > { %1838 = vst.msk [vmem:[#allocation3 + $0xd8] sm:$0xff] %vm1810_vm8, %v1769_v34  ;;  %3045 = vmatmul.mubr.msk.f32.gmra.mrb[8].mxu1 %vm2270_vm11, %v2254_v57 }
 0x25a   : > { %v1191_v25 = vpop.permute.xlu1 %1190  ;;  %v3019_v60 = vpop.f32.mrb[6].mxu0 }
 0x25b   : > { %1259 = vst.msk [vmem:[#allocation3 + $0xe0] sm:$0xff] %vm1230_vm5, %v1191_v25  ;;  %v1193_v47 = vpop.permute.xlu0 %1192  ;;  %v2463_v37 = vpop.f32.mrb[7].mxu0  ;;  %v2701_v49 = vmul.f32 %v3019_v60, %v3019_v60  ;;  %v2637_v38 = vsel %vm296_vm0, %v3019_v60, 0.0 }
 0x25c   : > { %2599 = vst.msk [vmem:[%s4161_s17 + $0x38] sm:$0xff] %vm296_vm0, %v3019_v60  ;;  %2598 = vst.msk [vmem:[%s4161_s17 + $0x30] sm:$0xff] %vm296_vm0, %v2463_v37  ;;  %v2635_v61 = vsel %vm296_vm0, %v2463_v37, 0.0  ;;  %v2700_v54 = vmul.f32 %v2463_v37, %v2463_v37 }
 0x25d   : > { %1260 = vst.msk [vmem:[#allocation3 + $0xe8] sm:$0xff] %vm1230_vm5, %v1193_v47  ;;  %v2636_v51 = vadd.f32 %v2635_v61, %v2634_v50  ;;  %v2739_v53 = vsel %vm296_vm0, %v2701_v49, 0.0 }
 0x25e   : > { %v2737_v62 = vsel %vm296_vm0, %v2700_v54, 0.0  ;;  %v1960_v20 = vpop.permute.xlu1 %1959 }
 0x25f   : > { %v2738_v35 = vadd.f32 %v2737_v62, %v2736_v29  ;;  %2030 = vst.msk [vmem:[#allocation3 + $0xd0] sm:$0xff] %vm2003_vm9, %v1960_v20  ;;  %v1962_v7 = vpop.permute.xlu0 %1961  ;;  %v2638_v19 = vadd.f32 %v2637_v38, %v2636_v51 }
 0x260   : > { %2031 = vst.msk [vmem:[#allocation3 + $0xd8] sm:$0xff] %vm2003_vm9, %v1962_v7 }
 0x261   : > { %v2740_v63 = vadd.f32 %v2739_v53, %v2738_v35 }
 0x262   : > { %v1384_v48 = vpop.permute.xlu1 %1383 }
 0x263   : > { %1452 = vst.msk [vmem:[#allocation3 + $0xe0] sm:$0xff] %vm1423_vm6, %v1384_v48  ;;  %v1386_v2 = vpop.permute.xlu0 %1385 }
 0x264   : > { %1453 = vst.msk [vmem:[#allocation3 + $0xe8] sm:$0xff] %vm1423_vm6, %v1386_v2 }
 0x266   : > { %v2153_v4 = vpop.permute.xlu1 %2152 }
 0x267   : > { %2223 = vst.msk [vmem:[#allocation3 + $0xd0] sm:$0xff] %vm2196_vm10, %v2153_v4  ;;  %v2155_v30 = vpop.permute.xlu0 %2154 }
 0x268   : > { %2224 = vst.msk [vmem:[#allocation3 + $0xd8] sm:$0xff] %vm2196_vm10, %v2155_v30 }
 0x26a   : > { %v1577_v5 = vpop.permute.xlu1 %1576 }
 0x26b   : > { %1645 = vst.msk [vmem:[#allocation3 + $0xe0] sm:$0xff] %vm1616_vm7, %v1577_v5  ;;  %v1771_v58 = vpop.permute.xlu0 %1770  ;;  %v3022_v56 = vpop.f32.mrb[8].mxu0 }
 0x26c   : > { %1839 = vst.msk [vmem:[#allocation3 + $0xe0] sm:$0xff] %vm1810_vm8, %v1771_v58  ;;  %v2703_v44 = vmul.f32 %v3022_v56, %v3022_v56  ;;  %v2473_v28 = vpop.f32.mrb[9].mxu0  ;;  %v2641_v10 = vsel %vm296_vm0, %v3022_v56, 0.0 }
 0x26d   : > { %2601 = vst.msk [vmem:[%s4161_s17 + $0x48] sm:$0xff] %vm296_vm0, %v3022_v56  ;;  %2600 = vst.msk [vmem:[%s4161_s17 + $0x40] sm:$0xff] %vm296_vm0, %v2473_v28  ;;  %v2639_v41 = vsel %vm296_vm0, %v2473_v28, 0.0  ;;  %v2702_v9 = vmul.f32 %v2473_v28, %v2473_v28 }
 0x26e   : > { %v2640_v11 = vadd.f32 %v2639_v41, %v2638_v19  ;;  %v1579_v12 = vpop.permute.xlu1 %1578  ;;  %v2255_v13 = vld [vmem:[#allocation3 + $0xd0] sm:$0xff]  ;;  %v2743_v3 = vsel %vm296_vm0, %v2703_v44, 0.0 }
 0x26f   : > { %v2741_v1 = vsel %vm296_vm0, %v2702_v9, 0.0  ;;  %1646 = vst.msk [vmem:[#allocation3 + $0xe8] sm:$0xff] %vm1616_vm7, %v1579_v12  ;;  %v1773_v15 = vpop.permute.xlu0 %1772  ;;  %3047 = vmatprep.mubr.msk.f32.mxu1 %vm2270_vm11, %v2255_v13  ;;  %v2256_v43 = vld [vmem:[#allocation3 + $0xd8] sm:$0xff] }
 0x270   : > { %v2742_v33 = vadd.f32 %v2741_v1, %v2740_v63  ;;  %1840 = vst.msk [vmem:[#allocation3 + $0xe8] sm:$0xff] %vm1810_vm8, %v1773_v15  ;;  %3048 = vmatmul.mubr.msk.f32.gmra.mrb[10].mxu1 %vm2270_vm11, %v2256_v43  ;;  %v2642_v59 = vadd.f32 %v2641_v10, %v2640_v11 }
 0x272   : > { %v1195_v46 = vpop.permute.xlu1 %1194  ;;  %v2744_v14 = vadd.f32 %v2743_v3, %v2742_v33 }
 0x273   : > { %1261 = vst.msk [vmem:[#allocation3 + $0xf0] sm:$0xff] %vm1230_vm5, %v1195_v46  ;;  %v1197_v17 = vpop.permute.xlu0 %1196 }
 0x274   : > { %1262 = vst.msk [vmem:[#allocation3 + $0xf8] sm:$0xff] %vm1230_vm5, %v1197_v17 }
 0x276   : > { %v1964_v55 = vpop.permute.xlu1 %1963 }
 0x277   : > { %2032 = vst.msk [vmem:[#allocation3 + $0xe0] sm:$0xff] %vm2003_vm9, %v1964_v55  ;;  %v1966_v6 = vpop.permute.xlu0 %1965 }
 0x278   : > { %2033 = vst.msk [vmem:[#allocation3 + $0xe8] sm:$0xff] %vm2003_vm9, %v1966_v6 }
 0x27a   : > { %v1388_v21 = vpop.permute.xlu1 %1387 }
 0x27b   : > { %1454 = vst.msk [vmem:[#allocation3 + $0xf0] sm:$0xff] %vm1423_vm6, %v1388_v21  ;;  %v1390_v42 = vpop.permute.xlu0 %1389 }
 0x27c   : > { %1455 = vst.msk [vmem:[#allocation3 + $0xf8] sm:$0xff] %vm1423_vm6, %v1390_v42 }
 0x27e   : > { %v2157_v26 = vpop.permute.xlu1 %2156 }
 0x27f   : > { %2225 = vst.msk [vmem:[#allocation3 + $0xe0] sm:$0xff] %vm2196_vm10, %v2157_v26  ;;  %v2159_v32 = vpop.permute.xlu0 %2158 }
 0x280   : > { %2226 = vst.msk [vmem:[#allocation3 + $0xe8] sm:$0xff] %vm2196_vm10, %v2159_v32 }
 0x282   : > { %v1581_v22 = vpop.permute.xlu1 %1580 }
 0x283   : > { %1647 = vst.msk [vmem:[#allocation3 + $0xf0] sm:$0xff] %vm1616_vm7, %v1581_v22  ;;  %v3025_v18 = vpop.f32.mrb[10].mxu0  ;;  %v1775_v39 = vpop.permute.xlu0 %1774 }
 0x284   : > { %2603 = vst.msk [vmem:[%s4161_s17 + $0x58] sm:$0xff] %vm296_vm0, %v3025_v18  ;;  %v2705_v24 = vmul.f32 %v3025_v18, %v3025_v18  ;;  %v2483_v45 = vpop.f32.mrb[11].mxu0  ;;  %v2645_v27 = vsel %vm296_vm0, %v3025_v18, 0.0 }
 0x285   : > { %1841 = vst.msk [vmem:[#allocation3 + $0xf0] sm:$0xff] %vm1810_vm8, %v1775_v39  ;;  %v2643_v40 = vsel %vm296_vm0, %v2483_v45, 0.0  ;;  %v2704_v50 = vmul.f32 %v2483_v45, %v2483_v45 }
 0x286   : > { %2602 = vst.msk [vmem:[%s4161_s17 + $0x50] sm:$0xff] %vm296_vm0, %v2483_v45  ;;  %v2644_v36 = vadd.f32 %v2643_v40, %v2642_v59  ;;  %v1583_v29 = vpop.permute.xlu1 %1582  ;;  %v2257_v0 = vld [vmem:[#allocation3 + $0xe0] sm:$0xff]  ;;  %v2747_v16 = vsel %vm296_vm0, %v2705_v24, 0.0 }
 0x287   : > { %v2745_v8 = vsel %vm296_vm0, %v2704_v50, 0.0  ;;  %1648 = vst.msk [vmem:[#allocation3 + $0xf8] sm:$0xff] %vm1616_vm7, %v1583_v29  ;;  %3050 = vmatprep.mubr.msk.f32.mxu1 %vm2270_vm11, %v2257_v0  ;;  %v2258_v31 = vld [vmem:[#allocation3 + $0xe8] sm:$0xff]  ;;  %v1968_v23 = vpop.permute.xlu0 %1967 }
 0x288   : > { %v2746_v52 = vadd.f32 %v2745_v8, %v2744_v14  ;;  %3051 = vmatmul.mubr.msk.f32.gmra.mrb[12].mxu1 %vm2270_vm11, %v2258_v31  ;;  %2034 = vst.msk [vmem:[#allocation3 + $0xf0] sm:$0xff] %vm2003_vm9, %v1968_v23  ;;  %v2646_v34 = vadd.f32 %v2645_v27, %v2644_v36 }
 0x28a   : > { %v1777_v57 = vpop.permute.xlu1 %1776  ;;  %v2748_v25 = vadd.f32 %v2747_v16, %v2746_v52 }
 0x28b   : > { %1842 = vst.msk [vmem:[#allocation3 + $0xf8] sm:$0xff] %vm1810_vm8, %v1777_v57  ;;  %v2161_v60 = vpop.permute.xlu0 %2160 }
 0x28c   : > { %2227 = vst.msk [vmem:[#allocation3 + $0xf0] sm:$0xff] %vm2196_vm10, %v2161_v60 }
 0x28e   : > { %v1970_v47 = vpop.permute.xlu1 %1969 }
 0x28f   : > { %2035 = vst.msk [vmem:[#allocation3 + $0xf8] sm:$0xff] %vm2003_vm9, %v1970_v47 }
 0x292   : > { %v2163_v37 = vpop.permute.xlu1 %2162 }
 0x293   : > { %2228 = vst.msk [vmem:[#allocation3 + $0xf8] sm:$0xff] %vm2196_vm10, %v2163_v37  ;;  %v2259_v49 = vld [vmem:[#allocation3 + $0xf0] sm:$0xff] }
 0x294   : > { %3053 = vmatprep.mubr.msk.f32.mxu1 %vm2270_vm11, %v2259_v49 }
 0x29a   : > { %v2260_v61 = vld [vmem:[#allocation3 + $0xf8] sm:$0xff] }
 0x29b   : > { %v3028_v54 = vpop.f32.mrb[12].mxu0  ;;  %3054 = vmatmul.mubr.msk.f32.gmra.mrb[14].mxu1 %vm2270_vm11, %v2260_v61 }
 0x29c   : > { %2605 = vst.msk [vmem:[%s4161_s17 + $0x68] sm:$0xff] %vm296_vm0, %v3028_v54  ;;  %v2707_v51 = vmul.f32 %v3028_v54, %v3028_v54  ;;  %v2493_v38 = vpop.f32.mrb[13].mxu0  ;;  %v2649_v62 = vsel %vm296_vm0, %v3028_v54, 0.0 }
 0x29d   : > { %2604 = vst.msk [vmem:[%s4161_s17 + $0x60] sm:$0xff] %vm296_vm0, %v2493_v38  ;;  %v2647_v20 = vsel %vm296_vm0, %v2493_v38, 0.0  ;;  %v2706_v35 = vmul.f32 %v2493_v38, %v2493_v38 }
 0x29e   : > { %v2648_v7 = vadd.f32 %v2647_v20, %v2646_v34  ;;  %v2751_v19 = vsel %vm296_vm0, %v2707_v51, 0.0 }
 0x29f   : > { %v2749_v53 = vsel %vm296_vm0, %v2706_v35, 0.0 }
 0x2a0   : > { %v2750_v63 = vadd.f32 %v2749_v53, %v2748_v25  ;;  %v2650_v48 = vadd.f32 %v2649_v62, %v2648_v7 }
 0x2a2   : > { %v2752_v2 = vadd.f32 %v2751_v19, %v2750_v63 }
 0x2b3   : > { %v3031_v4 = vpop.f32.mrb[14].mxu0 }
 0x2b4   : > { %2607 = vst.msk [vmem:[%s4161_s17 + $0x78] sm:$0xff] %vm296_vm0, %v3031_v4  ;;  %v2709_v30 = vmul.f32 %v3031_v4, %v3031_v4  ;;  %v2503_v5 = vpop.f32.mrb[15].mxu0  ;;  %v2653_v58 = vsel %vm296_vm0, %v3031_v4, 0.0 }
 0x2b5   : > { %2606 = vst.msk [vmem:[%s4161_s17 + $0x70] sm:$0xff] %vm296_vm0, %v2503_v5  ;;  %v2651_v56 = vsel %vm296_vm0, %v2503_v5, 0.0  ;;  %v2708_v44 = vmul.f32 %v2503_v5, %v2503_v5 }
 0x2b6   : > { %v2652_v28 = vadd.f32 %v2651_v56, %v2650_v48  ;;  %v2755_v10 = vsel %vm296_vm0, %v2709_v30, 0.0 }
 0x2b7   : > { %v2753_v41 = vsel %vm296_vm0, %v2708_v44, 0.0 }
 0x2b8   : > { %v2654_v9 = vadd.f32 %v2653_v58, %v2652_v28  ;;  %v2754_v11 = vadd.f32 %v2753_v41, %v2752_v2 }
 0x2ba   : > { %v2756_v12 = vadd.f32 %v2755_v10, %v2754_v11 }
 0x2cb   : > { %v3034_v13 = vpop.f32.mrb[0].mxu1 }
 0x2cc   : > { %2609 = vst.msk [vmem:[%s4161_s17 + $0x88] sm:$0xff] %vm296_vm0, %v3034_v13  ;;  %v2711_v3 = vmul.f32 %v3034_v13, %v3034_v13  ;;  %v2513_v1 = vpop.f32.mrb[1].mxu1  ;;  %v2657_v15 = vsel %vm296_vm0, %v3034_v13, 0.0 }
 0x2cd   : > { %2608 = vst.msk [vmem:[%s4161_s17 + $0x80] sm:$0xff] %vm296_vm0, %v2513_v1  ;;  %v2655_v43 = vsel %vm296_vm0, %v2513_v1, 0.0  ;;  %v2710_v33 = vmul.f32 %v2513_v1, %v2513_v1 }
 0x2ce   : > { %v2656_v59 = vadd.f32 %v2655_v43, %v2654_v9  ;;  %v2759_v46 = vsel %vm296_vm0, %v2711_v3, 0.0 }
 0x2cf   : > { %v2757_v14 = vsel %vm296_vm0, %v2710_v33, 0.0 }
 0x2d0   : > { %v2758_v17 = vadd.f32 %v2757_v14, %v2756_v12  ;;  %v2658_v55 = vadd.f32 %v2657_v15, %v2656_v59 }
 0x2d2   : > { %v2760_v6 = vadd.f32 %v2759_v46, %v2758_v17 }
 0x2e3   : > { %v3037_v21 = vpop.f32.mrb[2].mxu1 }
 0x2e4   : > { %2611 = vst.msk [vmem:[%s4161_s17 + $0x98] sm:$0xff] %vm296_vm0, %v3037_v21  ;;  %v2713_v42 = vmul.f32 %v3037_v21, %v3037_v21  ;;  %v2523_v26 = vpop.f32.mrb[3].mxu1  ;;  %v2661_v32 = vsel %vm296_vm0, %v3037_v21, 0.0 }
 0x2e5   : > { %2610 = vst.msk [vmem:[%s4161_s17 + $0x90] sm:$0xff] %vm296_vm0, %v2523_v26  ;;  %v2659_v22 = vsel %vm296_vm0, %v2523_v26, 0.0  ;;  %v2712_v18 = vmul.f32 %v2523_v26, %v2523_v26 }
 0x2e6   : > { %v2660_v39 = vadd.f32 %v2659_v22, %v2658_v55  ;;  %v2763_v24 = vsel %vm296_vm0, %v2713_v42, 0.0 }
 0x2e7   : > { %v2761_v45 = vsel %vm296_vm0, %v2712_v18, 0.0 }
 0x2e8   : > { %v2762_v27 = vadd.f32 %v2761_v45, %v2760_v6  ;;  %v2662_v40 = vadd.f32 %v2661_v32, %v2660_v39 }
 0x2ea   : > { %v2764_v50 = vadd.f32 %v2763_v24, %v2762_v27 }
 0x2fc   : > { %v3040_v36 = vpop.f32.mrb[4].mxu1 }
 0x2fd   : > { %2613 = vst.msk [vmem:[%s4161_s17 + $0xa8] sm:$0xff] %vm296_vm0, %v3040_v36  ;;  %v2715_v29 = vmul.f32 %v3040_v36, %v3040_v36  ;;  %v2533_v0 = vpop.f32.mrb[5].mxu1  ;;  %v2665_v16 = vsel %vm296_vm0, %v3040_v36, 0.0 }
 0x2fe   : > { %2612 = vst.msk [vmem:[%s4161_s17 + $0xa0] sm:$0xff] %vm296_vm0, %v2533_v0  ;;  %v2663_v8 = vsel %vm296_vm0, %v2533_v0, 0.0  ;;  %v2714_v31 = vmul.f32 %v2533_v0, %v2533_v0 }
 0x2ff   : > { %v2664_v23 = vadd.f32 %v2663_v8, %v2662_v40  ;;  %v2767_v52 = vsel %vm296_vm0, %v2715_v29, 0.0 }
 0x300   : > { %v2765_v34 = vsel %vm296_vm0, %v2714_v31, 0.0 }
 0x301   : > { %v2766_v57 = vadd.f32 %v2765_v34, %v2764_v50  ;;  %v2666_v25 = vadd.f32 %v2665_v16, %v2664_v23 }
 0x303   : > { %v2768_v60 = vadd.f32 %v2767_v52, %v2766_v57 }
 0x313   : > { %v3043_v47 = vpop.f32.mrb[6].mxu1 }
 0x314   : > { %2615 = vst.msk [vmem:[%s4161_s17 + $0xb8] sm:$0xff] %vm296_vm0, %v3043_v47  ;;  %v2717_v37 = vmul.f32 %v3043_v47, %v3043_v47  ;;  %v2543_v49 = vpop.f32.mrb[7].mxu1  ;;  %v2669_v61 = vsel %vm296_vm0, %v3043_v47, 0.0 }
 0x315   : > { %2614 = vst.msk [vmem:[%s4161_s17 + $0xb0] sm:$0xff] %vm296_vm0, %v2543_v49  ;;  %v2667_v54 = vsel %vm296_vm0, %v2543_v49, 0.0  ;;  %v2716_v51 = vmul.f32 %v2543_v49, %v2543_v49 }
 0x316   : > { %v2668_v38 = vadd.f32 %v2667_v54, %v2666_v25  ;;  %v2771_v62 = vsel %vm296_vm0, %v2717_v37, 0.0 }
 0x317   : > { %v2769_v20 = vsel %vm296_vm0, %v2716_v51, 0.0 }
 0x318   : > { %v2770_v35 = vadd.f32 %v2769_v20, %v2768_v60  ;;  %v2670_v7 = vadd.f32 %v2669_v61, %v2668_v38 }
 0x31a   : > { %v2772_v19 = vadd.f32 %v2771_v62, %v2770_v35 }
 0x32b   : > { %v3046_v53 = vpop.f32.mrb[8].mxu1 }
 0x32c   : > { %2617 = vst.msk [vmem:[%s4161_s17 + $0xc8] sm:$0xff] %vm296_vm0, %v3046_v53  ;;  %v2719_v63 = vmul.f32 %v3046_v53, %v3046_v53  ;;  %v2553_v48 = vpop.f32.mrb[9].mxu1  ;;  %v2673_v2 = vsel %vm296_vm0, %v3046_v53, 0.0 }
 0x32d   : > { %2616 = vst.msk [vmem:[%s4161_s17 + $0xc0] sm:$0xff] %vm296_vm0, %v2553_v48  ;;  %v2671_v4 = vsel %vm296_vm0, %v2553_v48, 0.0  ;;  %v2718_v30 = vmul.f32 %v2553_v48, %v2553_v48 }
 0x32e   : > { %v2672_v5 = vadd.f32 %v2671_v4, %v2670_v7  ;;  %v2775_v58 = vsel %vm296_vm0, %v2719_v63, 0.0 }
 0x32f   : > { %v2773_v56 = vsel %vm296_vm0, %v2718_v30, 0.0 }
 0x330   : > { %v2774_v44 = vadd.f32 %v2773_v56, %v2772_v19  ;;  %v2674_v28 = vadd.f32 %v2673_v2, %v2672_v5 }
 0x332   : > { %v2776_v10 = vadd.f32 %v2775_v58, %v2774_v44 }
 0x343   : > { %v3049_v41 = vpop.f32.mrb[10].mxu1 }
 0x344   : > { %2619 = vst.msk [vmem:[%s4161_s17 + $0xd8] sm:$0xff] %vm296_vm0, %v3049_v41  ;;  %v2721_v9 = vmul.f32 %v3049_v41, %v3049_v41  ;;  %v2563_v11 = vpop.f32.mrb[11].mxu1  ;;  %v2677_v12 = vsel %vm296_vm0, %v3049_v41, 0.0 }
 0x345   : > { %2618 = vst.msk [vmem:[%s4161_s17 + $0xd0] sm:$0xff] %vm296_vm0, %v2563_v11  ;;  %v2675_v13 = vsel %vm296_vm0, %v2563_v11, 0.0  ;;  %v2720_v3 = vmul.f32 %v2563_v11, %v2563_v11 }
 0x346   : > { %v2676_v1 = vadd.f32 %v2675_v13, %v2674_v28  ;;  %v2779_v15 = vsel %vm296_vm0, %v2721_v9, 0.0 }
 0x347   : > { %v2777_v43 = vsel %vm296_vm0, %v2720_v3, 0.0 }
 0x348   : > { %v2778_v33 = vadd.f32 %v2777_v43, %v2776_v10  ;;  %v2678_v59 = vadd.f32 %v2677_v12, %v2676_v1 }
 0x34a   : > { %v2780_v46 = vadd.f32 %v2779_v15, %v2778_v33 }
 0x35b   : > { %v3052_v14 = vpop.f32.mrb[12].mxu1 }
 0x35c   : > { %2621 = vst.msk [vmem:[%s4161_s17 + $0xe8] sm:$0xff] %vm296_vm0, %v3052_v14  ;;  %v2723_v17 = vmul.f32 %v3052_v14, %v3052_v14  ;;  %v2573_v55 = vpop.f32.mrb[13].mxu1  ;;  %v2681_v6 = vsel %vm296_vm0, %v3052_v14, 0.0 }
 0x35d   : > { %2620 = vst.msk [vmem:[%s4161_s17 + $0xe0] sm:$0xff] %vm296_vm0, %v2573_v55  ;;  %v2679_v21 = vsel %vm296_vm0, %v2573_v55, 0.0  ;;  %v2722_v42 = vmul.f32 %v2573_v55, %v2573_v55 }
 0x35e   : > { %v2680_v26 = vadd.f32 %v2679_v21, %v2678_v59  ;;  %v2783_v32 = vsel %vm296_vm0, %v2723_v17, 0.0 }
 0x35f   : > { %v2781_v22 = vsel %vm296_vm0, %v2722_v42, 0.0 }
 0x360   : > { %v2782_v18 = vadd.f32 %v2781_v22, %v2780_v46  ;;  %v2682_v39 = vadd.f32 %v2681_v6, %v2680_v26 }
 0x362   : > { %v2784_v24 = vadd.f32 %v2783_v32, %v2782_v18 }
 0x36e   : > { %v3055_v45 = vpop.f32.mrb[14].mxu1 }
 0x36f   : > { %2623 = vst.msk [vmem:[%s4161_s17 + $0xf8] sm:$0xff] %vm296_vm0, %v3055_v45  ;;  %v2583_v27 = vpop.f32.mrb[15].mxu1  ;;  %v2725_v40 = vmul.f32 %v3055_v45, %v3055_v45  ;;  %v2685_v0 = vsel %vm296_vm0, %v3055_v45, 0.0 }
 0x370   : > { %2622 = vst.msk [vmem:[%s4161_s17 + $0xf0] sm:$0xff] %vm296_vm0, %v2583_v27  ;;  %v2683_v50 = vsel %vm296_vm0, %v2583_v27, 0.0  ;;  %v2724_v36 = vmul.f32 %v2583_v27, %v2583_v27 }
 0x371   : > { %v2684_v29 = vadd.f32 %v2683_v50, %v2682_v39  ;;  %v2787_v23 = vsel %vm296_vm0, %v2725_v40, 0.0 }
 0x372   : > { %v2785_v16 = vsel %vm296_vm0, %v2724_v36, 0.0 }
 0x373   : > { %v2686_v8 = vadd.f32 %v2685_v0, %v2684_v29  ;;  %v2786_v31 = vadd.f32 %v2785_v16, %v2784_v24 }
 0x375   : > { %v2687_v52 = vrot.slane %v2686_v8, 4  ;;  %v2788_v34 = vadd.f32 %v2787_v23, %v2786_v31 }
 0x377   : > { %v2688_v57 = vadd.f32 %v2687_v52, %v2686_v8  ;;  %v2789_v25 = vrot.slane %v2788_v34, 4 }
 0x379   : > { %v2689_v60 = vrot.slane %v2688_v57, 2  ;;  %v2790_v47 = vadd.f32 %v2789_v25, %v2788_v34 }
 0x37b   : > { %v2690_v37 = vadd.f32 %v2689_v60, %v2688_v57  ;;  %v2791_v49 = vrot.slane %v2790_v47, 2 }
 0x37d   : > { %v2691_v61 = vrot.slane %v2690_v37, 1  ;;  %v2792_v54 = vadd.f32 %v2791_v49, %v2790_v47 }
 0x37f   : > { %v2692_v51 = vadd.f32 %v2691_v61, %v2690_v37  ;;  %v2793_v38 = vrot.slane %v2792_v54, 1 }
 0x381   : > { %2693 = vst.msk [vmem:[%s292_s30] sm:$0x1] %vm305_vm1, %v2692_v51  ;;  %v2794_v62 = vadd.f32 %v2793_v38, %v2792_v54 }
 0x383   : > { %2795 = vst.msk [vmem:[%s295_s14] sm:$0x1] %vm305_vm1, %v2794_v62 }
 0x384 PF: > { %s18_s24 = sadd.s32 1, %s3108_s24  }
 0x385   : > { %p15_p4 = scmp.ge.s32.totalorder %s18_s24, 4  }
 0x387   :  { %17 = sbr.rel (!%p15_p4) target bundleno = 1 (0x1), region = 97 }

// kernel: residual_block.3
= control target key start
LH: loop header
LB: loop body
LE: loop exit
PB: predicated region body
PF: predicated region fallthrough
CT: control target
= control target key end

     0   :  { %s2844_s15 = smov 0   ;;  %s3991_s0 = inlined_call_operand.vmem [shape: f32[2,16,16,8], index: 0, kind: input, shape index: {}]   ;;  %s3992_s1 = inlined_call_operand.vmem [shape: f32[72,8], index: 1, kind: input, shape index: {}]   ;;  %s3993_s2 = inlined_call_operand.vmem [shape: f32[2,256,8], index: 2, kind: output, shape index: {0}]   ;;  %s3994_s3 = inlined_call_operand.vmem [shape: f32[2,1,8], index: 3, kind: output, shape index: {1}]   ;;  %s3995_s4 = inlined_call_operand.vmem [shape: f32[2,1,8], index: 4, kind: output, shape index: {2}]  }
   0x1 LB: > { %s2607_s16 = sadd.s32 4294967295, %s2808_s15   ;;  %p2611_p0 = scmp.ge.s32.totalorder %s2808_s15, 1  ;;  %s2808_s15 = sphi %s2844_s15, %s15_s15  }
   0x2   : > { %p167_p1 = scmp.lt.s32.totalorder %s2808_s15, 3 }
   0x4   : > { %p168_p2 = pnand %p2611_p0, %p167_p1 }
   0x5   : > { %vm215_vm0 = vcmask (!%p168_p2), 64512   ;;  %vm224_vm1 = vcmask (!%p168_p2), 57344   ;;  %vm218_vm2 = vcmask (!%p168_p2), 58368   ;;  %p2854_p3 = scmp.lt.s32.totalorder (!%p168_p2), %s2607_s16, 1  ;;  %v2810_v0 = vmov (!%p168_p2), 0.0   ;;  %s2811_s22 = smov (!%p168_p2), 8  }
   0x6   : > { %171 = sbr.rel (%p168_p2) target bundleno = 899 (0x383), region = 28  ;;  %216 = vst.msk [vmem:[#allocation2] sm:$0xff] (!%p168_p2), %vm215_vm0, %v2810_v0  ;;  %217 = vst.msk [vmem:[#allocation2 + $0x8] sm:$0xff] (!%p168_p2), %vm215_vm0, %v2810_v0  ;;  %s2812_s23 = smov (!%p168_p2), 16   ;;  %vm550_vm3 = vcmask (!%p168_p2), 130112   ;;  %vm743_vm4 = vcmask (!%p168_p2), 195712  }
   0x7   : > { %221 = vst.msk [vmem:[#allocation2 + $0x198] sm:$0xff] (!%p168_p2), %vm215_vm0, %v2810_v0  ;;  %222 = vst.msk [vmem:[#allocation2 + $0x1a0] sm:$0xff] (!%p168_p2), %vm215_vm0, %v2810_v0  ;;  %s2813_s24 = smov (!%p168_p2), 24   ;;  %s2814_s25 = smov (!%p168_p2), 32   ;;  %vm936_vm5 = vcmask (!%p168_p2), 261312   ;;  %vm1129_vm6 = vcmask (!%p168_p2), 326912  }
   0x8   : > { %226 = vst.msk [vmem:[#allocation2 + $0x18] sm:$0x1] (!%p168_p2), %vm224_vm1, %v2810_v0  ;;  %227 = vst.msk [vmem:[#allocation2 + $0x30] sm:$0x1] (!%p168_p2), %vm224_vm1, %v2810_v0  ;;  %s2815_s30 = smov (!%p168_p2), 40   ;;  %s2816_s9 = smov (!%p168_p2), 48  }
   0x9   : > { %228 = vst.msk [vmem:[#allocation2 + $0x48] sm:$0x1] (!%p168_p2), %vm224_vm1, %v2810_v0  ;;  %229 = vst.msk [vmem:[#allocation2 + $0x60] sm:$0x1] (!%p168_p2), %vm224_vm1, %v2810_v0  ;;  %vm1322_vm7 = vcmask (!%p168_p2), 392512   ;;  %vm1516_vm8 = vcmask (!%p168_p2), 458112  }
   0xa   : > { %230 = vst.msk [vmem:[#allocation2 + $0x78] sm:$0x1] (!%p168_p2), %vm224_vm1, %v2810_v0  ;;  %231 = vst.msk [vmem:[#allocation2 + $0x90] sm:$0x1] (!%p168_p2), %vm224_vm1, %v2810_v0  ;;  %vm1709_vm9 = vcmask (!%p168_p2), 523712   ;;  %vm1902_vm10 = vcmask (!%p168_p2), 589312  }
   0xb   : > { %232 = vst.msk [vmem:[#allocation2 + $0xa8] sm:$0x1] (!%p168_p2), %vm224_vm1, %v2810_v0  ;;  %233 = vst.msk [vmem:[#allocation2 + $0xc0] sm:$0x1] (!%p168_p2), %vm224_vm1, %v2810_v0  ;;  %vm1976_vm11 = vcmask (!%p168_p2), 588800  }
   0xc   : > { %234 = vst.msk [vmem:[#allocation2 + $0xd8] sm:$0x1] (!%p168_p2), %vm224_vm1, %v2810_v0  ;;  %235 = vst.msk [vmem:[#allocation2 + $0xf0] sm:$0x1] (!%p168_p2), %vm224_vm1, %v2810_v0 }
   0xd   : > { %236 = vst.msk [vmem:[#allocation2 + $0x108] sm:$0x1] %vm224_vm1, %v2810_v0  ;;  %237 = vst.msk [vmem:[#allocation2 + $0x120] sm:$0x1] %vm224_vm1, %v2810_v0  ;;  %s3998_s16 = smov (!%p2854_p3, %s2607_s16), 1  ;;  %v390_v7 = vld [vmem:[#allocation2 + $0x1] sm:$0xff] }
   0xe   : > { %238 = vst.msk [vmem:[#allocation2 + $0x138] sm:$0x1] %vm224_vm1, %v2810_v0  ;;  %239 = vst.msk [vmem:[#allocation2 + $0x150] sm:$0x1] %vm224_vm1, %v2810_v0  ;;  %s2650_s18 = sshll.u32 %s3998_s16, 8  ;;  %454 = vrot.lane.b32.xlu0 %v390_v7, %s2811_s22  ;;  %v327_v46 = vld [vmem:[#allocation2 + $0x8] sm:$0xff]  ;;  %s211_s29 = scalar_lea.vmem %s3994_s3, %s3998_s16 }
   0xf   : > { %240 = vst.msk [vmem:[#allocation2 + $0x168] sm:$0x1] %vm224_vm1, %v2810_v0  ;;  %241 = vst.msk [vmem:[#allocation2 + $0x180] sm:$0x1] %vm224_vm1, %v2810_v0  ;;  %s2912_s21 = scalar_lea.vmem %s3991_s0, %s2650_s18  ;;  %s214_s6 = scalar_lea.vmem %s3995_s4, %s3998_s16 }
  0x10   : > { %244 = vst.msk [vmem:[#allocation2 + $0x29] sm:$0x1] %vm224_vm1, %v2810_v0  ;;  %245 = vst.msk [vmem:[#allocation2 + $0x41] sm:$0x1] %vm224_vm1, %v2810_v0  ;;  %v261_v1 = vld [vmem:[%s2912_s21] sm:$0xff]  ;;  %v263_v2 = vld [vmem:[%s2912_s21 + $0x10] sm:$0xff] }
  0x11   : > { %246 = vst.msk [vmem:[#allocation2 + $0x59] sm:$0x1] %vm224_vm1, %v2810_v0  ;;  %247 = vst.msk [vmem:[#allocation2 + $0x71] sm:$0x1] %vm224_vm1, %v2810_v0  ;;  %v262_v3 = vld [vmem:[%s2912_s21 + $0x8] sm:$0xff]  ;;  %v265_v4 = vld [vmem:[%s2912_s21 + $0x20] sm:$0xff] }
  0x12   : > { %248 = vst.msk [vmem:[#allocation2 + $0x89] sm:$0x1] %vm224_vm1, %v2810_v0  ;;  %249 = vst.msk [vmem:[#allocation2 + $0xa1] sm:$0x1] %vm224_vm1, %v2810_v0  ;;  %v264_v5 = vld [vmem:[%s2912_s21 + $0x18] sm:$0xff]  ;;  %v267_v6 = vld [vmem:[%s2912_s21 + $0x30] sm:$0xff] }
  0x13   : > { %250 = vst.msk [vmem:[#allocation2 + $0xb9] sm:$0x1] %vm224_vm1, %v2810_v0  ;;  %251 = vst.msk [vmem:[#allocation2 + $0xd1] sm:$0x1] %vm224_vm1, %v2810_v0  ;;  %v266_v9 = vld [vmem:[%s2912_s21 + $0x28] sm:$0xff]  ;;  %v269_v10 = vld [vmem:[%s2912_s21 + $0x40] sm:$0xff] }
  0x14   : > { %252 = vst.msk [vmem:[#allocation2 + $0xe9] sm:$0x1] %vm224_vm1, %v2810_v0  ;;  %253 = vst.msk [vmem:[#allocation2 + $0x101] sm:$0x1] %vm224_vm1, %v2810_v0  ;;  %v268_v11 = vld [vmem:[%s2912_s21 + $0x38] sm:$0xff]  ;;  %v271_v12 = vld [vmem:[%s2912_s21 + $0x50] sm:$0xff] }
  0x15   : > { %254 = vst.msk [vmem:[#allocation2 + $0x119] sm:$0x1] %vm224_vm1, %v2810_v0  ;;  %255 = vst.msk [vmem:[#allocation2 + $0x131] sm:$0x1] %vm224_vm1, %v2810_v0  ;;  %v270_v13 = vld [vmem:[%s2912_s21 + $0x48] sm:$0xff]  ;;  %v273_v14 = vld [vmem:[%s2912_s21 + $0x60] sm:$0xff] }
  0x16   : > { %256 = vst.msk [vmem:[#allocation2 + $0x149] sm:$0x1] %vm224_vm1, %v2810_v0  ;;  %257 = vst.msk [vmem:[#allocation2 + $0x161] sm:$0x1] %vm224_vm1, %v2810_v0  ;;  %v272_v15 = vld [vmem:[%s2912_s21 + $0x58] sm:$0xff]  ;;  %v275_v16 = vld [vmem:[%s2912_s21 + $0x70] sm:$0xff] }
  0x17   : > { %258 = vst.msk [vmem:[#allocation2 + $0x179] sm:$0x1] %vm224_vm1, %v2810_v0  ;;  %259 = vst.msk [vmem:[#allocation2 + $0x191] sm:$0x1] %vm224_vm1, %v2810_v0  ;;  %v274_v17 = vld [vmem:[%s2912_s21 + $0x68] sm:$0xff]  ;;  %v277_v18 = vld [vmem:[%s2912_s21 + $0x80] sm:$0xff] }
  0x18   : > { %219 = vst.msk [vmem:[#allocation2 + $0x10] sm:$0x3] %vm218_vm2, %v2810_v0  ;;  %223 = vst.msk [vmem:[#allocation2 + $0x1a8] sm:$0x3] %vm218_vm2, %v2810_v0  ;;  %v276_v19 = vld [vmem:[%s2912_s21 + $0x78] sm:$0xff]  ;;  %v279_v20 = vld [vmem:[%s2912_s21 + $0x90] sm:$0xff] }
  0x19   : > { %225 = vst.msk [vmem:[#allocation2] sm:$0x1] %vm224_vm1, %v2810_v0  ;;  %242 = vst.msk [vmem:[#allocation2 + $0x198] sm:$0x1] %vm224_vm1, %v2810_v0  ;;  %v278_v21 = vld [vmem:[%s2912_s21 + $0x88] sm:$0xff]  ;;  %v281_v22 = vld [vmem:[%s2912_s21 + $0xa0] sm:$0xff] }
  0x1a   : > { %243 = vst.msk [vmem:[#allocation2 + $0x11] sm:$0x1] %vm224_vm1, %v2810_v0  ;;  %260 = vst.msk [vmem:[#allocation2 + $0x1a9] sm:$0x1] %vm224_vm1, %v2810_v0  ;;  %v280_v23 = vld [vmem:[%s2912_s21 + $0x98] sm:$0xff]  ;;  %v283_v24 = vld [vmem:[%s2912_s21 + $0xb0] sm:$0xff] }
  0x1b   : > { %294 = vst.msk [vmem:[#allocation2 + $0x19] sm:$0xff] %vm215_vm0, %v261_v1  ;;  %296 = vst.msk [vmem:[#allocation2 + $0x31] sm:$0xff] %vm215_vm0, %v263_v2  ;;  %v282_v28 = vld [vmem:[%s2912_s21 + $0xa8] sm:$0xff]  ;;  %v285_v29 = vld [vmem:[%s2912_s21 + $0xc0] sm:$0xff] }
  0x1c   : > { %295 = vst.msk [vmem:[#allocation2 + $0x21] sm:$0xff] %vm215_vm0, %v262_v3  ;;  %298 = vst.msk [vmem:[#allocation2 + $0x49] sm:$0xff] %vm215_vm0, %v265_v4  ;;  %v284_v33 = vld [vmem:[%s2912_s21 + $0xb8] sm:$0xff]  ;;  %v287_v34 = vld [vmem:[%s2912_s21 + $0xd0] sm:$0xff] }
  0x1d   : > { %297 = vst.msk [vmem:[#allocation2 + $0x39] sm:$0xff] %vm215_vm0, %v264_v5  ;;  %300 = vst.msk [vmem:[#allocation2 + $0x61] sm:$0xff] %vm215_vm0, %v267_v6  ;;  %v286_v35 = vld [vmem:[%s2912_s21 + $0xc8] sm:$0xff]  ;;  %v289_v36 = vld [vmem:[%s2912_s21 + $0xe0] sm:$0xff] }
  0x1e   : > { %299 = vst.msk [vmem:[#allocation2 + $0x51] sm:$0xff] %vm215_vm0, %v266_v9  ;;  %302 = vst.msk [vmem:[#allocation2 + $0x79] sm:$0xff] %vm215_vm0, %v269_v10  ;;  %v288_v37 = vld [vmem:[%s2912_s21 + $0xd8] sm:$0xff]  ;;  %v290_v39 = vld [vmem:[%s2912_s21 + $0xe8] sm:$0xff] }
  0x1f   : > { %v391_v8 = vld [vmem:[#allocation2 + $0x9] sm:$0xff]  ;;  %301 = vst.msk [vmem:[#allocation2 + $0x69] sm:$0xff] %vm215_vm0, %v268_v11  ;;  %304 = vst.msk [vmem:[#allocation2 + $0x91] sm:$0xff] %vm215_vm0, %v271_v12 }
  0x20   : > { %303 = vst.msk [vmem:[#allocation2 + $0x81] sm:$0xff] %vm215_vm0, %v270_v13  ;;  %306 = vst.msk [vmem:[#allocation2 + $0xa9] sm:$0xff] %vm215_vm0, %v273_v14  ;;  %456 = vrot.lane.b32.xlu0 %v391_v8, %s2811_s22  ;;  %v326_v45 = vld [vmem:[#allocation2] sm:$0xff] }
  0x21   : > { %305 = vst.msk [vmem:[#allocation2 + $0x99] sm:$0xff] %vm215_vm0, %v272_v15  ;;  %308 = vst.msk [vmem:[#allocation2 + $0xc1] sm:$0xff] %vm215_vm0, %v275_v16 }
  0x22   : > { %307 = vst.msk [vmem:[#allocation2 + $0xb1] sm:$0xff] %vm215_vm0, %v274_v17  ;;  %310 = vst.msk [vmem:[#allocation2 + $0xd9] sm:$0xff] %vm215_vm0, %v277_v18  ;;  %v2957_v25 = vld [vmem:[#allocation2 + $0x19] sm:$0xff]  ;;  %v2959_v26 = vld [vmem:[#allocation2 + $0x31] sm:$0xff] }
  0x23   : > { %309 = vst.msk [vmem:[#allocation2 + $0xc9] sm:$0xff] %vm215_vm0, %v276_v19  ;;  %312 = vst.msk [vmem:[#allocation2 + $0xf1] sm:$0xff] %vm215_vm0, %v279_v20  ;;  %458 = vrot.lane.b32.xlu1 %v2957_v25, %s2811_s22  ;;  %v2966_v27 = vld [vmem:[#allocation2 + $0x21] sm:$0xff]  ;;  %v2974_v30 = vld [vmem:[#allocation2 + $0x49] sm:$0xff] }
  0x24   : > { %311 = vst.msk [vmem:[#allocation2 + $0xe1] sm:$0xff] %vm215_vm0, %v278_v21  ;;  %314 = vst.msk [vmem:[#allocation2 + $0x109] sm:$0xff] %vm215_vm0, %v281_v22  ;;  %462 = vrot.lane.b32.xlu0 %v2959_v26, %s2811_s22  ;;  %v2978_v31 = vld [vmem:[#allocation2 + $0x39] sm:$0xff]  ;;  %v2982_v32 = vld [vmem:[#allocation2 + $0x61] sm:$0xff] }
  0x25   : > { %313 = vst.msk [vmem:[#allocation2 + $0xf9] sm:$0xff] %vm215_vm0, %v280_v23  ;;  %316 = vst.msk [vmem:[#allocation2 + $0x121] sm:$0xff] %vm215_vm0, %v283_v24  ;;  %v2994_v38 = vld [vmem:[#allocation2 + $0x51] sm:$0xff]  ;;  %v3002_v40 = vld [vmem:[#allocation2 + $0x79] sm:$0xff] }
  0x26   : > { %315 = vst.msk [vmem:[#allocation2 + $0x111] sm:$0xff] %vm215_vm0, %v282_v28  ;;  %318 = vst.msk [vmem:[#allocation2 + $0x139] sm:$0xff] %vm215_vm0, %v285_v29  ;;  %v3006_v41 = vld [vmem:[#allocation2 + $0x69] sm:$0xff]  ;;  %v3010_v42 = vld [vmem:[#allocation2 + $0x91] sm:$0xff] }
  0x27   : > { %460 = vrot.lane.b32.xlu1 %v2966_v27, %s2811_s22  ;;  %317 = vst.msk [vmem:[#allocation2 + $0x129] sm:$0xff] %vm215_vm0, %v284_v33  ;;  %320 = vst.msk [vmem:[#allocation2 + $0x151] sm:$0xff] %vm215_vm0, %v287_v34  ;;  %v3014_v43 = vld [vmem:[#allocation2 + $0x81] sm:$0xff]  ;;  %v3018_v44 = vld [vmem:[#allocation2 + $0xa9] sm:$0xff] }
  0x28   : > { %466 = vrot.lane.b32.xlu0 %v2974_v30, %s2811_s22  ;;  %319 = vst.msk [vmem:[#allocation2 + $0x141] sm:$0xff] %vm215_vm0, %v286_v35  ;;  %322 = vst.msk [vmem:[#allocation2 + $0x169] sm:$0xff] %vm215_vm0, %v289_v36  ;;  %v3023_v47 = vld [vmem:[#allocation2 + $0x99] sm:$0xff]  ;;  %v3032_v49 = vld [vmem:[#allocation2 + $0x30] sm:$0xff] }
  0x29   : > { %321 = vst.msk [vmem:[#allocation2 + $0x159] sm:$0xff] %vm215_vm0, %v288_v37  ;;  %323 = vst.msk [vmem:[#allocation2 + $0x171] sm:$0xff] %vm215_vm0, %v290_v39  ;;  %v3026_v48 = vld [vmem:[#allocation2 + $0x18] sm:$0xff]  ;;  %v406_v50 = vld [vmem:[#allocation2 + $0xc1] sm:$0xff] }
  0x2a   : > { %358 = vst.msk [vmem:[#allocation3] sm:$0xff] %vm215_vm0, %v326_v45  ;;  %359 = vst.msk [vmem:[#allocation3 + $0x8] sm:$0xff] %vm215_vm0, %v327_v46  ;;  %v3036_v51 = vld [vmem:[#allocation2 + $0x20] sm:$0xff]  ;;  %v3038_v52 = vld [vmem:[#allocation2 + $0x48] sm:$0xff] }
  0x2b   : > { %464 = vrot.lane.b32.xlu1 %v2978_v31, %s2811_s22  ;;  %360 = vst.msk [vmem:[#allocation3 + $0x10] sm:$0xff] %vm215_vm0, %v3026_v48  ;;  %362 = vst.msk [vmem:[#allocation3 + $0x20] sm:$0xff] %vm215_vm0, %v3032_v49  ;;  %v3042_v53 = vld [vmem:[#allocation2 + $0xb1] sm:$0xff]  ;;  %v3050_v55 = vld [vmem:[#allocation2 + $0x60] sm:$0xff] }
  0x2c   : > { %470 = vrot.lane.b32.xlu0 %v2982_v32, %s2811_s22  ;;  %361 = vst.msk [vmem:[#allocation3 + $0x18] sm:$0xff] %vm215_vm0, %v3036_v51  ;;  %364 = vst.msk [vmem:[#allocation3 + $0x30] sm:$0xff] %vm215_vm0, %v3038_v52  ;;  %v3048_v54 = vld [vmem:[#allocation2 + $0x38] sm:$0xff]  ;;  %v3056_v57 = vld [vmem:[#allocation2 + $0x50] sm:$0xff] }
  0x2d   : > { %v408_v56 = vld [vmem:[#allocation2 + $0xd9] sm:$0xff]  ;;  %363 = vst.msk [vmem:[#allocation3 + $0x28] sm:$0xff] %vm215_vm0, %v3048_v54  ;;  %366 = vst.msk [vmem:[#allocation3 + $0x40] sm:$0xff] %vm215_vm0, %v3050_v55  ;;  %v3060_v59 = vld [vmem:[#allocation2 + $0x68] sm:$0xff] }
  0x2e   : > { %v3058_v58 = vld [vmem:[#allocation2 + $0x78] sm:$0xff]  ;;  %365 = vst.msk [vmem:[#allocation3 + $0x38] sm:$0xff] %vm215_vm0, %v3056_v57  ;;  %367 = vst.msk [vmem:[#allocation3 + $0x48] sm:$0xff] %vm215_vm0, %v3060_v59  ;;  %v3069_v60 = vld [vmem:[#allocation2 + $0x90] sm:$0xff] }
  0x2f   : > { %468 = vrot.lane.b32.xlu1 %v2994_v38, %s2811_s22  ;;  %368 = vst.msk [vmem:[#allocation3 + $0x50] sm:$0xff] %vm215_vm0, %v3058_v58  ;;  %v3071_v61 = vld [vmem:[#allocation2 + $0x80] sm:$0xff]  ;;  %v3073_v62 = vld [vmem:[#allocation2 + $0xa8] sm:$0xff]  ;;  %370 = vst.msk [vmem:[#allocation3 + $0x60] sm:$0xff] %vm215_vm0, %v3069_v60 }
  0x30   : > { %474 = vrot.lane.b32.xlu0 %v3002_v40, %s2811_s22  ;;  %v407_v63 = vld [vmem:[#allocation2 + $0xc9] sm:$0xff]  ;;  %369 = vst.msk [vmem:[#allocation3 + $0x58] sm:$0xff] %vm215_vm0, %v3071_v61  ;;  %372 = vst.msk [vmem:[#allocation3 + $0x70] sm:$0xff] %vm215_vm0, %v3073_v62  ;;  %v3081_v0 = vld [vmem:[#allocation2 + $0x98] sm:$0xff] }
  0x31   : > { %v3083_v1 = vld [vmem:[#allocation2 + $0xc0] sm:$0xff]  ;;  %v3085_v2 = vld [vmem:[#allocation2 + $0xb0] sm:$0xff]  ;;  %371 = vst.msk [vmem:[#allocation3 + $0x68] sm:$0xff] %vm215_vm0, %v3081_v0  ;;  %v3095_v3 = vld [vmem:[#allocation2 + $0xd8] sm:$0xff] }
  0x32   : > { %374 = vst.msk [vmem:[#allocation3 + $0x80] sm:$0xff] %vm215_vm0, %v3083_v1  ;;  %373 = vst.msk [vmem:[#allocation3 + $0x78] sm:$0xff] %vm215_vm0, %v3085_v2  ;;  %v3097_v4 = vld [vmem:[#allocation2 + $0xc8] sm:$0xff]  ;;  %v3099_v5 = vld [vmem:[#allocation2 + $0xf0] sm:$0xff] }
  0x33   : > { %472 = vrot.lane.b32.xlu1 %v3006_v41, %s2811_s22  ;;  %376 = vst.msk [vmem:[#allocation3 + $0x90] sm:$0xff] %vm215_vm0, %v3095_v3  ;;  %375 = vst.msk [vmem:[#allocation3 + $0x88] sm:$0xff] %vm215_vm0, %v3097_v4  ;;  %v3107_v6 = vld [vmem:[#allocation2 + $0xe0] sm:$0xff]  ;;  %v3109_v7 = vld [vmem:[#allocation2 + $0x108] sm:$0xff] }
  0x34   : > { %478 = vrot.lane.b32.xlu0 %v3010_v42, %s2811_s22  ;;  %378 = vst.msk [vmem:[#allocation3 + $0xa0] sm:$0xff] %vm215_vm0, %v3099_v5  ;;  %v3111_v8 = vld [vmem:[#allocation2 + $0xf8] sm:$0xff]  ;;  %377 = vst.msk [vmem:[#allocation3 + $0x98] sm:$0xff] %vm215_vm0, %v3107_v6  ;;  %v3120_v9 = vld [vmem:[#allocation2 + $0x120] sm:$0xff] }
  0x35   : > { %380 = vst.msk [vmem:[#allocation3 + $0xb0] sm:$0xff] %vm215_vm0, %v3109_v7  ;;  %379 = vst.msk [vmem:[#allocation3 + $0xa8] sm:$0xff] %vm215_vm0, %v3111_v8  ;;  %v3122_v10 = vld [vmem:[#allocation2 + $0x110] sm:$0xff]  ;;  %v352_v12 = vld [vmem:[#allocation2 + $0x138] sm:$0xff] }
  0x36   : > { %v410_v11 = vld [vmem:[#allocation2 + $0xf1] sm:$0xff]  ;;  %382 = vst.msk [vmem:[#allocation3 + $0xc0] sm:$0xff] %vm215_vm0, %v3120_v9  ;;  %381 = vst.msk [vmem:[#allocation3 + $0xb8] sm:$0xff] %vm215_vm0, %v3122_v10  ;;  %v409_v13 = vld [vmem:[#allocation2 + $0xe1] sm:$0xff] }
  0x37   : > { %476 = vrot.lane.b32.xlu1 %v3014_v43, %s2811_s22  ;;  %384 = vst.msk [vmem:[#allocation3 + $0xd0] sm:$0xff] %vm215_vm0, %v352_v12  ;;  %v3130_v14 = vld [vmem:[#allocation2 + $0x128] sm:$0xff]  ;;  %v354_v16 = vld [vmem:[#allocation2 + $0x150] sm:$0xff]  ;;  %v411_v17 = vld [vmem:[#allocation2 + $0xf9] sm:$0xff] }
  0x38   : > { %482 = vrot.lane.b32.xlu0 %v3018_v44, %s2811_s22  ;;  %383 = vst.msk [vmem:[#allocation3 + $0xc8] sm:$0xff] %vm215_vm0, %v3130_v14  ;;  %v412_v15 = vld [vmem:[#allocation2 + $0x109] sm:$0xff]  ;;  %386 = vst.msk [vmem:[#allocation3 + $0xe0] sm:$0xff] %vm215_vm0, %v354_v16  ;;  %v353_v18 = vld [vmem:[#allocation2 + $0x140] sm:$0xff] }
  0x39   : > { %385 = vst.msk [vmem:[#allocation3 + $0xd8] sm:$0xff] %vm215_vm0, %v353_v18  ;;  %v414_v19 = vld [vmem:[#allocation2 + $0x121] sm:$0xff]  ;;  %v413_v21 = vld [vmem:[#allocation2 + $0x111] sm:$0xff]  ;;  %v416_v23 = vld [vmem:[#allocation2 + $0x139] sm:$0xff] }
  0x3a   : > { %v356_v20 = vld [vmem:[#allocation2 + $0x168] sm:$0xff]  ;;  %v355_v22 = vld [vmem:[#allocation2 + $0x158] sm:$0xff]  ;;  %v357_v28 = vld [vmem:[#allocation2 + $0x170] sm:$0xff] }
  0x3b   : > { %480 = vrot.lane.b32.xlu1 %v3023_v47, %s2811_s22  ;;  %388 = vst.msk [vmem:[#allocation3 + $0xf0] sm:$0xff] %vm215_vm0, %v356_v20  ;;  %387 = vst.msk [vmem:[#allocation3 + $0xe8] sm:$0xff] %vm215_vm0, %v355_v22  ;;  %v415_v24 = vld [vmem:[#allocation2 + $0x129] sm:$0xff]  ;;  %v418_v29 = vld [vmem:[#allocation2 + $0x151] sm:$0xff] }
  0x3c   : > { %486 = vrot.lane.b32.xlu0 %v406_v50, %s2811_s22  ;;  %389 = vst.msk [vmem:[#allocation3 + $0xf8] sm:$0xff] %vm215_vm0, %v357_v28  ;;  %v417_v33 = vld [vmem:[#allocation2 + $0x141] sm:$0xff]  ;;  %v420_v34 = vld [vmem:[#allocation2 + $0x169] sm:$0xff]  ;;  %v419_v35 = vld [vmem:[#allocation2 + $0x159] sm:$0xff] }
  0x3d   : > { %v583_v36 = vld [vmem:[#allocation2 + $0x2] sm:$0xff]  ;;  %v421_v37 = vld [vmem:[#allocation2 + $0x171] sm:$0xff]  ;;  %v3152_v39 = vld [vmem:[#allocation2 + $0x1a] sm:$0xff] }
  0x3e   : > { %v584_v45 = vld [vmem:[#allocation2 + $0xa] sm:$0xff]  ;;  %v3157_v46 = vld [vmem:[#allocation2 + $0x32] sm:$0xff]  ;;  %v3160_v50 = vld [vmem:[#allocation2 + $0x22] sm:$0xff] }
  0x3f   : > { %484 = vrot.lane.b32.xlu1 %v3042_v53, %s2811_s22  ;;  %v3176_v12 = vld [vmem:[#allocation2 + $0x52] sm:$0xff]  ;;  %v3196_v18 = vld [vmem:[#allocation2 + $0xaa] sm:$0xff]  ;;  %v3204_v20 = vld [vmem:[#allocation2 + $0xc2] sm:$0xff] }
  0x40   : > { %490 = vrot.lane.b32.xlu0 %v408_v56, %s2811_s22  ;;  %v3164_v56 = vld [vmem:[#allocation2 + $0x4a] sm:$0xff]  ;;  %v3188_v16 = vld [vmem:[#allocation2 + $0x92] sm:$0xff]  ;;  %v601_v22 = vld [vmem:[#allocation2 + $0xda] sm:$0xff] }
  0x41   : > { %v602_v28 = vld [vmem:[#allocation2 + $0xe2] sm:$0xff] }
  0x43   : > { %488 = vrot.lane.b32.xlu1 %v407_v63, %s2811_s22  ;;  %v3168_v63 = vld [vmem:[#allocation2 + $0x3a] sm:$0xff] }
  0x44   : > { %494 = vrot.lane.b32.xlu0 %v410_v11, %s2811_s22  ;;  %v3172_v11 = vld [vmem:[#allocation2 + $0x62] sm:$0xff] }
  0x47   : > { %492 = vrot.lane.b32.xlu1 %v409_v13, %s2811_s22  ;;  %v3180_v13 = vld [vmem:[#allocation2 + $0x7a] sm:$0xff] }
  0x48   : > { %498 = vrot.lane.b32.xlu0 %v412_v15, %s2811_s22  ;;  %v3184_v15 = vld [vmem:[#allocation2 + $0x6a] sm:$0xff] }
  0x4b   : > { %496 = vrot.lane.b32.xlu1 %v411_v17, %s2811_s22  ;;  %v3192_v17 = vld [vmem:[#allocation2 + $0x82] sm:$0xff] }
  0x4c   : > { %502 = vrot.lane.b32.xlu0 %v414_v19, %s2811_s22  ;;  %v3200_v19 = vld [vmem:[#allocation2 + $0x9a] sm:$0xff] }
  0x4f   : > { %500 = vrot.lane.b32.xlu1 %v413_v21, %s2811_s22  ;;  %v3208_v21 = vld [vmem:[#allocation2 + $0xb2] sm:$0xff] }
  0x50   : > { %506 = vrot.lane.b32.xlu0 %v416_v23, %s2811_s22  ;;  %v3214_v23 = vld [vmem:[#allocation2 + $0xca] sm:$0xff] }
  0x53   : > { %504 = vrot.lane.b32.xlu1 %v415_v24, %s2811_s22  ;;  %v603_v24 = vld [vmem:[#allocation2 + $0xf2] sm:$0xff] }
  0x54   : > { %510 = vrot.lane.b32.xlu0 %v418_v29, %s2811_s22  ;;  %v605_v29 = vld [vmem:[#allocation2 + $0x10a] sm:$0xff] }
  0x57   : > { %508 = vrot.lane.b32.xlu1 %v417_v33, %s2811_s22  ;;  %v604_v33 = vld [vmem:[#allocation2 + $0xfa] sm:$0xff] }
  0x58   : > { %514 = vrot.lane.b32.xlu0 %v420_v34, %s2811_s22  ;;  %v607_v34 = vld [vmem:[#allocation2 + $0x122] sm:$0xff] }
  0x5b   : > { %512 = vrot.lane.b32.xlu1 %v419_v35, %s2811_s22  ;;  %v606_v35 = vld [vmem:[#allocation2 + $0x112] sm:$0xff] }
  0x5c   : > { %647 = vrot.lane.b32.xlu0 %v583_v36, %s2812_s23  ;;  %v609_v36 = vld [vmem:[#allocation2 + $0x13a] sm:$0xff] }
  0x5f   : > { %516 = vrot.lane.b32.xlu1 %v421_v37, %s2811_s22  ;;  %s2817_s22 = smov 56  }
  0x60   : > { %651 = vrot.lane.b32.xlu0 %v3152_v39, %s2812_s23 }
  0x63   : > { %649 = vrot.lane.b32.xlu1 %v584_v45, %s2812_s23  ;;  %v608_v45 = vld [vmem:[#allocation2 + $0x12a] sm:$0xff] }
  0x64   : > { %655 = vrot.lane.b32.xlu0 %v3157_v46, %s2812_s23 }
  0x67   : > { %653 = vrot.lane.b32.xlu1 %v3160_v50, %s2812_s23 }
  0x68   : > { %659 = vrot.lane.b32.xlu0 %v3164_v56, %s2812_s23 }
  0x6b   : > { %657 = vrot.lane.b32.xlu1 %v3168_v63, %s2812_s23 }
  0x6c   : > { %663 = vrot.lane.b32.xlu0 %v3172_v11, %s2812_s23 }
  0x6f   : > { %661 = vrot.lane.b32.xlu1 %v3176_v12, %s2812_s23 }
  0x70   : > { %667 = vrot.lane.b32.xlu0 %v3180_v13, %s2812_s23 }
  0x73   : > { %665 = vrot.lane.b32.xlu1 %v3184_v15, %s2812_s23 }
  0x74   : > { %671 = vrot.lane.b32.xlu0 %v3188_v16, %s2812_s23 }
  0x77   : > { %669 = vrot.lane.b32.xlu1 %v3192_v17, %s2812_s23 }
  0x78   : > { %675 = vrot.lane.b32.xlu0 %v3196_v18, %s2812_s23 }
  0x7b   : > { %673 = vrot.lane.b32.xlu1 %v3200_v19, %s2812_s23 }
  0x7c   : > { %679 = vrot.lane.b32.xlu0 %v3204_v20, %s2812_s23 }
  0x7f   : > { %677 = vrot.lane.b32.xlu1 %v3208_v21, %s2812_s23 }
  0x80   : > { %683 = vrot.lane.b32.xlu0 %v601_v22, %s2812_s23  ;;  %v455_v37 = vpop.permute.xlu0 %454  ;;  %v611_v22 = vld [vmem:[#allocation2 + $0x152] sm:$0xff] }
  0x81   : > { %551 = vst.msk [vmem:[#allocation3] sm:$0xff] %vm550_vm3, %v455_v37 }
  0x83   : > { %681 = vrot.lane.b32.xlu1 %v3214_v23, %s2812_s23 }
  0x84   : > { %687 = vrot.lane.b32.xlu0 %v603_v24, %s2812_s23 }
  0x87   : > { %685 = vrot.lane.b32.xlu1 %v602_v28, %s2812_s23  ;;  %v610_v28 = vld [vmem:[#allocation2 + $0x142] sm:$0xff] }
  0x88   : > { %691 = vrot.lane.b32.xlu0 %v605_v29, %s2812_s23 }
  0x8b   : > { %689 = vrot.lane.b32.xlu1 %v604_v33, %s2812_s23  ;;  %v613_v33 = vld [vmem:[#allocation2 + $0x16a] sm:$0xff] }
  0x8c   : > { %695 = vrot.lane.b32.xlu0 %v607_v34, %s2812_s23 }
  0x8f   : > { %693 = vrot.lane.b32.xlu1 %v606_v35, %s2812_s23  ;;  %v612_v35 = vld [vmem:[#allocation2 + $0x15a] sm:$0xff] }
  0x90   : > { %699 = vrot.lane.b32.xlu0 %v609_v36, %s2812_s23 }
  0x92   : > { %v457_v24 = vpop.permute.xlu0 %456 }
  0x93   : > { %697 = vrot.lane.b32.xlu1 %v608_v45, %s2812_s23  ;;  %552 = vst.msk [vmem:[#allocation3 + $0x8] sm:$0xff] %vm550_vm3, %v457_v24  ;;  %v614_v45 = vld [vmem:[#allocation2 + $0x172] sm:$0xff] }
  0x94   : > { %703 = vrot.lane.b32.xlu0 %v611_v22, %s2812_s23 }
  0x95   : > { %v459_v29 = vpop.permute.xlu1 %458 }
  0x96   : > { %553 = vst.msk [vmem:[#allocation3 + $0x10] sm:$0xff] %vm550_vm3, %v459_v29  ;;  %v463_v34 = vpop.permute.xlu0 %462 }
  0x97   : > { %701 = vrot.lane.b32.xlu1 %v610_v28, %s2812_s23  ;;  %555 = vst.msk [vmem:[#allocation3 + $0x20] sm:$0xff] %vm550_vm3, %v463_v34 }
  0x98   : > { %707 = vrot.lane.b32.xlu0 %v613_v33, %s2812_s23 }
  0x99   : > { %v461_v36 = vpop.permute.xlu1 %460 }
  0x9a   : > { %554 = vst.msk [vmem:[#allocation3 + $0x18] sm:$0xff] %vm550_vm3, %v461_v36  ;;  %v467_v37 = vpop.permute.xlu0 %466 }
  0x9b   : > { %705 = vrot.lane.b32.xlu1 %v612_v35, %s2812_s23  ;;  %557 = vst.msk [vmem:[#allocation3 + $0x30] sm:$0xff] %vm550_vm3, %v467_v37 }
  0x9c   : > { %840 = vrot.lane.b32.xlu0 %v3026_v48, %s2813_s24 }
  0x9d   : > { %v465_v22 = vpop.permute.xlu1 %464 }
  0x9e   : > { %556 = vst.msk [vmem:[#allocation3 + $0x28] sm:$0xff] %vm550_vm3, %v465_v22  ;;  %v471_v24 = vpop.permute.xlu0 %470 }
  0x9f   : > { %709 = vrot.lane.b32.xlu1 %v614_v45, %s2812_s23  ;;  %559 = vst.msk [vmem:[#allocation3 + $0x40] sm:$0xff] %vm550_vm3, %v471_v24  ;;  %v1967_v24 = vld [vmem:[%s3992_s1] sm:$0xff]  ;;  %s2818_s23 = smov 64  }
  0xa0   : > { %844 = vrot.lane.b32.xlu0 %v3032_v49, %s2813_s24 }
  0xa1   : > { %v469_v28 = vpop.permute.xlu1 %468 }
  0xa2   : > { %558 = vst.msk [vmem:[#allocation3 + $0x38] sm:$0xff] %vm550_vm3, %v469_v28  ;;  %v475_v29 = vpop.permute.xlu0 %474  ;;  %v1968_v28 = vld [vmem:[%s3992_s1 + $0x8] sm:$0xff] }
  0xa3   : > { %842 = vrot.lane.b32.xlu1 %v3036_v51, %s2813_s24  ;;  %561 = vst.msk [vmem:[#allocation3 + $0x50] sm:$0xff] %vm550_vm3, %v475_v29  ;;  %v2759_v29 = vpack.c.bf16 %v1968_v28, %v1967_v24 }
  0xa4   : > { %848 = vrot.lane.b32.xlu0 %v3038_v52, %s2813_s24 }
  0xa5   : > { %v473_v48 = vpop.permute.xlu1 %472  ;;  %2760 = vmatprep.subr.bf16.mxu0 %v2759_v29  ;;  %2775 = vmatprep.subr.bf16.mxu1 %v2759_v29 }
  0xa6   : > { %560 = vst.msk [vmem:[#allocation3 + $0x48] sm:$0xff] %vm550_vm3, %v473_v48  ;;  %v479_v33 = vpop.permute.xlu0 %478  ;;  %2762 = vmatpush3.bf16.msra.mxu0 %v2759_v29  ;;  %2780 = vmatpush3.bf16.msra.mxu1 %v2759_v29 }
  0xa7   : > { %846 = vrot.lane.b32.xlu1 %v3048_v54, %s2813_s24  ;;  %563 = vst.msk [vmem:[#allocation3 + $0x60] sm:$0xff] %vm550_vm3, %v479_v33  ;;  %v1969_v33 = vld [vmem:[%s3992_s1 + $0x10] sm:$0xff] }
  0xa8   : > { %852 = vrot.lane.b32.xlu0 %v3050_v55, %s2813_s24 }
  0xa9   : > { %v477_v34 = vpop.permute.xlu1 %476 }
  0xaa   : > { %562 = vst.msk [vmem:[#allocation3 + $0x58] sm:$0xff] %vm550_vm3, %v477_v34  ;;  %v483_v51 = vpop.permute.xlu0 %482  ;;  %v1970_v34 = vld [vmem:[%s3992_s1 + $0x18] sm:$0xff] }
  0xab   : > { %850 = vrot.lane.b32.xlu1 %v3056_v57, %s2813_s24  ;;  %565 = vst.msk [vmem:[#allocation3 + $0x70] sm:$0xff] %vm550_vm3, %v483_v51 }
  0xac   : > { %856 = vrot.lane.b32.xlu0 %v3058_v58, %s2813_s24 }
  0xad   : > { %v481_v35 = vpop.permute.xlu1 %480 }
  0xae   : > { %564 = vst.msk [vmem:[#allocation3 + $0x68] sm:$0xff] %vm550_vm3, %v481_v35  ;;  %v487_v36 = vpop.permute.xlu0 %486  ;;  %v1971_v35 = vld [vmem:[%s3992_s1 + $0x20] sm:$0xff] }
  0xaf   : > { %854 = vrot.lane.b32.xlu1 %v3060_v59, %s2813_s24  ;;  %567 = vst.msk [vmem:[#allocation3 + $0x80] sm:$0xff] %vm550_vm3, %v487_v36  ;;  %v1972_v36 = vld [vmem:[%s3992_s1 + $0x28] sm:$0xff] }
  0xb0   : > { %860 = vrot.lane.b32.xlu0 %v3069_v60, %s2813_s24 }
  0xb1   : > { %v485_v37 = vpop.permute.xlu1 %484 }
  0xb2   : > { %566 = vst.msk [vmem:[#allocation3 + $0x78] sm:$0xff] %vm550_vm3, %v485_v37  ;;  %v491_v45 = vpop.permute.xlu0 %490 }
  0xb3   : > { %858 = vrot.lane.b32.xlu1 %v3071_v61, %s2813_s24  ;;  %569 = vst.msk [vmem:[#allocation3 + $0x90] sm:$0xff] %vm550_vm3, %v491_v45  ;;  %v1973_v45 = vld [vmem:[%s3992_s1 + $0x30] sm:$0xff] }
  0xb4   : > { %1035 = vrot.lane.b32.xlu0 %v2966_v27, %s2814_s25 }
  0xb5   : > { %v489_v22 = vpop.permute.xlu1 %488 }
  0xb6   : > { %568 = vst.msk [vmem:[#allocation3 + $0x88] sm:$0xff] %vm550_vm3, %v489_v22  ;;  %v495_v48 = vpop.permute.xlu0 %494  ;;  %v1974_v22 = vld [vmem:[%s3992_s1 + $0x38] sm:$0xff] }
  0xb7   : > { %1033 = vrot.lane.b32.xlu1 %v2957_v25, %s2814_s25  ;;  %571 = vst.msk [vmem:[#allocation3 + $0xa0] sm:$0xff] %vm550_vm3, %v495_v48  ;;  %v2763_v25 = vpack.c.bf16 %v1970_v34, %v1969_v33 }
  0xb8   : > { %1228 = vrot.lane.b32.xlu0 %v3160_v50, %s2815_s30 }
  0xb9   : > { %v493_v27 = vpop.permute.xlu1 %492  ;;  %2764 = vmatprep.subr.bf16.mxu0 %v2763_v25  ;;  %2776 = vmatprep.subr.bf16.mxu1 %v2763_v25 }
  0xba   : > { %570 = vst.msk [vmem:[#allocation3 + $0x98] sm:$0xff] %vm550_vm3, %v493_v27  ;;  %v499_v51 = vpop.permute.xlu0 %498  ;;  %2766 = vmatpush3.bf16.msra.mxu0 %v2763_v25  ;;  %2781 = vmatpush3.bf16.msra.mxu1 %v2763_v25 }
  0xbb   : > { %1226 = vrot.lane.b32.xlu1 %v3152_v39, %s2815_s30  ;;  %573 = vst.msk [vmem:[#allocation3 + $0xb0] sm:$0xff] %vm550_vm3, %v499_v51  ;;  %v2767_v39 = vpack.c.bf16 %v1972_v36, %v1971_v35 }
  0xbc   : > { %1422 = vrot.lane.b32.xlu0 %v3048_v54, %s2816_s9 }
  0xbd   : > { %v497_v50 = vpop.permute.xlu1 %496  ;;  %2768 = vmatprep.subr.bf16.mxu0 %v2767_v39  ;;  %2777 = vmatprep.subr.bf16.mxu1 %v2767_v39 }
  0xbe   : > { %572 = vst.msk [vmem:[#allocation3 + $0xa8] sm:$0xff] %vm550_vm3, %v497_v50  ;;  %v503_v37 = vpop.permute.xlu0 %502  ;;  %2770 = vmatpush3.bf16.msra.mxu0 %v2767_v39  ;;  %2782 = vmatpush3.bf16.msra.mxu1 %v2767_v39 }
  0xbf   : > { %1420 = vrot.lane.b32.xlu1 %v3032_v49, %s2816_s9  ;;  %575 = vst.msk [vmem:[#allocation3 + $0xc0] sm:$0xff] %vm550_vm3, %v503_v37  ;;  %v2771_v49 = vpack.c.bf16 %v1974_v22, %v1973_v45 }
  0xc0   : > { %1037 = vrot.lane.b32.xlu0 %v2959_v26, %s2814_s25 }
  0xc1   : > { %v501_v54 = vpop.permute.xlu1 %500  ;;  %2772 = vmatprep.subr.bf16.mxu0 %v2771_v49  ;;  %2778 = vmatprep.subr.bf16.mxu1 %v2771_v49 }
  0xc2   : > { %574 = vst.msk [vmem:[#allocation3 + $0xb8] sm:$0xff] %vm550_vm3, %v501_v54  ;;  %v507_v24 = vpop.permute.xlu0 %506  ;;  %2774 = vmatpush3.bf16.msra.mxu0 %v2771_v49  ;;  %2783 = vmatpush3.bf16.msra.mxu1 %v2771_v49 }
  0xc3   : > { %1613 = vrot.lane.b32.xlu1 %v2959_v26, %s2817_s22  ;;  %577 = vst.msk [vmem:[#allocation3 + $0xd0] sm:$0xff] %vm550_vm3, %v507_v24  ;;  %v1975_v26 = vld [vmem:[%s3992_s1 + $0x40] sm:$0xff] }
  0xc4   : > { %1806 = vrot.lane.b32.xlu0 %v3157_v46, %s2818_s23  ;;  %2709 = vmatprep.subr.mxu0 %v1975_v26 }
  0xc5   : > { %v505_v28 = vpop.permute.xlu1 %504  ;;  %2779 = vmatprep.subr.mxu1 %v1975_v26 }
  0xc6   : > { %576 = vst.msk [vmem:[#allocation3 + $0xc8] sm:$0xff] %vm550_vm3, %v505_v28  ;;  %v511_v29 = vpop.permute.xlu0 %510  ;;  %2710 = vmatpush3.msra.mxu0 %v1975_v26  ;;  %2784 = vmatpush3.msra.mxu1 %v1975_v26 }
  0xc7   : > { %1615 = vrot.lane.b32.xlu1 %v2978_v31, %s2817_s22  ;;  %579 = vst.msk [vmem:[#allocation3 + $0xe0] sm:$0xff] %vm550_vm3, %v511_v29 }
  0xc8   : > { %1230 = vrot.lane.b32.xlu0 %v3157_v46, %s2815_s30 }
  0xc9   : > { %v509_v48 = vpop.permute.xlu1 %508 }
  0xca   : > { %578 = vst.msk [vmem:[#allocation3 + $0xd8] sm:$0xff] %vm550_vm3, %v509_v48  ;;  %v515_v27 = vpop.permute.xlu0 %514 }
  0xcb   : > { %1039 = vrot.lane.b32.xlu1 %v2978_v31, %s2814_s25  ;;  %581 = vst.msk [vmem:[#allocation3 + $0xf0] sm:$0xff] %vm550_vm3, %v515_v27 }
  0xcc   : > { %1232 = vrot.lane.b32.xlu0 %v3168_v63, %s2815_s30 }
  0xcd   : > { %v513_v33 = vpop.permute.xlu1 %512 }
  0xce   : > { %580 = vst.msk [vmem:[#allocation3 + $0xe8] sm:$0xff] %vm550_vm3, %v513_v33  ;;  %v648_v34 = vpop.permute.xlu0 %647 }
  0xcf   : > { %1808 = vrot.lane.b32.xlu1 %v3168_v63, %s2818_s23  ;;  %744 = vst.msk [vmem:[#allocation3] sm:$0xff] %vm743_vm4, %v648_v34 }
  0xd0   : > { %1426 = vrot.lane.b32.xlu0 %v3056_v57, %s2816_s9 }
  0xd1   : > { %v517_v46 = vpop.permute.xlu1 %516 }
  0xd2   : > { %582 = vst.msk [vmem:[#allocation3 + $0xf8] sm:$0xff] %vm550_vm3, %v517_v46  ;;  %v652_v31 = vpop.permute.xlu0 %651  ;;  %v981_v46 = vld [vmem:[#allocation2 + $0xa9] sm:$0xff] }
  0xd3   : > { %1424 = vrot.lane.b32.xlu1 %v3038_v52, %s2816_s9  ;;  %746 = vst.msk [vmem:[#allocation3 + $0x10] sm:$0xff] %vm743_vm4, %v652_v31 }
  0xd4   : > { %1041 = vrot.lane.b32.xlu0 %v2974_v30, %s2814_s25 }
  0xd5   : > { %v650_v25 = vpop.permute.xlu1 %649 }
  0xd6   : > { %745 = vst.msk [vmem:[#allocation3 + $0x8] sm:$0xff] %vm743_vm4, %v650_v25  ;;  %v656_v63 = vpop.permute.xlu0 %655 }
  0xd7   : > { %1617 = vrot.lane.b32.xlu1 %v2974_v30, %s2817_s22  ;;  %748 = vst.msk [vmem:[#allocation3 + $0x20] sm:$0xff] %vm743_vm4, %v656_v63 }
  0xd8   : > { %1810 = vrot.lane.b32.xlu0 %v3164_v56, %s2818_s23 }
  0xd9   : > { %v654_v57 = vpop.permute.xlu1 %653 }
  0xda   : > { %747 = vst.msk [vmem:[#allocation3 + $0x18] sm:$0xff] %vm743_vm4, %v654_v57  ;;  %v660_v52 = vpop.permute.xlu0 %659 }
  0xdb   : > { %1619 = vrot.lane.b32.xlu1 %v2994_v38, %s2817_s22  ;;  %750 = vst.msk [vmem:[#allocation3 + $0x30] sm:$0xff] %vm743_vm4, %v660_v52 }
  0xdc   : > { %1234 = vrot.lane.b32.xlu0 %v3164_v56, %s2815_s30 }
  0xdd   : > { %v658_v51 = vpop.permute.xlu1 %657 }
  0xde   : > { %749 = vst.msk [vmem:[#allocation3 + $0x28] sm:$0xff] %vm743_vm4, %v658_v51  ;;  %v664_v30 = vpop.permute.xlu0 %663 }
  0xdf   : > { %1043 = vrot.lane.b32.xlu1 %v2994_v38, %s2814_s25  ;;  %752 = vst.msk [vmem:[#allocation3 + $0x40] sm:$0xff] %vm743_vm4, %v664_v30  ;;  %v1561_v30 = vld [vmem:[#allocation2 + $0xc1] sm:$0xff] }
  0xe0   : > { %1236 = vrot.lane.b32.xlu0 %v3176_v12, %s2815_s30 }
  0xe1   : > { %v662_v50 = vpop.permute.xlu1 %661 }
  0xe2   : > { %751 = vst.msk [vmem:[#allocation3 + $0x38] sm:$0xff] %vm743_vm4, %v662_v50  ;;  %v668_v35 = vpop.permute.xlu0 %667  ;;  %v1562_v50 = vld [vmem:[#allocation2 + $0xc9] sm:$0xff] }
  0xe3   : > { %1812 = vrot.lane.b32.xlu1 %v3176_v12, %s2818_s23  ;;  %754 = vst.msk [vmem:[#allocation3 + $0x50] sm:$0xff] %vm743_vm4, %v668_v35 }
  0xe4   : > { %1430 = vrot.lane.b32.xlu0 %v3060_v59, %s2816_s9 }
  0xe5   : > { %v666_v56 = vpop.permute.xlu1 %665 }
  0xe6   : > { %753 = vst.msk [vmem:[#allocation3 + $0x48] sm:$0xff] %vm743_vm4, %v666_v56  ;;  %v672_v38 = vpop.permute.xlu0 %671 }
  0xe7   : > { %1428 = vrot.lane.b32.xlu1 %v3050_v55, %s2816_s9  ;;  %756 = vst.msk [vmem:[#allocation3 + $0x60] sm:$0xff] %vm743_vm4, %v672_v38 }
  0xe8   : > { %1045 = vrot.lane.b32.xlu0 %v2982_v32, %s2814_s25 }
  0xe9   : > { %v670_v36 = vpop.permute.xlu1 %669 }
  0xea   : > { %755 = vst.msk [vmem:[#allocation3 + $0x58] sm:$0xff] %vm743_vm4, %v670_v36  ;;  %v676_v12 = vpop.permute.xlu0 %675 }
  0xeb   : > { %1621 = vrot.lane.b32.xlu1 %v2982_v32, %s2817_s22  ;;  %758 = vst.msk [vmem:[#allocation3 + $0x70] sm:$0xff] %vm743_vm4, %v676_v12 }
  0xec   : > { %1814 = vrot.lane.b32.xlu0 %v3172_v11, %s2818_s23 }
  0xed   : > { %v674_v59 = vpop.permute.xlu1 %673 }
  0xee   : > { %757 = vst.msk [vmem:[#allocation3 + $0x68] sm:$0xff] %vm743_vm4, %v674_v59  ;;  %v680_v55 = vpop.permute.xlu0 %679 }
  0xef   : > { %1623 = vrot.lane.b32.xlu1 %v3006_v41, %s2817_s22  ;;  %760 = vst.msk [vmem:[#allocation3 + $0x80] sm:$0xff] %vm743_vm4, %v680_v55 }
  0xf0   : > { %1238 = vrot.lane.b32.xlu0 %v3172_v11, %s2815_s30 }
  0xf1   : > { %v678_v39 = vpop.permute.xlu1 %677 }
  0xf2   : > { %759 = vst.msk [vmem:[#allocation3 + $0x78] sm:$0xff] %vm743_vm4, %v678_v39  ;;  %v684_v32 = vpop.permute.xlu0 %683 }
  0xf3   : > { %1047 = vrot.lane.b32.xlu1 %v3006_v41, %s2814_s25  ;;  %762 = vst.msk [vmem:[#allocation3 + $0x90] sm:$0xff] %vm743_vm4, %v684_v32 }
  0xf4   : > { %1240 = vrot.lane.b32.xlu0 %v3184_v15, %s2815_s30 }
  0xf5   : > { %v682_v37 = vpop.permute.xlu1 %681 }
  0xf6   : > { %761 = vst.msk [vmem:[#allocation3 + $0x88] sm:$0xff] %vm743_vm4, %v682_v37  ;;  %v688_v54 = vpop.permute.xlu0 %687 }
  0xf7   : > { %1816 = vrot.lane.b32.xlu1 %v3184_v15, %s2818_s23  ;;  %764 = vst.msk [vmem:[#allocation3 + $0xa0] sm:$0xff] %vm743_vm4, %v688_v54  ;;  %v1563_v54 = vld [vmem:[#allocation2 + $0xd9] sm:$0xff] }
  0xf8   : > { %1434 = vrot.lane.b32.xlu0 %v3071_v61, %s2816_s9 }
  0xf9   : > { %v686_v11 = vpop.permute.xlu1 %685 }
  0xfa   : > { %763 = vst.msk [vmem:[#allocation3 + $0x98] sm:$0xff] %vm743_vm4, %v686_v11  ;;  %v692_v41 = vpop.permute.xlu0 %691  ;;  %v1564_v11 = vld [vmem:[#allocation2 + $0xe1] sm:$0xff] }
  0xfb   : > { %1432 = vrot.lane.b32.xlu1 %v3058_v58, %s2816_s9  ;;  %766 = vst.msk [vmem:[#allocation3 + $0xb0] sm:$0xff] %vm743_vm4, %v692_v41 }
  0xfc   : > { %1049 = vrot.lane.b32.xlu0 %v3002_v40, %s2814_s25 }
  0xfd   : > { %v690_v45 = vpop.permute.xlu1 %689 }
  0xfe   : > { %765 = vst.msk [vmem:[#allocation3 + $0xa8] sm:$0xff] %vm743_vm4, %v690_v45  ;;  %v696_v15 = vpop.permute.xlu0 %695 }
  0xff   : > { %1625 = vrot.lane.b32.xlu1 %v3002_v40, %s2817_s22  ;;  %768 = vst.msk [vmem:[#allocation3 + $0xc0] sm:$0xff] %vm743_vm4, %v696_v15 }
 0x100   : > { %1818 = vrot.lane.b32.xlu0 %v3180_v13, %s2818_s23 }
 0x101   : > { %v694_v61 = vpop.permute.xlu1 %693 }
 0x102   : > { %767 = vst.msk [vmem:[#allocation3 + $0xb8] sm:$0xff] %vm743_vm4, %v694_v61  ;;  %v700_v58 = vpop.permute.xlu0 %699 }
 0x103   : > { %1627 = vrot.lane.b32.xlu1 %v3014_v43, %s2817_s22  ;;  %770 = vst.msk [vmem:[#allocation3 + $0xd0] sm:$0xff] %vm743_vm4, %v700_v58  ;;  %v1757_v58 = vld [vmem:[#allocation2 + $0xe2] sm:$0xff] }
 0x104   : > { %1242 = vrot.lane.b32.xlu0 %v3180_v13, %s2815_s30 }
 0x105   : > { %v698_v22 = vpop.permute.xlu1 %697 }
 0x106   : > { %769 = vst.msk [vmem:[#allocation3 + $0xc8] sm:$0xff] %vm743_vm4, %v698_v22  ;;  %v704_v40 = vpop.permute.xlu0 %703 }
 0x107   : > { %1051 = vrot.lane.b32.xlu1 %v3014_v43, %s2814_s25  ;;  %772 = vst.msk [vmem:[#allocation3 + $0xe0] sm:$0xff] %vm743_vm4, %v704_v40 }
 0x108   : > { %1244 = vrot.lane.b32.xlu0 %v3192_v17, %s2815_s30 }
 0x109   : > { %v702_v49 = vpop.permute.xlu1 %701 }
 0x10a   : > { %771 = vst.msk [vmem:[#allocation3 + $0xd8] sm:$0xff] %vm743_vm4, %v702_v49  ;;  %v708_v24 = vpop.permute.xlu0 %707 }
 0x10b   : > { %1820 = vrot.lane.b32.xlu1 %v3192_v17, %s2818_s23  ;;  %774 = vst.msk [vmem:[#allocation3 + $0xf0] sm:$0xff] %vm743_vm4, %v708_v24 }
 0x10c   : > { %1438 = vrot.lane.b32.xlu0 %v3081_v0, %s2816_s9 }
 0x10d   : > { %v706_v13 = vpop.permute.xlu1 %705 }
 0x10e   : > { %773 = vst.msk [vmem:[#allocation3 + $0xe8] sm:$0xff] %vm743_vm4, %v706_v13  ;;  %v841_v43 = vpop.permute.xlu0 %840 }
 0x10f   : > { %1436 = vrot.lane.b32.xlu1 %v3069_v60, %s2816_s9  ;;  %937 = vst.msk [vmem:[#allocation3] sm:$0xff] %vm936_vm5, %v841_v43 }
 0x110   : > { %862 = vrot.lane.b32.xlu0 %v3081_v0, %s2813_s24 }
 0x111   : > { %v710_v28 = vpop.permute.xlu1 %709 }
 0x112   : > { %775 = vst.msk [vmem:[#allocation3 + $0xf8] sm:$0xff] %vm743_vm4, %v710_v28  ;;  %v845_v17 = vpop.permute.xlu0 %844 }
 0x113   : > { %1629 = vrot.lane.b32.xlu1 %v3010_v42, %s2817_s22  ;;  %939 = vst.msk [vmem:[#allocation3 + $0x10] sm:$0xff] %vm936_vm5, %v845_v17 }
 0x114   : > { %1631 = vrot.lane.b32.xlu0 %v3023_v47, %s2817_s22 }
 0x115   : > { %v843_v29 = vpop.permute.xlu1 %842 }
 0x116   : > { %938 = vst.msk [vmem:[#allocation3 + $0x8] sm:$0xff] %vm936_vm5, %v843_v29  ;;  %v849_v60 = vpop.permute.xlu0 %848  ;;  %v1565_v29 = vld [vmem:[#allocation2 + $0xf1] sm:$0xff] }
 0x117   : > { %1053 = vrot.lane.b32.xlu1 %v3010_v42, %s2814_s25  ;;  %941 = vst.msk [vmem:[#allocation3 + $0x20] sm:$0xff] %vm936_vm5, %v849_v60  ;;  %v291_v60 = vld [vmem:[%s2912_s21 + $0xf0] sm:$0xff] }
 0x118   : > { %1055 = vrot.lane.b32.xlu0 %v3023_v47, %s2814_s25  ;;  %324 = vst.msk [vmem:[#allocation2 + $0x181] sm:$0xff] %vm215_vm0, %v291_v60 }
 0x119   : > { %v847_v0 = vpop.permute.xlu1 %846 }
 0x11a   : > { %940 = vst.msk [vmem:[#allocation3 + $0x18] sm:$0xff] %vm936_vm5, %v847_v0  ;;  %v853_v26 = vpop.permute.xlu0 %852 }
 0x11b   : > { %1822 = vrot.lane.b32.xlu1 %v3188_v16, %s2818_s23  ;;  %943 = vst.msk [vmem:[#allocation3 + $0x30] sm:$0xff] %vm936_vm5, %v853_v26 }
 0x11c   : > { %1824 = vrot.lane.b32.xlu0 %v3200_v19, %s2818_s23 }
 0x11d   : > { %v851_v48 = vpop.permute.xlu1 %850 }
 0x11e   : > { %942 = vst.msk [vmem:[#allocation3 + $0x28] sm:$0xff] %vm936_vm5, %v851_v48  ;;  %v857_v42 = vpop.permute.xlu0 %856  ;;  %v1566_v48 = vld [vmem:[#allocation2 + $0xf9] sm:$0xff] }
 0x11f   : > { %1246 = vrot.lane.b32.xlu1 %v3188_v16, %s2815_s30  ;;  %945 = vst.msk [vmem:[#allocation3 + $0x40] sm:$0xff] %vm936_vm5, %v857_v42 }
 0x120   : > { %1440 = vrot.lane.b32.xlu0 %v3073_v62, %s2816_s9 }
 0x121   : > { %v855_v47 = vpop.permute.xlu1 %854 }
 0x122   : > { %944 = vst.msk [vmem:[#allocation3 + $0x38] sm:$0xff] %vm936_vm5, %v855_v47  ;;  %v861_v27 = vpop.permute.xlu0 %860 }
 0x123   : > { %1248 = vrot.lane.b32.xlu1 %v3200_v19, %s2815_s30  ;;  %947 = vst.msk [vmem:[#allocation3 + $0x50] sm:$0xff] %vm936_vm5, %v861_v27  ;;  %v1758_v27 = vld [vmem:[#allocation2 + $0xf2] sm:$0xff] }
 0x124   : > { %1442 = vrot.lane.b32.xlu0 %v3085_v2, %s2816_s9 }
 0x125   : > { %v859_v33 = vpop.permute.xlu1 %858 }
 0x126   : > { %946 = vst.msk [vmem:[#allocation3 + $0x48] sm:$0xff] %vm936_vm5, %v859_v33  ;;  %v1036_v16 = vpop.permute.xlu0 %1035 }
 0x127   : > { %864 = vrot.lane.b32.xlu1 %v3073_v62, %s2813_s24  ;;  %1131 = vst.msk [vmem:[#allocation3 + $0x8] sm:$0xff] %vm1129_vm6, %v1036_v16  ;;  %v1759_v16 = vld [vmem:[#allocation2 + $0xfa] sm:$0xff] }
 0x128   : > { %866 = vrot.lane.b32.xlu0 %v3085_v2, %s2813_s24 }
 0x129   : > { %v1034_v34 = vpop.permute.xlu1 %1033 }
 0x12a   : > { %1130 = vst.msk [vmem:[#allocation3] sm:$0xff] %vm1129_vm6, %v1034_v34  ;;  %v1229_v19 = vpop.permute.xlu0 %1228 }
 0x12b   : > { %1633 = vrot.lane.b32.xlu1 %v3018_v44, %s2817_s22  ;;  %1324 = vst.msk [vmem:[#allocation3 + $0x8] sm:$0xff] %vm1322_vm7, %v1229_v19 }
 0x12c   : > { %1635 = vrot.lane.b32.xlu0 %v3042_v53, %s2817_s22 }
 0x12d   : > { %v1227_v62 = vpop.permute.xlu1 %1226 }
 0x12e   : > { %1323 = vst.msk [vmem:[#allocation3] sm:$0xff] %vm1322_vm7, %v1227_v62  ;;  %v1423_v31 = vpop.permute.xlu0 %1422 }
 0x12f   : > { %1057 = vrot.lane.b32.xlu1 %v981_v46, %s2814_s25  ;;  %1518 = vst.msk [vmem:[#allocation3 + $0x8] sm:$0xff] %vm1516_vm8, %v1423_v31 }
 0x130   : > { %1059 = vrot.lane.b32.xlu0 %v3042_v53, %s2814_s25 }
 0x131   : > { %v1421_v2 = vpop.permute.xlu1 %1420 }
 0x132   : > { %1517 = vst.msk [vmem:[#allocation3] sm:$0xff] %vm1516_vm8, %v1421_v2  ;;  %v1038_v44 = vpop.permute.xlu0 %1037 }
 0x133   : > { %1826 = vrot.lane.b32.xlu1 %v3196_v18, %s2818_s23  ;;  %1132 = vst.msk [vmem:[#allocation3 + $0x10] sm:$0xff] %vm1129_vm6, %v1038_v44 }
 0x134   : > { %1828 = vrot.lane.b32.xlu0 %v3208_v21, %s2818_s23 }
 0x135   : > { %v1614_v25 = vpop.permute.xlu1 %1613 }
 0x136   : > { %1710 = vst.msk [vmem:[#allocation3] sm:$0xff] %vm1709_vm9, %v1614_v25  ;;  %v1807_v63 = vpop.permute.xlu0 %1806 }
 0x137   : > { %1250 = vrot.lane.b32.xlu1 %v3196_v18, %s2815_s30  ;;  %1903 = vst.msk [vmem:[#allocation3] sm:$0xff] %vm1902_vm10, %v1807_v63 }
 0x138   : > { %1444 = vrot.lane.b32.xlu0 %v3083_v1, %s2816_s9 }
 0x139   : > { %v1616_v53 = vpop.permute.xlu1 %1615 }
 0x13a   : > { %1711 = vst.msk [vmem:[#allocation3 + $0x8] sm:$0xff] %vm1709_vm9, %v1616_v53  ;;  %v1231_v57 = vpop.permute.xlu0 %1230  ;;  %v1567_v53 = vld [vmem:[#allocation2 + $0x109] sm:$0xff] }
 0x13b   : > { %1252 = vrot.lane.b32.xlu1 %v3208_v21, %s2815_s30  ;;  %1325 = vst.msk [vmem:[#allocation3 + $0x10] sm:$0xff] %vm1322_vm7, %v1231_v57 }
 0x13c   : > { %1446 = vrot.lane.b32.xlu0 %v3097_v4, %s2816_s9 }
 0x13d   : > { %v1040_v52 = vpop.permute.xlu1 %1039 }
 0x13e   : > { %1133 = vst.msk [vmem:[#allocation3 + $0x18] sm:$0xff] %vm1129_vm6, %v1040_v52  ;;  %v1233_v18 = vpop.permute.xlu0 %1232  ;;  %v1935_v51 = vld [vmem:[#allocation3] sm:$0xff] }
 0x13f   : > { %868 = vrot.lane.b32.xlu1 %v3083_v1, %s2813_s24  ;;  %1326 = vst.msk [vmem:[#allocation3 + $0x18] sm:$0xff] %vm1322_vm7, %v1233_v18  ;;  %2711 = vmatprep.mubr.msk.f32.mxu0 %vm1976_vm11, %v1935_v51  ;;  %v1568_v52 = vld [vmem:[#allocation2 + $0x111] sm:$0xff] }
 0x140   : > { %870 = vrot.lane.b32.xlu0 %v3097_v4, %s2813_s24 }
 0x141   : > { %v1809_v21 = vpop.permute.xlu1 %1808 }
 0x142   : > { %1904 = vst.msk [vmem:[#allocation3 + $0x8] sm:$0xff] %vm1902_vm10, %v1809_v21  ;;  %v1427_v35 = vpop.permute.xlu0 %1426  ;;  %v1761_v21 = vld [vmem:[#allocation2 + $0x112] sm:$0xff] }
 0x143   : > { %1637 = vrot.lane.b32.xlu1 %v1561_v30, %s2817_s22  ;;  %1520 = vst.msk [vmem:[#allocation3 + $0x18] sm:$0xff] %vm1516_vm8, %v1427_v35 }
 0x144   : > { %1639 = vrot.lane.b32.xlu0 %v1562_v50, %s2817_s22 }
 0x145   : > { %v1425_v1 = vpop.permute.xlu1 %1424 }
 0x146   : > { %1519 = vst.msk [vmem:[#allocation3 + $0x10] sm:$0xff] %vm1516_vm8, %v1425_v1  ;;  %v1042_v56 = vpop.permute.xlu0 %1041 }
 0x147   : > { %1061 = vrot.lane.b32.xlu1 %v1561_v30, %s2814_s25  ;;  %1134 = vst.msk [vmem:[#allocation3 + $0x20] sm:$0xff] %vm1129_vm6, %v1042_v56 }
 0x148   : > { %1063 = vrot.lane.b32.xlu0 %v1562_v50, %s2814_s25 }
 0x149   : > { %v1618_v4 = vpop.permute.xlu1 %1617  ;;  %v1936_v38 = vld [vmem:[#allocation3 + $0x8] sm:$0xff] }
 0x14a   : > { %1712 = vst.msk [vmem:[#allocation3 + $0x10] sm:$0xff] %vm1709_vm9, %v1618_v4  ;;  %2712 = vmatmul.mubr.msk.f32.vlgmr.msra.gmra.mrb[0].mxu0 %vm1976_vm11, %v1936_v38  ;;  %v1811_v36 = vpop.permute.xlu0 %1810 }
 0x14b   : > { %1830 = vrot.lane.b32.xlu1 %v3204_v20, %s2818_s23  ;;  %1905 = vst.msk [vmem:[#allocation3 + $0x10] sm:$0xff] %vm1902_vm10, %v1811_v36 }
 0x14c   : > { %1832 = vrot.lane.b32.xlu0 %v3214_v23, %s2818_s23 }
 0x14d   : > { %v1620_v12 = vpop.permute.xlu1 %1619 }
 0x14e   : > { %1713 = vst.msk [vmem:[#allocation3 + $0x18] sm:$0xff] %vm1709_vm9, %v1620_v12  ;;  %v1235_v59 = vpop.permute.xlu0 %1234  ;;  %v798_v12 = vld [vmem:[#allocation2 + $0x120] sm:$0xff] }
 0x14f   : > { %1254 = vrot.lane.b32.xlu1 %v3204_v20, %s2815_s30  ;;  %1327 = vst.msk [vmem:[#allocation3 + $0x20] sm:$0xff] %vm1322_vm7, %v1235_v59 }
 0x150   : > { %1448 = vrot.lane.b32.xlu0 %v3095_v3, %s2816_s9 }
 0x151   : > { %v1044_v55 = vpop.permute.xlu1 %1043 }
 0x152   : > { %1135 = vst.msk [vmem:[#allocation3 + $0x28] sm:$0xff] %vm1129_vm6, %v1044_v55  ;;  %v1237_v39 = vpop.permute.xlu0 %1236  ;;  %v1937_v32 = vld [vmem:[#allocation3 + $0x10] sm:$0xff] }
 0x153   : > { %1256 = vrot.lane.b32.xlu1 %v3214_v23, %s2815_s30  ;;  %1328 = vst.msk [vmem:[#allocation3 + $0x28] sm:$0xff] %vm1322_vm7, %v1237_v39  ;;  %2714 = vmatprep.mubr.msk.f32.mxu0 %vm1976_vm11, %v1937_v32  ;;  %v1570_v32 = vld [vmem:[#allocation2 + $0x129] sm:$0xff] }
 0x154   : > { %1450 = vrot.lane.b32.xlu0 %v3107_v6, %s2816_s9 }
 0x155   : > { %v1813_v20 = vpop.permute.xlu1 %1812 }
 0x156   : > { %1906 = vst.msk [vmem:[#allocation3 + $0x18] sm:$0xff] %vm1902_vm10, %v1813_v20  ;;  %v1431_v37 = vpop.permute.xlu0 %1430 }
 0x157   : > { %872 = vrot.lane.b32.xlu1 %v3095_v3, %s2813_s24  ;;  %1522 = vst.msk [vmem:[#allocation3 + $0x28] sm:$0xff] %vm1516_vm8, %v1431_v37 }
 0x158   : > { %874 = vrot.lane.b32.xlu0 %v3107_v6, %s2813_s24  ;;  %v1756_v6 = vld [vmem:[#allocation2 + $0xda] sm:$0xff] }
 0x159   : > { %v1429_v23 = vpop.permute.xlu1 %1428 }
 0x15a   : > { %1521 = vst.msk [vmem:[#allocation3 + $0x20] sm:$0xff] %vm1516_vm8, %v1429_v23  ;;  %v1046_v41 = vpop.permute.xlu0 %1045 }
 0x15b   : > { %1641 = vrot.lane.b32.xlu1 %v1563_v54, %s2817_s22  ;;  %1136 = vst.msk [vmem:[#allocation3 + $0x30] sm:$0xff] %vm1129_vm6, %v1046_v41 }
 0x15c   : > { %1643 = vrot.lane.b32.xlu0 %v1564_v11, %s2817_s22 }
 0x15d   : > { %v1622_v45 = vpop.permute.xlu1 %1621  ;;  %v1938_v15 = vld [vmem:[#allocation3 + $0x18] sm:$0xff] }
 0x15e   : > { %1714 = vst.msk [vmem:[#allocation3 + $0x20] sm:$0xff] %vm1709_vm9, %v1622_v45  ;;  %2715 = vmatmul.mubr.msk.f32.gmra.mrb[2].mxu0 %vm1976_vm11, %v1938_v15  ;;  %v1815_v3 = vpop.permute.xlu0 %1814 }
 0x15f   : > { %1065 = vrot.lane.b32.xlu1 %v1563_v54, %s2814_s25  ;;  %1907 = vst.msk [vmem:[#allocation3 + $0x20] sm:$0xff] %vm1902_vm10, %v1815_v3  ;;  %v1378_v3 = vld [vmem:[#allocation2 + $0x138] sm:$0xff] }
 0x160   : > { %1067 = vrot.lane.b32.xlu0 %v1564_v11, %s2814_s25  ;;  %v1763_v11 = vld [vmem:[#allocation2 + $0x12a] sm:$0xff] }
 0x161   : > { %v1624_v61 = vpop.permute.xlu1 %1623 }
 0x162   : > { %1715 = vst.msk [vmem:[#allocation3 + $0x28] sm:$0xff] %vm1709_vm9, %v1624_v61  ;;  %v1239_v22 = vpop.permute.xlu0 %1238 }
 0x163   : > { %1834 = vrot.lane.b32.xlu1 %v1756_v6, %s2818_s23  ;;  %1329 = vst.msk [vmem:[#allocation3 + $0x30] sm:$0xff] %vm1322_vm7, %v1239_v22  ;;  %v1379_v22 = vld [vmem:[#allocation2 + $0x140] sm:$0xff] }
 0x164   : > { %1836 = vrot.lane.b32.xlu0 %v1757_v58, %s2818_s23 }
 0x165   : > { %v1048_v40 = vpop.permute.xlu1 %1047 }
 0x166   : > { %1137 = vst.msk [vmem:[#allocation3 + $0x38] sm:$0xff] %vm1129_vm6, %v1048_v40  ;;  %v1241_v49 = vpop.permute.xlu0 %1240  ;;  %v1939_v24 = vld [vmem:[#allocation3 + $0x20] sm:$0xff] }
 0x167   : > { %1258 = vrot.lane.b32.xlu1 %v1756_v6, %s2815_s30  ;;  %1330 = vst.msk [vmem:[#allocation3 + $0x38] sm:$0xff] %vm1322_vm7, %v1241_v49  ;;  %2717 = vmatprep.mubr.msk.f32.mxu0 %vm1976_vm11, %v1939_v24 }
 0x168   : > { %1452 = vrot.lane.b32.xlu0 %v3099_v5, %s2816_s9 }
 0x169   : > { %v1817_v13 = vpop.permute.xlu1 %1816 }
 0x16a   : > { %1908 = vst.msk [vmem:[#allocation3 + $0x28] sm:$0xff] %vm1902_vm10, %v1817_v13  ;;  %v1435_v43 = vpop.permute.xlu0 %1434  ;;  %v1571_v13 = vld [vmem:[#allocation2 + $0x139] sm:$0xff] }
 0x16b   : > { %1260 = vrot.lane.b32.xlu1 %v1757_v58, %s2815_s30  ;;  %1524 = vst.msk [vmem:[#allocation3 + $0x38] sm:$0xff] %vm1516_vm8, %v1435_v43 }
 0x16c   : > { %1454 = vrot.lane.b32.xlu0 %v3111_v8, %s2816_s9 }
 0x16d   : > { %v1433_v28 = vpop.permute.xlu1 %1432 }
 0x16e   : > { %1523 = vst.msk [vmem:[#allocation3 + $0x30] sm:$0xff] %vm1516_vm8, %v1433_v28  ;;  %v1050_v17 = vpop.permute.xlu0 %1049  ;;  %v1572_v28 = vld [vmem:[#allocation2 + $0x141] sm:$0xff] }
 0x16f   : > { %876 = vrot.lane.b32.xlu1 %v3099_v5, %s2813_s24  ;;  %1138 = vst.msk [vmem:[#allocation3 + $0x40] sm:$0xff] %vm1129_vm6, %v1050_v17  ;;  %v292_v5 = vld [vmem:[%s2912_s21 + $0xf8] sm:$0xff] }
 0x170   : > { %878 = vrot.lane.b32.xlu0 %v3111_v8, %s2813_s24  ;;  %325 = vst.msk [vmem:[#allocation2 + $0x189] sm:$0xff] %vm215_vm0, %v292_v5 }
 0x171   : > { %v1626_v0 = vpop.permute.xlu1 %1625  ;;  %v1940_v26 = vld [vmem:[#allocation3 + $0x28] sm:$0xff] }
 0x172   : > { %1716 = vst.msk [vmem:[#allocation3 + $0x30] sm:$0xff] %vm1709_vm9, %v1626_v0  ;;  %2718 = vmatmul.mubr.msk.f32.gmra.mrb[4].mxu0 %vm1976_vm11, %v1940_v26  ;;  %v1819_v42 = vpop.permute.xlu0 %1818  ;;  %v1764_v0 = vld [vmem:[#allocation2 + $0x13a] sm:$0xff] }
 0x173   : > { %1645 = vrot.lane.b32.xlu1 %v1565_v29, %s2817_s22  ;;  %1909 = vst.msk [vmem:[#allocation3 + $0x30] sm:$0xff] %vm1902_vm10, %v1819_v42 }
 0x174   : > { %1647 = vrot.lane.b32.xlu0 %v1566_v48, %s2817_s22 }
 0x175   : > { %v1628_v47 = vpop.permute.xlu1 %1627 }
 0x176   : > { %1717 = vst.msk [vmem:[#allocation3 + $0x38] sm:$0xff] %vm1709_vm9, %v1628_v47  ;;  %v1243_v8 = vpop.permute.xlu0 %1242 }
 0x177   : > { %1069 = vrot.lane.b32.xlu1 %v1565_v29, %s2814_s25  ;;  %1331 = vst.msk [vmem:[#allocation3 + $0x40] sm:$0xff] %vm1322_vm7, %v1243_v8  ;;  %v1380_v8 = vld [vmem:[#allocation2 + $0x150] sm:$0xff] }
 0x178   : > { %1071 = vrot.lane.b32.xlu0 %v1566_v48, %s2814_s25  ;;  %v1765_v48 = vld [vmem:[#allocation2 + $0x142] sm:$0xff] }
 0x179   : > { %v1052_v33 = vpop.permute.xlu1 %1051 }
 0x17a   : > { %1139 = vst.msk [vmem:[#allocation3 + $0x48] sm:$0xff] %vm1129_vm6, %v1052_v33  ;;  %v1245_v34 = vpop.permute.xlu0 %1244  ;;  %v1941_v19 = vld [vmem:[#allocation3 + $0x30] sm:$0xff] }
 0x17b   : > { %1838 = vrot.lane.b32.xlu1 %v1758_v27, %s2818_s23  ;;  %1332 = vst.msk [vmem:[#allocation3 + $0x48] sm:$0xff] %vm1322_vm7, %v1245_v34  ;;  %2720 = vmatprep.mubr.msk.f32.mxu0 %vm1976_vm11, %v1941_v19  ;;  %v1381_v34 = vld [vmem:[#allocation2 + $0x158] sm:$0xff] }
 0x17c   : > { %1840 = vrot.lane.b32.xlu0 %v1759_v16, %s2818_s23 }
 0x17d   : > { %v1821_v46 = vpop.permute.xlu1 %1820 }
 0x17e   : > { %1910 = vst.msk [vmem:[#allocation3 + $0x38] sm:$0xff] %vm1902_vm10, %v1821_v46  ;;  %v1439_v62 = vpop.permute.xlu0 %1438 }
 0x17f   : > { %1262 = vrot.lane.b32.xlu1 %v1758_v27, %s2815_s30  ;;  %1526 = vst.msk [vmem:[#allocation3 + $0x48] sm:$0xff] %vm1516_vm8, %v1439_v62 }
 0x180   : > { %1456 = vrot.lane.b32.xlu0 %v3109_v7, %s2816_s9 }
 0x181   : > { %v1437_v31 = vpop.permute.xlu1 %1436 }
 0x182   : > { %1525 = vst.msk [vmem:[#allocation3 + $0x40] sm:$0xff] %vm1516_vm8, %v1437_v31  ;;  %v863_v2 = vpop.permute.xlu0 %862  ;;  %v1573_v31 = vld [vmem:[#allocation2 + $0x151] sm:$0xff] }
 0x183   : > { %1264 = vrot.lane.b32.xlu1 %v1759_v16, %s2815_s30  ;;  %948 = vst.msk [vmem:[#allocation3 + $0x58] sm:$0xff] %vm936_vm5, %v863_v2 }
 0x184   : > { %1458 = vrot.lane.b32.xlu0 %v3122_v10, %s2816_s9 }
 0x185   : > { %v1630_v44 = vpop.permute.xlu1 %1629  ;;  %v1942_v25 = vld [vmem:[#allocation3 + $0x38] sm:$0xff] }
 0x186   : > { %1718 = vst.msk [vmem:[#allocation3 + $0x40] sm:$0xff] %vm1709_vm9, %v1630_v44  ;;  %2721 = vmatmul.mubr.msk.f32.gmra.mrb[6].mxu0 %vm1976_vm11, %v1942_v25  ;;  %v1632_v63 = vpop.permute.xlu0 %1631  ;;  %v1574_v44 = vld [vmem:[#allocation2 + $0x159] sm:$0xff] }
 0x187   : > { %880 = vrot.lane.b32.xlu1 %v3109_v7, %s2813_s24  ;;  %1719 = vst.msk [vmem:[#allocation3 + $0x48] sm:$0xff] %vm1709_vm9, %v1632_v63 }
 0x188   : > { %882 = vrot.lane.b32.xlu0 %v3122_v10, %s2813_s24  ;;  %v1760_v10 = vld [vmem:[#allocation2 + $0x10a] sm:$0xff] }
 0x189   : > { %v1054_v57 = vpop.permute.xlu1 %1053 }
 0x18a   : > { %1140 = vst.msk [vmem:[#allocation3 + $0x50] sm:$0xff] %vm1129_vm6, %v1054_v57  ;;  %v1056_v18 = vpop.permute.xlu0 %1055  ;;  %v1766_v57 = vld [vmem:[#allocation2 + $0x152] sm:$0xff] }
 0x18b   : > { %1649 = vrot.lane.b32.xlu1 %v1567_v53, %s2817_s22  ;;  %1141 = vst.msk [vmem:[#allocation3 + $0x58] sm:$0xff] %vm1129_vm6, %v1056_v18  ;;  %v1767_v18 = vld [vmem:[#allocation2 + $0x15a] sm:$0xff] }
 0x18c   : > { %1651 = vrot.lane.b32.xlu0 %v1568_v52, %s2817_s22 }
 0x18d   : > { %v1823_v51 = vpop.permute.xlu1 %1822 }
 0x18e   : > { %1911 = vst.msk [vmem:[#allocation3 + $0x40] sm:$0xff] %vm1902_vm10, %v1823_v51  ;;  %v1825_v7 = vpop.permute.xlu0 %1824 }
 0x18f   : > { %1073 = vrot.lane.b32.xlu1 %v1567_v53, %s2814_s25  ;;  %1912 = vst.msk [vmem:[#allocation3 + $0x48] sm:$0xff] %vm1902_vm10, %v1825_v7 }
 0x190   : > { %1075 = vrot.lane.b32.xlu0 %v1568_v52, %s2814_s25 }
 0x191   : > { %v1247_v30 = vpop.permute.xlu1 %1246 }
 0x192   : > { %1333 = vst.msk [vmem:[#allocation3 + $0x50] sm:$0xff] %vm1322_vm7, %v1247_v30  ;;  %v1441_v50 = vpop.permute.xlu0 %1440  ;;  %v1382_v30 = vld [vmem:[#allocation2 + $0x168] sm:$0xff] }
 0x193   : > { %1842 = vrot.lane.b32.xlu1 %v1760_v10, %s2818_s23  ;;  %1527 = vst.msk [vmem:[#allocation3 + $0x50] sm:$0xff] %vm1516_vm8, %v1441_v50 }
 0x194   : > { %1844 = vrot.lane.b32.xlu0 %v1761_v21, %s2818_s23 }
 0x195   : > { %v1249_v35 = vpop.permute.xlu1 %1248  ;;  %v1943_v1 = vld [vmem:[#allocation3 + $0x40] sm:$0xff] }
 0x196   : > { %1334 = vst.msk [vmem:[#allocation3 + $0x58] sm:$0xff] %vm1322_vm7, %v1249_v35  ;;  %2723 = vmatprep.mubr.msk.f32.mxu0 %vm1976_vm11, %v1943_v1  ;;  %v1443_v56 = vpop.permute.xlu0 %1442  ;;  %v1944_v4 = vld [vmem:[#allocation3 + $0x48] sm:$0xff]  ;;  %v1383_v1 = vld [vmem:[#allocation2 + $0x170] sm:$0xff] }
 0x197   : > { %1266 = vrot.lane.b32.xlu1 %v1760_v10, %s2815_s30  ;;  %1528 = vst.msk [vmem:[#allocation3 + $0x58] sm:$0xff] %vm1516_vm8, %v1443_v56  ;;  %2724 = vmatmul.mubr.msk.f32.gmra.mrb[8].mxu0 %vm1976_vm11, %v1944_v4 }
 0x198   : > { %1460 = vrot.lane.b32.xlu0 %v3120_v9, %s2816_s9  ;;  %v1569_v9 = vld [vmem:[#allocation2 + $0x121] sm:$0xff] }
 0x199   : > { %v865_v38 = vpop.permute.xlu1 %864 }
 0x19a   : > { %949 = vst.msk [vmem:[#allocation3 + $0x60] sm:$0xff] %vm936_vm5, %v865_v38  ;;  %v867_v36 = vpop.permute.xlu0 %866 }
 0x19b   : > { %1268 = vrot.lane.b32.xlu1 %v1761_v21, %s2815_s30  ;;  %950 = vst.msk [vmem:[#allocation3 + $0x68] sm:$0xff] %vm936_vm5, %v867_v36  ;;  %v1575_v36 = vld [vmem:[#allocation2 + $0x169] sm:$0xff] }
 0x19c   : > { %1462 = vrot.lane.b32.xlu0 %v3130_v14, %s2816_s9 }
 0x19d   : > { %v1634_v59 = vpop.permute.xlu1 %1633 }
 0x19e   : > { %1720 = vst.msk [vmem:[#allocation3 + $0x50] sm:$0xff] %vm1709_vm9, %v1634_v59  ;;  %v1636_v55 = vpop.permute.xlu0 %1635  ;;  %v1576_v59 = vld [vmem:[#allocation2 + $0x171] sm:$0xff] }
 0x19f   : > { %884 = vrot.lane.b32.xlu1 %v798_v12, %s2813_s24  ;;  %1721 = vst.msk [vmem:[#allocation3 + $0x58] sm:$0xff] %vm1709_vm9, %v1636_v55 }
 0x1a0   : > { %886 = vrot.lane.b32.xlu0 %v3130_v14, %s2813_s24  ;;  %v1762_v14 = vld [vmem:[#allocation2 + $0x122] sm:$0xff] }
 0x1a1   : > { %v1058_v39 = vpop.permute.xlu1 %1057 }
 0x1a2   : > { %1142 = vst.msk [vmem:[#allocation3 + $0x60] sm:$0xff] %vm1129_vm6, %v1058_v39  ;;  %v1060_v20 = vpop.permute.xlu0 %1059 }
 0x1a3   : > { %1653 = vrot.lane.b32.xlu1 %v1569_v9, %s2817_s22  ;;  %1143 = vst.msk [vmem:[#allocation3 + $0x68] sm:$0xff] %vm1129_vm6, %v1060_v20 }
 0x1a4   : > { %1655 = vrot.lane.b32.xlu0 %v1570_v32, %s2817_s22 }
 0x1a5   : > { %v1827_v37 = vpop.permute.xlu1 %1826 }
 0x1a6   : > { %1913 = vst.msk [vmem:[#allocation3 + $0x50] sm:$0xff] %vm1902_vm10, %v1827_v37  ;;  %v1829_v54 = vpop.permute.xlu0 %1828  ;;  %v1769_v37 = vld [vmem:[#allocation2 + $0x172] sm:$0xff] }
 0x1a7   : > { %1077 = vrot.lane.b32.xlu1 %v1569_v9, %s2814_s25  ;;  %1914 = vst.msk [vmem:[#allocation3 + $0x58] sm:$0xff] %vm1902_vm10, %v1829_v54 }
 0x1a8   : > { %1079 = vrot.lane.b32.xlu0 %v1570_v32, %s2814_s25  ;;  %v1768_v32 = vld [vmem:[#allocation2 + $0x16a] sm:$0xff] }
 0x1a9   : > { %v1251_v23 = vpop.permute.xlu1 %1250 }
 0x1aa   : > { %1335 = vst.msk [vmem:[#allocation3 + $0x60] sm:$0xff] %vm1322_vm7, %v1251_v23  ;;  %v1445_v41 = vpop.permute.xlu0 %1444 }
 0x1ab   : > { %1846 = vrot.lane.b32.xlu1 %v1762_v14, %s2818_s23  ;;  %1529 = vst.msk [vmem:[#allocation3 + $0x60] sm:$0xff] %vm1516_vm8, %v1445_v41 }
 0x1ac   : > { %1848 = vrot.lane.b32.xlu0 %v1763_v11, %s2818_s23 }
 0x1ad   : > { %v1253_v45 = vpop.permute.xlu1 %1252  ;;  %v1945_v15 = vld [vmem:[#allocation3 + $0x50] sm:$0xff] }
 0x1ae   : > { %1336 = vst.msk [vmem:[#allocation3 + $0x68] sm:$0xff] %vm1322_vm7, %v1253_v45  ;;  %2726 = vmatprep.mubr.msk.f32.mxu0 %vm1976_vm11, %v1945_v15  ;;  %v1447_v6 = vpop.permute.xlu0 %1446  ;;  %v1946_v61 = vld [vmem:[#allocation3 + $0x58] sm:$0xff] }
 0x1af   : > { %1270 = vrot.lane.b32.xlu1 %v1762_v14, %s2815_s30  ;;  %1530 = vst.msk [vmem:[#allocation3 + $0x68] sm:$0xff] %vm1516_vm8, %v1447_v6  ;;  %2727 = vmatmul.mubr.msk.f32.gmra.mrb[10].mxu0 %vm1976_vm11, %v1946_v61 }
 0x1b0   : > { %1464 = vrot.lane.b32.xlu0 %v1378_v3, %s2816_s9 }
 0x1b1   : > { %v869_v58 = vpop.permute.xlu1 %868 }
 0x1b2   : > { %951 = vst.msk [vmem:[#allocation3 + $0x70] sm:$0xff] %vm936_vm5, %v869_v58  ;;  %v871_v40 = vpop.permute.xlu0 %870 }
 0x1b3   : > { %1272 = vrot.lane.b32.xlu1 %v1763_v11, %s2815_s30  ;;  %952 = vst.msk [vmem:[#allocation3 + $0x78] sm:$0xff] %vm936_vm5, %v871_v40  ;;  %v1384_v11 = vld [vmem:[#allocation2 + $0x180] sm:$0xff] }
 0x1b4   : > { %1466 = vrot.lane.b32.xlu0 %v1379_v22, %s2816_s9 }
 0x1b5   : > { %v1638_v49 = vpop.permute.xlu1 %1637 }
 0x1b6   : > { %1722 = vst.msk [vmem:[#allocation3 + $0x60] sm:$0xff] %vm1709_vm9, %v1638_v49  ;;  %v1640_v24 = vpop.permute.xlu0 %1639  ;;  %v1578_v49 = vld [vmem:[#allocation2 + $0x189] sm:$0xff] }
 0x1b7   : > { %888 = vrot.lane.b32.xlu1 %v1378_v3, %s2813_s24  ;;  %1723 = vst.msk [vmem:[#allocation3 + $0x68] sm:$0xff] %vm1709_vm9, %v1640_v24  ;;  %v1385_v3 = vld [vmem:[#allocation2 + $0x188] sm:$0xff] }
 0x1b8   : > { %890 = vrot.lane.b32.xlu0 %v1379_v22, %s2813_s24  ;;  %v1577_v22 = vld [vmem:[#allocation2 + $0x181] sm:$0xff] }
 0x1b9   : > { %v1062_v43 = vpop.permute.xlu1 %1061 }
 0x1ba   : > { %1144 = vst.msk [vmem:[#allocation3 + $0x70] sm:$0xff] %vm1129_vm6, %v1062_v43  ;;  %v1064_v17 = vpop.permute.xlu0 %1063 }
 0x1bb   : > { %1657 = vrot.lane.b32.xlu1 %v1571_v13, %s2817_s22  ;;  %1145 = vst.msk [vmem:[#allocation3 + $0x78] sm:$0xff] %vm1129_vm6, %v1064_v17 }
 0x1bc   : > { %1659 = vrot.lane.b32.xlu0 %v1572_v28, %s2817_s22 }
 0x1bd   : > { %v1831_v29 = vpop.permute.xlu1 %1830 }
 0x1be   : > { %1915 = vst.msk [vmem:[#allocation3 + $0x60] sm:$0xff] %vm1902_vm10, %v1831_v29  ;;  %v1833_v60 = vpop.permute.xlu0 %1832  ;;  %v1771_v29 = vld [vmem:[#allocation2 + $0x18a] sm:$0xff] }
 0x1bf   : > { %1081 = vrot.lane.b32.xlu1 %v1571_v13, %s2814_s25  ;;  %1916 = vst.msk [vmem:[#allocation3 + $0x68] sm:$0xff] %vm1902_vm10, %v1833_v60 }
 0x1c0   : > { %1083 = vrot.lane.b32.xlu0 %v1572_v28, %s2814_s25  ;;  %v1770_v28 = vld [vmem:[#allocation2 + $0x182] sm:$0xff] }
 0x1c1   : > { %v1255_v26 = vpop.permute.xlu1 %1254 }
 0x1c2   : > { %1337 = vst.msk [vmem:[#allocation3 + $0x70] sm:$0xff] %vm1322_vm7, %v1255_v26  ;;  %v1449_v42 = vpop.permute.xlu0 %1448 }
 0x1c3   : > { %1850 = vrot.lane.b32.xlu1 %v1764_v0, %s2818_s23  ;;  %1531 = vst.msk [vmem:[#allocation3 + $0x70] sm:$0xff] %vm1516_vm8, %v1449_v42 }
 0x1c4   : > { %1852 = vrot.lane.b32.xlu0 %v1765_v48, %s2818_s23 }
 0x1c5   : > { %v1257_v5 = vpop.permute.xlu1 %1256  ;;  %v1947_v47 = vld [vmem:[#allocation3 + $0x60] sm:$0xff] }
 0x1c6   : > { %1338 = vst.msk [vmem:[#allocation3 + $0x78] sm:$0xff] %vm1322_vm7, %v1257_v5  ;;  %2729 = vmatprep.mubr.msk.f32.mxu0 %vm1976_vm11, %v1947_v47  ;;  %v1451_v27 = vpop.permute.xlu0 %1450  ;;  %v1948_v33 = vld [vmem:[#allocation3 + $0x68] sm:$0xff] }
 0x1c7   : > { %1274 = vrot.lane.b32.xlu1 %v1764_v0, %s2815_s30  ;;  %1532 = vst.msk [vmem:[#allocation3 + $0x78] sm:$0xff] %vm1516_vm8, %v1451_v27  ;;  %2730 = vmatmul.mubr.msk.f32.gmra.mrb[12].mxu0 %vm1976_vm11, %v1948_v33  ;;  %v1387_v33 = vld [vmem:[#allocation2 + $0x1a0] sm:$0xff] }
 0x1c8   : > { %1468 = vrot.lane.b32.xlu0 %v1380_v8, %s2816_s9 }
 0x1c9   : > { %v873_v16 = vpop.permute.xlu1 %872 }
 0x1ca   : > { %953 = vst.msk [vmem:[#allocation3 + $0x80] sm:$0xff] %vm936_vm5, %v873_v16  ;;  %v875_v19 = vpop.permute.xlu0 %874 }
 0x1cb   : > { %1276 = vrot.lane.b32.xlu1 %v1765_v48, %s2815_s30  ;;  %954 = vst.msk [vmem:[#allocation3 + $0x88] sm:$0xff] %vm936_vm5, %v875_v19  ;;  %v1386_v48 = vld [vmem:[#allocation2 + $0x198] sm:$0xff] }
 0x1cc   : > { %1470 = vrot.lane.b32.xlu0 %v1381_v34, %s2816_s9 }
 0x1cd   : > { %v1642_v46 = vpop.permute.xlu1 %1641 }
 0x1ce   : > { %1724 = vst.msk [vmem:[#allocation3 + $0x70] sm:$0xff] %vm1709_vm9, %v1642_v46  ;;  %v1644_v62 = vpop.permute.xlu0 %1643  ;;  %v1580_v46 = vld [vmem:[#allocation2 + $0x1a1] sm:$0xff] }
 0x1cf   : > { %892 = vrot.lane.b32.xlu1 %v1380_v8, %s2813_s24  ;;  %1725 = vst.msk [vmem:[#allocation3 + $0x78] sm:$0xff] %vm1709_vm9, %v1644_v62  ;;  %v1579_v8 = vld [vmem:[#allocation2 + $0x199] sm:$0xff] }
 0x1d0   : > { %894 = vrot.lane.b32.xlu0 %v1381_v34, %s2813_s24  ;;  %v1772_v34 = vld [vmem:[#allocation2 + $0x19a] sm:$0xff] }
 0x1d1   : > { %v1066_v2 = vpop.permute.xlu1 %1065 }
 0x1d2   : > { %1146 = vst.msk [vmem:[#allocation3 + $0x80] sm:$0xff] %vm1129_vm6, %v1066_v2  ;;  %v1068_v25 = vpop.permute.xlu0 %1067  ;;  %v1773_v2 = vld [vmem:[#allocation2 + $0x1a2] sm:$0xff] }
 0x1d3   : > { %1661 = vrot.lane.b32.xlu1 %v1573_v31, %s2817_s22  ;;  %1147 = vst.msk [vmem:[#allocation3 + $0x88] sm:$0xff] %vm1129_vm6, %v1068_v25 }
 0x1d4   : > { %1663 = vrot.lane.b32.xlu0 %v1574_v44, %s2817_s22 }
 0x1d5   : > { %v1835_v63 = vpop.permute.xlu1 %1834 }
 0x1d6   : > { %1917 = vst.msk [vmem:[#allocation3 + $0x70] sm:$0xff] %vm1902_vm10, %v1835_v63  ;;  %v1837_v53 = vpop.permute.xlu0 %1836 }
 0x1d7   : > { %1085 = vrot.lane.b32.xlu1 %v1573_v31, %s2814_s25  ;;  %1918 = vst.msk [vmem:[#allocation3 + $0x78] sm:$0xff] %vm1902_vm10, %v1837_v53 }
 0x1d8   : > { %1087 = vrot.lane.b32.xlu0 %v1574_v44, %s2814_s25 }
 0x1d9   : > { %v1259_v52 = vpop.permute.xlu1 %1258 }
 0x1da   : > { %1339 = vst.msk [vmem:[#allocation3 + $0x80] sm:$0xff] %vm1322_vm7, %v1259_v52  ;;  %v1453_v51 = vpop.permute.xlu0 %1452 }
 0x1db   : > { %1854 = vrot.lane.b32.xlu1 %v1766_v57, %s2818_s23  ;;  %1533 = vst.msk [vmem:[#allocation3 + $0x80] sm:$0xff] %vm1516_vm8, %v1453_v51 }
 0x1dc   : > { %1856 = vrot.lane.b32.xlu0 %v1767_v18, %s2818_s23 }
 0x1dd   : > { %v1261_v7 = vpop.permute.xlu1 %1260  ;;  %v1949_v10 = vld [vmem:[#allocation3 + $0x70] sm:$0xff] }
 0x1de   : > { %1340 = vst.msk [vmem:[#allocation3 + $0x88] sm:$0xff] %vm1322_vm7, %v1261_v7  ;;  %2732 = vmatprep.mubr.msk.f32.mxu0 %vm1976_vm11, %v1949_v10  ;;  %v1455_v21 = vpop.permute.xlu0 %1454  ;;  %v1950_v50 = vld [vmem:[#allocation3 + $0x78] sm:$0xff] }
 0x1df   : > { %1278 = vrot.lane.b32.xlu1 %v1766_v57, %s2815_s30  ;;  %1534 = vst.msk [vmem:[#allocation3 + $0x88] sm:$0xff] %vm1516_vm8, %v1455_v21  ;;  %2733 = vmatmul.mubr.msk.f32.gmra.mrb[14].mxu0 %vm1976_vm11, %v1950_v50 }
 0x1e0   : > { %1472 = vrot.lane.b32.xlu0 %v1382_v30, %s2816_s9 }
 0x1e1   : > { %v877_v35 = vpop.permute.xlu1 %876 }
 0x1e2   : > { %955 = vst.msk [vmem:[#allocation3 + $0x90] sm:$0xff] %vm936_vm5, %v877_v35  ;;  %v879_v56 = vpop.permute.xlu0 %878 }
 0x1e3   : > { %1280 = vrot.lane.b32.xlu1 %v1767_v18, %s2815_s30  ;;  %956 = vst.msk [vmem:[#allocation3 + $0x98] sm:$0xff] %vm936_vm5, %v879_v56 }
 0x1e4   : > { %1474 = vrot.lane.b32.xlu0 %v1383_v1, %s2816_s9 }
 0x1e5   : > { %v1646_v4 = vpop.permute.xlu1 %1645 }
 0x1e6   : > { %1726 = vst.msk [vmem:[#allocation3 + $0x80] sm:$0xff] %vm1709_vm9, %v1646_v4  ;;  %v1648_v38 = vpop.permute.xlu0 %1647 }
 0x1e7   : > { %896 = vrot.lane.b32.xlu1 %v1382_v30, %s2813_s24  ;;  %1727 = vst.msk [vmem:[#allocation3 + $0x88] sm:$0xff] %vm1709_vm9, %v1648_v38 }
 0x1e8   : > { %898 = vrot.lane.b32.xlu0 %v1383_v1, %s2813_s24 }
 0x1e9   : > { %v1070_v12 = vpop.permute.xlu1 %1069 }
 0x1ea   : > { %1148 = vst.msk [vmem:[#allocation3 + $0x90] sm:$0xff] %vm1129_vm6, %v1070_v12  ;;  %v1072_v55 = vpop.permute.xlu0 %1071 }
 0x1eb   : > { %1665 = vrot.lane.b32.xlu1 %v1575_v36, %s2817_s22  ;;  %1149 = vst.msk [vmem:[#allocation3 + $0x98] sm:$0xff] %vm1129_vm6, %v1072_v55 }
 0x1ec   : > { %1667 = vrot.lane.b32.xlu0 %v1576_v59, %s2817_s22 }
 0x1ed   : > { %v1839_v9 = vpop.permute.xlu1 %1838 }
 0x1ee   : > { %1919 = vst.msk [vmem:[#allocation3 + $0x80] sm:$0xff] %vm1902_vm10, %v1839_v9  ;;  %v1841_v39 = vpop.permute.xlu0 %1840 }
 0x1ef   : > { %1089 = vrot.lane.b32.xlu1 %v1575_v36, %s2814_s25  ;;  %1920 = vst.msk [vmem:[#allocation3 + $0x88] sm:$0xff] %vm1902_vm10, %v1841_v39 }
 0x1f0   : > { %1091 = vrot.lane.b32.xlu0 %v1576_v59, %s2814_s25 }
 0x1f1   : > { %v1263_v20 = vpop.permute.xlu1 %1262 }
 0x1f2   : > { %1341 = vst.msk [vmem:[#allocation3 + $0x90] sm:$0xff] %vm1322_vm7, %v1263_v20  ;;  %v1457_v54 = vpop.permute.xlu0 %1456 }
 0x1f3   : > { %1858 = vrot.lane.b32.xlu1 %v1768_v32, %s2818_s23  ;;  %1535 = vst.msk [vmem:[#allocation3 + $0x90] sm:$0xff] %vm1516_vm8, %v1457_v54 }
 0x1f4   : > { %1860 = vrot.lane.b32.xlu0 %v1769_v37, %s2818_s23 }
 0x1f5   : > { %v1265_v14 = vpop.permute.xlu1 %1264  ;;  %v1951_v23 = vld [vmem:[#allocation3 + $0x80] sm:$0xff] }
 0x1f6   : > { %1342 = vst.msk [vmem:[#allocation3 + $0x98] sm:$0xff] %vm1322_vm7, %v1265_v14  ;;  %2735 = vmatprep.mubr.msk.f32.mxu1 %vm1976_vm11, %v1951_v23  ;;  %v1459_v41 = vpop.permute.xlu0 %1458  ;;  %v1952_v45 = vld [vmem:[#allocation3 + $0x88] sm:$0xff] }
 0x1f7   : > { %1282 = vrot.lane.b32.xlu1 %v1768_v32, %s2815_s30  ;;  %1536 = vst.msk [vmem:[#allocation3 + $0x98] sm:$0xff] %vm1516_vm8, %v1459_v41  ;;  %2736 = vmatmul.mubr.msk.f32.vlgmr.msra.gmra.mrb[0].mxu1 %vm1976_vm11, %v1952_v45 }
 0x1f8   : > { %1476 = vrot.lane.b32.xlu0 %v1384_v11, %s2816_s9 }
 0x1f9   : > { %v881_v15 = vpop.permute.xlu1 %880 }
 0x1fa   : > { %957 = vst.msk [vmem:[#allocation3 + $0xa0] sm:$0xff] %vm936_vm5, %v881_v15  ;;  %v883_v6 = vpop.permute.xlu0 %882 }
 0x1fb   : > { %1284 = vrot.lane.b32.xlu1 %v1769_v37, %s2815_s30  ;;  %958 = vst.msk [vmem:[#allocation3 + $0xa8] sm:$0xff] %vm936_vm5, %v883_v6 }
 0x1fc   : > { %1478 = vrot.lane.b32.xlu0 %v1385_v3, %s2816_s9 }
 0x1fd   : > { %v1650_v61 = vpop.permute.xlu1 %1649 }
 0x1fe   : > { %1728 = vst.msk [vmem:[#allocation3 + $0x90] sm:$0xff] %vm1709_vm9, %v1650_v61  ;;  %v1652_v58 = vpop.permute.xlu0 %1651 }
 0x1ff   : > { %900 = vrot.lane.b32.xlu1 %v1384_v11, %s2813_s24  ;;  %1729 = vst.msk [vmem:[#allocation3 + $0x98] sm:$0xff] %vm1709_vm9, %v1652_v58 }
 0x200   : > { %902 = vrot.lane.b32.xlu0 %v1385_v3, %s2813_s24 }
 0x201   : > { %v1074_v40 = vpop.permute.xlu1 %1073 }
 0x202   : > { %1150 = vst.msk [vmem:[#allocation3 + $0xa0] sm:$0xff] %vm1129_vm6, %v1074_v40  ;;  %v1076_v24 = vpop.permute.xlu0 %1075 }
 0x203   : > { %1669 = vrot.lane.b32.xlu1 %v1577_v22, %s2817_s22  ;;  %1151 = vst.msk [vmem:[#allocation3 + $0xa8] sm:$0xff] %vm1129_vm6, %v1076_v24 }
 0x204   : > { %1671 = vrot.lane.b32.xlu0 %v1578_v49, %s2817_s22 }
 0x205   : > { %v1843_v13 = vpop.permute.xlu1 %1842 }
 0x206   : > { %1921 = vst.msk [vmem:[#allocation3 + $0x90] sm:$0xff] %vm1902_vm10, %v1843_v13  ;;  %v1845_v43 = vpop.permute.xlu0 %1844 }
 0x207   : > { %1093 = vrot.lane.b32.xlu1 %v1577_v22, %s2814_s25  ;;  %1922 = vst.msk [vmem:[#allocation3 + $0x98] sm:$0xff] %vm1902_vm10, %v1845_v43 }
 0x208   : > { %1095 = vrot.lane.b32.xlu0 %v1578_v49, %s2814_s25  ;;  %s3776_s25 = scalar_lea.vmem %s3993_s2, %s2650_s18 }
 0x209   : > { %v1267_v17 = vpop.permute.xlu1 %1266 }
 0x20a   : > { %1343 = vst.msk [vmem:[#allocation3 + $0xa0] sm:$0xff] %vm1322_vm7, %v1267_v17  ;;  %v1461_v60 = vpop.permute.xlu0 %1460 }
 0x20b   : > { %1862 = vrot.lane.b32.xlu1 %v1770_v28, %s2818_s23  ;;  %1537 = vst.msk [vmem:[#allocation3 + $0xa0] sm:$0xff] %vm1516_vm8, %v1461_v60 }
 0x20c   : > { %1864 = vrot.lane.b32.xlu0 %v1771_v29, %s2818_s23 }
 0x20d   : > { %v1269_v0 = vpop.permute.xlu1 %1268  ;;  %v1953_v26 = vld [vmem:[#allocation3 + $0x90] sm:$0xff] }
 0x20e   : > { %1344 = vst.msk [vmem:[#allocation3 + $0xa8] sm:$0xff] %vm1322_vm7, %v1269_v0  ;;  %2738 = vmatprep.mubr.msk.f32.mxu1 %vm1976_vm11, %v1953_v26  ;;  %v1463_v42 = vpop.permute.xlu0 %1462  ;;  %v1954_v5 = vld [vmem:[#allocation3 + $0x98] sm:$0xff] }
 0x20f   : > { %1286 = vrot.lane.b32.xlu1 %v1770_v28, %s2815_s30  ;;  %1538 = vst.msk [vmem:[#allocation3 + $0xa8] sm:$0xff] %vm1516_vm8, %v1463_v42  ;;  %2739 = vmatmul.mubr.msk.f32.gmra.mrb[2].mxu1 %vm1976_vm11, %v1954_v5 }
 0x210   : > { %1480 = vrot.lane.b32.xlu0 %v1386_v48, %s2816_s9 }
 0x211   : > { %v885_v47 = vpop.permute.xlu1 %884 }
 0x212   : > { %959 = vst.msk [vmem:[#allocation3 + $0xb0] sm:$0xff] %vm936_vm5, %v885_v47  ;;  %v887_v27 = vpop.permute.xlu0 %886 }
 0x213   : > { %1288 = vrot.lane.b32.xlu1 %v1771_v29, %s2815_s30  ;;  %960 = vst.msk [vmem:[#allocation3 + $0xb8] sm:$0xff] %vm936_vm5, %v887_v27 }
 0x214   : > { %1673 = vrot.lane.b32.xlu0 %v1579_v8, %s2817_s22 }
 0x215   : > { %v1654_v16 = vpop.permute.xlu1 %1653 }
 0x216   : > { %1730 = vst.msk [vmem:[#allocation3 + $0xa0] sm:$0xff] %vm1709_vm9, %v1654_v16  ;;  %v1656_v19 = vpop.permute.xlu0 %1655 }
 0x217   : > { %1482 = vrot.lane.b32.xlu1 %v1387_v33, %s2816_s9  ;;  %1731 = vst.msk [vmem:[#allocation3 + $0xa8] sm:$0xff] %vm1709_vm9, %v1656_v19 }
 0x218   : > { %1866 = vrot.lane.b32.xlu0 %v1772_v34, %s2818_s23 }
 0x219   : > { %v1078_v62 = vpop.permute.xlu1 %1077 }
 0x21a   : > { %1152 = vst.msk [vmem:[#allocation3 + $0xb0] sm:$0xff] %vm1129_vm6, %v1078_v62  ;;  %v1080_v31 = vpop.permute.xlu0 %1079 }
 0x21b   : > { %1675 = vrot.lane.b32.xlu1 %v1580_v46, %s2817_s22  ;;  %1153 = vst.msk [vmem:[#allocation3 + $0xb8] sm:$0xff] %vm1129_vm6, %v1080_v31 }
 0x21d   : > { %v2713_v44 = vpop.f32.mrb[0].mxu0  ;;  %v1847_v25 = vpop.permute.xlu1 %1846 }
 0x21e   : > { %2299 = vst.msk [vmem:[%s3776_s25 + $0x8] sm:$0xff] %vm215_vm0, %v2713_v44  ;;  %v2331_v63 = vsel %vm215_vm0, %v2713_v44, 0.0  ;;  %v2401_v53 = vmul.f32 %v2713_v44, %v2713_v44  ;;  %v2139_v57 = vpop.f32.mrb[1].mxu0  ;;  %v1849_v51 = vpop.permute.xlu0 %1848 }
 0x21f   : > { %1923 = vst.msk [vmem:[#allocation3 + $0xa0] sm:$0xff] %vm1902_vm10, %v1847_v25  ;;  %v2330_v52 = vsel %vm215_vm0, %v2139_v57, 0.0  ;;  %v2400_v18 = vmul.f32 %v2139_v57, %v2139_v57  ;;  %1868 = vrot.lane.b32.xlu1 %v1773_v2, %s2818_s23  ;;  %1924 = vst.msk [vmem:[#allocation3 + $0xa8] sm:$0xff] %vm1902_vm10, %v1849_v51 }
 0x220   : > { %2298 = vst.msk [vmem:[%s3776_s25] sm:$0xff] %vm215_vm0, %v2139_v57  ;;  %v2433_v7 = vsel %vm215_vm0, %v2401_v53, 0.0  ;;  %v2332_v10 = vadd.f32 %v2331_v63, %v2330_v52 }
 0x221   : > { %v2432_v30 = vsel %vm215_vm0, %v2400_v18, 0.0  ;;  %v1271_v21 = vpop.permute.xlu1 %1270 }
 0x222   : > { %v2434_v50 = vadd.f32 %v2433_v7, %v2432_v30  ;;  %1345 = vst.msk [vmem:[#allocation3 + $0xb0] sm:$0xff] %vm1322_vm7, %v1271_v21  ;;  %v1465_v35 = vpop.permute.xlu0 %1464 }
 0x223   : > { %1539 = vst.msk [vmem:[#allocation3 + $0xb0] sm:$0xff] %vm1516_vm8, %v1465_v35 }
 0x225   : > { %v1273_v1 = vpop.permute.xlu1 %1272 }
 0x226   : > { %v1955_v56 = vld [vmem:[#allocation3 + $0xa0] sm:$0xff]  ;;  %1346 = vst.msk [vmem:[#allocation3 + $0xb8] sm:$0xff] %vm1322_vm7, %v1273_v1  ;;  %v1467_v4 = vpop.permute.xlu0 %1466  ;;  %v1956_v38 = vld [vmem:[#allocation3 + $0xa8] sm:$0xff] }
 0x227   : > { %2741 = vmatprep.mubr.msk.f32.mxu1 %vm1976_vm11, %v1955_v56  ;;  %1540 = vst.msk [vmem:[#allocation3 + $0xb8] sm:$0xff] %vm1516_vm8, %v1467_v4 }
 0x228   : > { %2742 = vmatmul.mubr.msk.f32.gmra.mrb[4].mxu1 %vm1976_vm11, %v1956_v38 }
 0x229   : > { %v889_v36 = vpop.permute.xlu1 %888 }
 0x22a   : > { %961 = vst.msk [vmem:[#allocation3 + $0xc0] sm:$0xff] %vm936_vm5, %v889_v36  ;;  %v891_v12 = vpop.permute.xlu0 %890 }
 0x22b   : > { %962 = vst.msk [vmem:[#allocation3 + $0xc8] sm:$0xff] %vm936_vm5, %v891_v12 }
 0x22d   : > { %v1658_v59 = vpop.permute.xlu1 %1657 }
 0x22e   : > { %1732 = vst.msk [vmem:[#allocation3 + $0xb0] sm:$0xff] %vm1709_vm9, %v1658_v59  ;;  %v1660_v55 = vpop.permute.xlu0 %1659 }
 0x22f   : > { %1733 = vst.msk [vmem:[#allocation3 + $0xb8] sm:$0xff] %vm1709_vm9, %v1660_v55 }
 0x231   : > { %v1082_v9 = vpop.permute.xlu1 %1081  ;;  %v2716_v39 = vpop.f32.mrb[2].mxu0 }
 0x232   : > { %1154 = vst.msk [vmem:[#allocation3 + $0xc0] sm:$0xff] %vm1129_vm6, %v1082_v9  ;;  %v2149_v32 = vpop.f32.mrb[3].mxu0  ;;  %v2403_v20 = vmul.f32 %v2716_v39, %v2716_v39  ;;  %v1084_v14 = vpop.permute.xlu0 %1083  ;;  %v2335_v11 = vsel %vm215_vm0, %v2716_v39, 0.0 }
 0x233   : > { %2301 = vst.msk [vmem:[%s3776_s25 + $0x18] sm:$0xff] %vm215_vm0, %v2716_v39  ;;  %2300 = vst.msk [vmem:[%s3776_s25 + $0x10] sm:$0xff] %vm215_vm0, %v2149_v32  ;;  %v2333_v37 = vsel %vm215_vm0, %v2149_v32, 0.0  ;;  %v2402_v54 = vmul.f32 %v2149_v32, %v2149_v32 }
 0x234   : > { %v2334_v23 = vadd.f32 %v2333_v37, %v2332_v10  ;;  %1155 = vst.msk [vmem:[#allocation3 + $0xc8] sm:$0xff] %vm1129_vm6, %v1084_v14  ;;  %v2437_v6 = vsel %vm215_vm0, %v2403_v20, 0.0 }
 0x235   : > { %v2435_v41 = vsel %vm215_vm0, %v2402_v54, 0.0  ;;  %v1851_v45 = vpop.permute.xlu1 %1850 }
 0x236   : > { %v2436_v15 = vadd.f32 %v2435_v41, %v2434_v50  ;;  %1925 = vst.msk [vmem:[#allocation3 + $0xb0] sm:$0xff] %vm1902_vm10, %v1851_v45  ;;  %v2336_v3 = vadd.f32 %v2335_v11, %v2334_v23  ;;  %v1853_v61 = vpop.permute.xlu0 %1852 }
 0x237   : > { %1926 = vst.msk [vmem:[#allocation3 + $0xb8] sm:$0xff] %vm1902_vm10, %v1853_v61 }
 0x238   : > { %v2438_v58 = vadd.f32 %v2437_v6, %v2436_v15 }
 0x239   : > { %v1275_v22 = vpop.permute.xlu1 %1274 }
 0x23a   : > { %1347 = vst.msk [vmem:[#allocation3 + $0xc0] sm:$0xff] %vm1322_vm7, %v1275_v22  ;;  %v1469_v40 = vpop.permute.xlu0 %1468 }
 0x23b   : > { %1541 = vst.msk [vmem:[#allocation3 + $0xc0] sm:$0xff] %vm1516_vm8, %v1469_v40 }
 0x23d   : > { %v1277_v49 = vpop.permute.xlu1 %1276  ;;  %v1957_v24 = vld [vmem:[#allocation3 + $0xb0] sm:$0xff] }
 0x23e   : > { %1348 = vst.msk [vmem:[#allocation3 + $0xc8] sm:$0xff] %vm1322_vm7, %v1277_v49  ;;  %2744 = vmatprep.mubr.msk.f32.mxu1 %vm1976_vm11, %v1957_v24  ;;  %v1471_v13 = vpop.permute.xlu0 %1470  ;;  %v1958_v43 = vld [vmem:[#allocation3 + $0xb8] sm:$0xff] }
 0x23f   : > { %1542 = vst.msk [vmem:[#allocation3 + $0xc8] sm:$0xff] %vm1516_vm8, %v1471_v13  ;;  %2745 = vmatmul.mubr.msk.f32.gmra.mrb[6].mxu1 %vm1976_vm11, %v1958_v43 }
 0x241   : > { %v893_v28 = vpop.permute.xlu1 %892 }
 0x242   : > { %963 = vst.msk [vmem:[#allocation3 + $0xd0] sm:$0xff] %vm936_vm5, %v893_v28  ;;  %v895_v17 = vpop.permute.xlu0 %894 }
 0x243   : > { %964 = vst.msk [vmem:[#allocation3 + $0xd8] sm:$0xff] %vm936_vm5, %v895_v17 }
 0x245   : > { %v1662_v29 = vpop.permute.xlu1 %1661  ;;  %v2719_v60 = vpop.f32.mrb[4].mxu0 }
 0x246   : > { %1734 = vst.msk [vmem:[#allocation3 + $0xc0] sm:$0xff] %vm1709_vm9, %v1662_v29  ;;  %v2159_v0 = vpop.f32.mrb[5].mxu0  ;;  %v2405_v26 = vmul.f32 %v2719_v60, %v2719_v60  ;;  %v1664_v5 = vpop.permute.xlu0 %1663  ;;  %v2339_v8 = vsel %vm215_vm0, %v2719_v60, 0.0 }
 0x247   : > { %2303 = vst.msk [vmem:[%s3776_s25 + $0x28] sm:$0xff] %vm215_vm0, %v2719_v60  ;;  %2302 = vst.msk [vmem:[%s3776_s25 + $0x20] sm:$0xff] %vm215_vm0, %v2159_v0  ;;  %v2337_v48 = vsel %vm215_vm0, %v2159_v0, 0.0  ;;  %v2404_v42 = vmul.f32 %v2159_v0, %v2159_v0 }
 0x248   : > { %v2338_v47 = vadd.f32 %v2337_v48, %v2336_v3  ;;  %1735 = vst.msk [vmem:[#allocation3 + $0xc8] sm:$0xff] %vm1709_vm9, %v1664_v5  ;;  %v2441_v19 = vsel %vm215_vm0, %v2405_v26, 0.0 }
 0x249   : > { %v2439_v27 = vsel %vm215_vm0, %v2404_v42, 0.0  ;;  %v1086_v33 = vpop.permute.xlu1 %1085 }
 0x24a   : > { %v2440_v16 = vadd.f32 %v2439_v27, %v2438_v58  ;;  %1156 = vst.msk [vmem:[#allocation3 + $0xd0] sm:$0xff] %vm1129_vm6, %v1086_v33  ;;  %v2340_v34 = vadd.f32 %v2339_v8, %v2338_v47  ;;  %v1088_v46 = vpop.permute.xlu0 %1087 }
 0x24b   : > { %1157 = vst.msk [vmem:[#allocation3 + $0xd8] sm:$0xff] %vm1129_vm6, %v1088_v46 }
 0x24c   : > { %v2442_v62 = vadd.f32 %v2441_v19, %v2440_v16 }
 0x24d   : > { %v1855_v31 = vpop.permute.xlu1 %1854 }
 0x24e   : > { %1927 = vst.msk [vmem:[#allocation3 + $0xc0] sm:$0xff] %vm1902_vm10, %v1855_v31  ;;  %v1857_v2 = vpop.permute.xlu0 %1856 }
 0x24f   : > { %1928 = vst.msk [vmem:[#allocation3 + $0xc8] sm:$0xff] %vm1902_vm10, %v1857_v2 }
 0x251   : > { %v1279_v44 = vpop.permute.xlu1 %1278 }
 0x252   : > { %1349 = vst.msk [vmem:[#allocation3 + $0xd0] sm:$0xff] %vm1322_vm7, %v1279_v44  ;;  %v1473_v25 = vpop.permute.xlu0 %1472 }
 0x253   : > { %1543 = vst.msk [vmem:[#allocation3 + $0xd0] sm:$0xff] %vm1516_vm8, %v1473_v25 }
 0x255   : > { %v1281_v63 = vpop.permute.xlu1 %1280  ;;  %v1959_v53 = vld [vmem:[#allocation3 + $0xc0] sm:$0xff] }
 0x256   : > { %1350 = vst.msk [vmem:[#allocation3 + $0xd8] sm:$0xff] %vm1322_vm7, %v1281_v63  ;;  %2747 = vmatprep.mubr.msk.f32.mxu1 %vm1976_vm11, %v1959_v53  ;;  %v1475_v57 = vpop.permute.xlu0 %1474  ;;  %v1960_v52 = vld [vmem:[#allocation3 + $0xc8] sm:$0xff] }
 0x257   : > { %1544 = vst.msk [vmem:[#allocation3 + $0xd8] sm:$0xff] %vm1516_vm8, %v1475_v57  ;;  %2748 = vmatmul.mubr.msk.f32.gmra.mrb[8].mxu1 %vm1976_vm11, %v1960_v52 }
 0x259   : > { %v897_v18 = vpop.permute.xlu1 %896  ;;  %v2722_v51 = vpop.f32.mrb[6].mxu0 }
 0x25a   : > { %965 = vst.msk [vmem:[#allocation3 + $0xe0] sm:$0xff] %vm936_vm5, %v897_v18  ;;  %v2169_v7 = vpop.f32.mrb[7].mxu0  ;;  %v2407_v10 = vmul.f32 %v2722_v51, %v2722_v51  ;;  %v899_v50 = vpop.permute.xlu0 %898  ;;  %v2343_v1 = vsel %vm215_vm0, %v2722_v51, 0.0 }
 0x25b   : > { %2305 = vst.msk [vmem:[%s3776_s25 + $0x38] sm:$0xff] %vm215_vm0, %v2722_v51  ;;  %2304 = vst.msk [vmem:[%s3776_s25 + $0x30] sm:$0xff] %vm215_vm0, %v2169_v7  ;;  %v2341_v30 = vsel %vm215_vm0, %v2169_v7, 0.0  ;;  %v2406_v21 = vmul.f32 %v2169_v7, %v2169_v7 }
 0x25c   : > { %v2342_v35 = vadd.f32 %v2341_v30, %v2340_v34  ;;  %966 = vst.msk [vmem:[#allocation3 + $0xe8] sm:$0xff] %vm936_vm5, %v899_v50  ;;  %v2445_v12 = vsel %vm215_vm0, %v2407_v10, 0.0 }
 0x25d   : > { %v2443_v56 = vsel %vm215_vm0, %v2406_v21, 0.0  ;;  %v1666_v4 = vpop.permute.xlu1 %1665 }
 0x25e   : > { %v2444_v38 = vadd.f32 %v2443_v56, %v2442_v62  ;;  %1736 = vst.msk [vmem:[#allocation3 + $0xd0] sm:$0xff] %vm1709_vm9, %v1666_v4  ;;  %v2344_v36 = vadd.f32 %v2343_v1, %v2342_v35  ;;  %v1668_v59 = vpop.permute.xlu0 %1667 }
 0x25f   : > { %1737 = vst.msk [vmem:[#allocation3 + $0xd8] sm:$0xff] %vm1709_vm9, %v1668_v59 }
 0x260   : > { %v2446_v55 = vadd.f32 %v2445_v12, %v2444_v38 }
 0x261   : > { %v1090_v9 = vpop.permute.xlu1 %1089 }
 0x262   : > { %1158 = vst.msk [vmem:[#allocation3 + $0xe0] sm:$0xff] %vm1129_vm6, %v1090_v9  ;;  %v1092_v39 = vpop.permute.xlu0 %1091 }
 0x263   : > { %1159 = vst.msk [vmem:[#allocation3 + $0xe8] sm:$0xff] %vm1129_vm6, %v1092_v39 }
 0x265   : > { %v1859_v32 = vpop.permute.xlu1 %1858 }
 0x266   : > { %1929 = vst.msk [vmem:[#allocation3 + $0xd0] sm:$0xff] %vm1902_vm10, %v1859_v32  ;;  %v1861_v20 = vpop.permute.xlu0 %1860 }
 0x267   : > { %1930 = vst.msk [vmem:[#allocation3 + $0xd8] sm:$0xff] %vm1902_vm10, %v1861_v20 }
 0x269   : > { %v1283_v37 = vpop.permute.xlu1 %1282 }
 0x26a   : > { %1351 = vst.msk [vmem:[#allocation3 + $0xe0] sm:$0xff] %vm1322_vm7, %v1283_v37  ;;  %v1477_v54 = vpop.permute.xlu0 %1476  ;;  %v2725_v14 = vpop.f32.mrb[8].mxu0 }
 0x26b   : > { %1545 = vst.msk [vmem:[#allocation3 + $0xe0] sm:$0xff] %vm1516_vm8, %v1477_v54  ;;  %v2409_v23 = vmul.f32 %v2725_v14, %v2725_v14  ;;  %v2179_v11 = vpop.f32.mrb[9].mxu0  ;;  %v2347_v41 = vsel %vm215_vm0, %v2725_v14, 0.0 }
 0x26c   : > { %2307 = vst.msk [vmem:[%s3776_s25 + $0x48] sm:$0xff] %vm215_vm0, %v2725_v14  ;;  %2306 = vst.msk [vmem:[%s3776_s25 + $0x40] sm:$0xff] %vm215_vm0, %v2179_v11  ;;  %v2345_v45 = vsel %vm215_vm0, %v2179_v11, 0.0  ;;  %v2408_v15 = vmul.f32 %v2179_v11, %v2179_v11 }
 0x26d   : > { %v1285_v3 = vpop.permute.xlu1 %1284  ;;  %v1961_v6 = vld [vmem:[#allocation3 + $0xd0] sm:$0xff]  ;;  %v2346_v61 = vadd.f32 %v2345_v45, %v2344_v36  ;;  %v2449_v58 = vsel %vm215_vm0, %v2409_v23, 0.0 }
 0x26e   : > { %1352 = vst.msk [vmem:[#allocation3 + $0xe8] sm:$0xff] %vm1322_vm7, %v1285_v3  ;;  %2750 = vmatprep.mubr.msk.f32.mxu1 %vm1976_vm11, %v1961_v6  ;;  %v2447_v22 = vsel %vm215_vm0, %v2408_v15, 0.0  ;;  %v1479_v40 = vpop.permute.xlu0 %1478  ;;  %v1962_v49 = vld [vmem:[#allocation3 + $0xd8] sm:$0xff] }
 0x26f   : > { %v2448_v24 = vadd.f32 %v2447_v22, %v2446_v55  ;;  %1546 = vst.msk [vmem:[#allocation3 + $0xe8] sm:$0xff] %vm1516_vm8, %v1479_v40  ;;  %2751 = vmatmul.mubr.msk.f32.gmra.mrb[10].mxu1 %vm1976_vm11, %v1962_v49  ;;  %v2348_v13 = vadd.f32 %v2347_v41, %v2346_v61 }
 0x271   : > { %v901_v43 = vpop.permute.xlu1 %900  ;;  %v2450_v28 = vadd.f32 %v2449_v58, %v2448_v24 }
 0x272   : > { %967 = vst.msk [vmem:[#allocation3 + $0xf0] sm:$0xff] %vm936_vm5, %v901_v43  ;;  %v903_v17 = vpop.permute.xlu0 %902 }
 0x273   : > { %968 = vst.msk [vmem:[#allocation3 + $0xf8] sm:$0xff] %vm936_vm5, %v903_v17 }
 0x275   : > { %v1670_v29 = vpop.permute.xlu1 %1669 }
 0x276   : > { %1738 = vst.msk [vmem:[#allocation3 + $0xe0] sm:$0xff] %vm1709_vm9, %v1670_v29  ;;  %v1672_v60 = vpop.permute.xlu0 %1671 }
 0x277   : > { %1739 = vst.msk [vmem:[#allocation3 + $0xe8] sm:$0xff] %vm1709_vm9, %v1672_v60 }
 0x279   : > { %v1094_v0 = vpop.permute.xlu1 %1093 }
 0x27a   : > { %1160 = vst.msk [vmem:[#allocation3 + $0xf0] sm:$0xff] %vm1129_vm6, %v1094_v0  ;;  %v1096_v26 = vpop.permute.xlu0 %1095 }
 0x27b   : > { %1161 = vst.msk [vmem:[#allocation3 + $0xf8] sm:$0xff] %vm1129_vm6, %v1096_v26 }
 0x27d   : > { %v1863_v48 = vpop.permute.xlu1 %1862 }
 0x27e   : > { %1931 = vst.msk [vmem:[#allocation3 + $0xe0] sm:$0xff] %vm1902_vm10, %v1863_v48  ;;  %v1865_v42 = vpop.permute.xlu0 %1864 }
 0x27f   : > { %1932 = vst.msk [vmem:[#allocation3 + $0xe8] sm:$0xff] %vm1902_vm10, %v1865_v42 }
 0x281   : > { %v1287_v5 = vpop.permute.xlu1 %1286 }
 0x282   : > { %1353 = vst.msk [vmem:[#allocation3 + $0xf0] sm:$0xff] %vm1322_vm7, %v1287_v5  ;;  %v2728_v47 = vpop.f32.mrb[10].mxu0  ;;  %v1481_v8 = vpop.permute.xlu0 %1480 }
 0x283   : > { %2309 = vst.msk [vmem:[%s3776_s25 + $0x58] sm:$0xff] %vm215_vm0, %v2728_v47  ;;  %v2411_v27 = vmul.f32 %v2728_v47, %v2728_v47  ;;  %v2189_v33 = vpop.f32.mrb[11].mxu0  ;;  %v2351_v16 = vsel %vm215_vm0, %v2728_v47, 0.0 }
 0x284   : > { %1547 = vst.msk [vmem:[#allocation3 + $0xf0] sm:$0xff] %vm1516_vm8, %v1481_v8  ;;  %v2349_v34 = vsel %vm215_vm0, %v2189_v33, 0.0  ;;  %v2410_v19 = vmul.f32 %v2189_v33, %v2189_v33 }
 0x285   : > { %2308 = vst.msk [vmem:[%s3776_s25 + $0x50] sm:$0xff] %vm215_vm0, %v2189_v33  ;;  %v1289_v46 = vpop.permute.xlu1 %1288  ;;  %v1963_v62 = vld [vmem:[#allocation3 + $0xe0] sm:$0xff]  ;;  %v2350_v31 = vadd.f32 %v2349_v34, %v2348_v13  ;;  %v2453_v2 = vsel %vm215_vm0, %v2411_v27, 0.0 }
 0x286   : > { %1354 = vst.msk [vmem:[#allocation3 + $0xf8] sm:$0xff] %vm1322_vm7, %v1289_v46  ;;  %2753 = vmatprep.mubr.msk.f32.mxu1 %vm1976_vm11, %v1963_v62  ;;  %v2451_v44 = vsel %vm215_vm0, %v2410_v19, 0.0  ;;  %v1964_v25 = vld [vmem:[#allocation3 + $0xe8] sm:$0xff]  ;;  %v1674_v63 = vpop.permute.xlu0 %1673 }
 0x287   : > { %v2452_v53 = vadd.f32 %v2451_v44, %v2450_v28  ;;  %2754 = vmatmul.mubr.msk.f32.gmra.mrb[12].mxu1 %vm1976_vm11, %v1964_v25  ;;  %1740 = vst.msk [vmem:[#allocation3 + $0xf0] sm:$0xff] %vm1709_vm9, %v1674_v63  ;;  %v2352_v57 = vadd.f32 %v2351_v16, %v2350_v31 }
 0x289   : > { %v1483_v52 = vpop.permute.xlu1 %1482  ;;  %v2454_v18 = vadd.f32 %v2453_v2, %v2452_v53 }
 0x28a   : > { %1548 = vst.msk [vmem:[#allocation3 + $0xf8] sm:$0xff] %vm1516_vm8, %v1483_v52  ;;  %v1867_v51 = vpop.permute.xlu0 %1866 }
 0x28b   : > { %1933 = vst.msk [vmem:[#allocation3 + $0xf0] sm:$0xff] %vm1902_vm10, %v1867_v51 }
 0x28d   : > { %v1676_v7 = vpop.permute.xlu1 %1675 }
 0x28e   : > { %1741 = vst.msk [vmem:[#allocation3 + $0xf8] sm:$0xff] %vm1709_vm9, %v1676_v7 }
 0x291   : > { %v1869_v10 = vpop.permute.xlu1 %1868 }
 0x292   : > { %1934 = vst.msk [vmem:[#allocation3 + $0xf8] sm:$0xff] %vm1902_vm10, %v1869_v10  ;;  %v1965_v30 = vld [vmem:[#allocation3 + $0xf0] sm:$0xff] }
 0x293   : > { %2756 = vmatprep.mubr.msk.f32.mxu1 %vm1976_vm11, %v1965_v30 }
 0x299   : > { %v1966_v21 = vld [vmem:[#allocation3 + $0xf8] sm:$0xff] }
 0x29a   : > { %2757 = vmatmul.mubr.msk.f32.gmra.mrb[14].mxu1 %vm1976_vm11, %v1966_v21  ;;  %v2731_v50 = vpop.f32.mrb[12].mxu0 }
 0x29b   : > { %2311 = vst.msk [vmem:[%s3776_s25 + $0x68] sm:$0xff] %vm215_vm0, %v2731_v50  ;;  %v2413_v35 = vmul.f32 %v2731_v50, %v2731_v50  ;;  %v2199_v1 = vpop.f32.mrb[13].mxu0  ;;  %v2355_v56 = vsel %vm215_vm0, %v2731_v50, 0.0 }
 0x29c   : > { %2310 = vst.msk [vmem:[%s3776_s25 + $0x60] sm:$0xff] %vm215_vm0, %v2199_v1  ;;  %v2353_v4 = vsel %vm215_vm0, %v2199_v1, 0.0  ;;  %v2412_v38 = vmul.f32 %v2199_v1, %v2199_v1 }
 0x29d   : > { %v2354_v36 = vadd.f32 %v2353_v4, %v2352_v57  ;;  %v2457_v12 = vsel %vm215_vm0, %v2413_v35, 0.0 }
 0x29e   : > { %v2455_v59 = vsel %vm215_vm0, %v2412_v38, 0.0 }
 0x29f   : > { %v2456_v55 = vadd.f32 %v2455_v59, %v2454_v18  ;;  %v2356_v9 = vadd.f32 %v2355_v56, %v2354_v36 }
 0x2a1   : > { %v2458_v39 = vadd.f32 %v2457_v12, %v2456_v55 }
 0x2b2   : > { %v2734_v32 = vpop.f32.mrb[14].mxu0 }
 0x2b3   : > { %2313 = vst.msk [vmem:[%s3776_s25 + $0x78] sm:$0xff] %vm215_vm0, %v2734_v32  ;;  %v2415_v20 = vmul.f32 %v2734_v32, %v2734_v32  ;;  %v2209_v37 = vpop.f32.mrb[15].mxu0  ;;  %v2359_v54 = vsel %vm215_vm0, %v2734_v32, 0.0 }
 0x2b4   : > { %2312 = vst.msk [vmem:[%s3776_s25 + $0x70] sm:$0xff] %vm215_vm0, %v2209_v37  ;;  %v2357_v14 = vsel %vm215_vm0, %v2209_v37, 0.0  ;;  %v2414_v23 = vmul.f32 %v2209_v37, %v2209_v37 }
 0x2b5   : > { %v2358_v11 = vadd.f32 %v2357_v14, %v2356_v9  ;;  %v2461_v41 = vsel %vm215_vm0, %v2415_v20, 0.0 }
 0x2b6   : > { %v2459_v45 = vsel %vm215_vm0, %v2414_v23, 0.0 }
 0x2b7   : > { %v2360_v15 = vadd.f32 %v2359_v54, %v2358_v11  ;;  %v2460_v3 = vadd.f32 %v2459_v45, %v2458_v39 }
 0x2b9   : > { %v2462_v6 = vadd.f32 %v2461_v41, %v2460_v3 }
 0x2ca   : > { %v2737_v61 = vpop.f32.mrb[0].mxu1 }
 0x2cb   : > { %2315 = vst.msk [vmem:[%s3776_s25 + $0x88] sm:$0xff] %vm215_vm0, %v2737_v61  ;;  %v2417_v58 = vmul.f32 %v2737_v61, %v2737_v61  ;;  %v2219_v22 = vpop.f32.mrb[1].mxu1  ;;  %v2363_v40 = vsel %vm215_vm0, %v2737_v61, 0.0 }
 0x2cc   : > { %2314 = vst.msk [vmem:[%s3776_s25 + $0x80] sm:$0xff] %vm215_vm0, %v2219_v22  ;;  %v2361_v49 = vsel %vm215_vm0, %v2219_v22, 0.0  ;;  %v2416_v24 = vmul.f32 %v2219_v22, %v2219_v22 }
 0x2cd   : > { %v2362_v13 = vadd.f32 %v2361_v49, %v2360_v15  ;;  %v2465_v43 = vsel %vm215_vm0, %v2417_v58, 0.0 }
 0x2ce   : > { %v2463_v28 = vsel %vm215_vm0, %v2416_v24, 0.0 }
 0x2cf   : > { %v2464_v17 = vadd.f32 %v2463_v28, %v2462_v6  ;;  %v2364_v29 = vadd.f32 %v2363_v40, %v2362_v13 }
 0x2d1   : > { %v2466_v60 = vadd.f32 %v2465_v43, %v2464_v17 }
 0x2e2   : > { %v2740_v0 = vpop.f32.mrb[2].mxu1 }
 0x2e3   : > { %2317 = vst.msk [vmem:[%s3776_s25 + $0x98] sm:$0xff] %vm215_vm0, %v2740_v0  ;;  %v2419_v26 = vmul.f32 %v2740_v0, %v2740_v0  ;;  %v2229_v48 = vpop.f32.mrb[3].mxu1  ;;  %v2367_v42 = vsel %vm215_vm0, %v2740_v0, 0.0 }
 0x2e4   : > { %2316 = vst.msk [vmem:[%s3776_s25 + $0x90] sm:$0xff] %vm215_vm0, %v2229_v48  ;;  %v2365_v5 = vsel %vm215_vm0, %v2229_v48, 0.0  ;;  %v2418_v47 = vmul.f32 %v2229_v48, %v2229_v48 }
 0x2e5   : > { %v2366_v8 = vadd.f32 %v2365_v5, %v2364_v29  ;;  %v2469_v27 = vsel %vm215_vm0, %v2419_v26, 0.0 }
 0x2e6   : > { %v2467_v33 = vsel %vm215_vm0, %v2418_v47, 0.0 }
 0x2e7   : > { %v2468_v16 = vadd.f32 %v2467_v33, %v2466_v60  ;;  %v2368_v34 = vadd.f32 %v2367_v42, %v2366_v8 }
 0x2e9   : > { %v2470_v19 = vadd.f32 %v2469_v27, %v2468_v16 }
 0x2fb   : > { %v2743_v46 = vpop.f32.mrb[4].mxu1 }
 0x2fc   : > { %2319 = vst.msk [vmem:[%s3776_s25 + $0xa8] sm:$0xff] %vm215_vm0, %v2743_v46  ;;  %v2421_v62 = vmul.f32 %v2743_v46, %v2743_v46  ;;  %v2239_v31 = vpop.f32.mrb[5].mxu1  ;;  %v2371_v2 = vsel %vm215_vm0, %v2743_v46, 0.0 }
 0x2fd   : > { %2318 = vst.msk [vmem:[%s3776_s25 + $0xa0] sm:$0xff] %vm215_vm0, %v2239_v31  ;;  %v2369_v44 = vsel %vm215_vm0, %v2239_v31, 0.0  ;;  %v2420_v25 = vmul.f32 %v2239_v31, %v2239_v31 }
 0x2fe   : > { %v2370_v63 = vadd.f32 %v2369_v44, %v2368_v34  ;;  %v2473_v53 = vsel %vm215_vm0, %v2421_v62, 0.0 }
 0x2ff   : > { %v2471_v57 = vsel %vm215_vm0, %v2420_v25, 0.0 }
 0x300   : > { %v2472_v52 = vadd.f32 %v2471_v57, %v2470_v19  ;;  %v2372_v18 = vadd.f32 %v2371_v2, %v2370_v63 }
 0x302   : > { %v2474_v51 = vadd.f32 %v2473_v53, %v2472_v52 }
 0x312   : > { %v2746_v7 = vpop.f32.mrb[6].mxu1 }
 0x313   : > { %2321 = vst.msk [vmem:[%s3776_s25 + $0xb8] sm:$0xff] %vm215_vm0, %v2746_v7  ;;  %v2423_v10 = vmul.f32 %v2746_v7, %v2746_v7  ;;  %v2249_v30 = vpop.f32.mrb[7].mxu1  ;;  %v2375_v21 = vsel %vm215_vm0, %v2746_v7, 0.0 }
 0x314   : > { %2320 = vst.msk [vmem:[%s3776_s25 + $0xb0] sm:$0xff] %vm215_vm0, %v2249_v30  ;;  %v2373_v50 = vsel %vm215_vm0, %v2249_v30, 0.0  ;;  %v2422_v35 = vmul.f32 %v2249_v30, %v2249_v30 }
 0x315   : > { %v2374_v1 = vadd.f32 %v2373_v50, %v2372_v18  ;;  %v2477_v56 = vsel %vm215_vm0, %v2423_v10, 0.0 }
 0x316   : > { %v2475_v4 = vsel %vm215_vm0, %v2422_v35, 0.0 }
 0x317   : > { %v2476_v38 = vadd.f32 %v2475_v4, %v2474_v51  ;;  %v2376_v36 = vadd.f32 %v2375_v21, %v2374_v1 }
 0x319   : > { %v2478_v12 = vadd.f32 %v2477_v56, %v2476_v38 }
 0x32a   : > { %v2749_v59 = vpop.f32.mrb[8].mxu1 }
 0x32b   : > { %2323 = vst.msk [vmem:[%s3776_s25 + $0xc8] sm:$0xff] %vm215_vm0, %v2749_v59  ;;  %v2425_v55 = vmul.f32 %v2749_v59, %v2749_v59  ;;  %v2259_v9 = vpop.f32.mrb[9].mxu1  ;;  %v2379_v39 = vsel %vm215_vm0, %v2749_v59, 0.0 }
 0x32c   : > { %2322 = vst.msk [vmem:[%s3776_s25 + $0xc0] sm:$0xff] %vm215_vm0, %v2259_v9  ;;  %v2377_v32 = vsel %vm215_vm0, %v2259_v9, 0.0  ;;  %v2424_v20 = vmul.f32 %v2259_v9, %v2259_v9 }
 0x32d   : > { %v2378_v37 = vadd.f32 %v2377_v32, %v2376_v36  ;;  %v2481_v54 = vsel %vm215_vm0, %v2425_v55, 0.0 }
 0x32e   : > { %v2479_v14 = vsel %vm215_vm0, %v2424_v20, 0.0 }
 0x32f   : > { %v2480_v23 = vadd.f32 %v2479_v14, %v2478_v12  ;;  %v2380_v11 = vadd.f32 %v2379_v39, %v2378_v37 }
 0x331   : > { %v2482_v41 = vadd.f32 %v2481_v54, %v2480_v23 }
 0x342   : > { %v2752_v45 = vpop.f32.mrb[10].mxu1 }
 0x343   : > { %2325 = vst.msk [vmem:[%s3776_s25 + $0xd8] sm:$0xff] %vm215_vm0, %v2752_v45  ;;  %v2427_v15 = vmul.f32 %v2752_v45, %v2752_v45  ;;  %v2269_v3 = vpop.f32.mrb[11].mxu1  ;;  %v2383_v6 = vsel %vm215_vm0, %v2752_v45, 0.0 }
 0x344   : > { %2324 = vst.msk [vmem:[%s3776_s25 + $0xd0] sm:$0xff] %vm215_vm0, %v2269_v3  ;;  %v2381_v61 = vsel %vm215_vm0, %v2269_v3, 0.0  ;;  %v2426_v58 = vmul.f32 %v2269_v3, %v2269_v3 }
 0x345   : > { %v2382_v22 = vadd.f32 %v2381_v61, %v2380_v11  ;;  %v2485_v40 = vsel %vm215_vm0, %v2427_v15, 0.0 }
 0x346   : > { %v2483_v49 = vsel %vm215_vm0, %v2426_v58, 0.0 }
 0x347   : > { %v2484_v24 = vadd.f32 %v2483_v49, %v2482_v41  ;;  %v2384_v13 = vadd.f32 %v2383_v6, %v2382_v22 }
 0x349   : > { %v2486_v43 = vadd.f32 %v2485_v40, %v2484_v24 }
 0x35a   : > { %v2755_v28 = vpop.f32.mrb[12].mxu1 }
 0x35b   : > { %2327 = vst.msk [vmem:[%s3776_s25 + $0xe8] sm:$0xff] %vm215_vm0, %v2755_v28  ;;  %v2429_v17 = vmul.f32 %v2755_v28, %v2755_v28  ;;  %v2279_v29 = vpop.f32.mrb[13].mxu1  ;;  %v2387_v60 = vsel %vm215_vm0, %v2755_v28, 0.0 }
 0x35c   : > { %2326 = vst.msk [vmem:[%s3776_s25 + $0xe0] sm:$0xff] %vm215_vm0, %v2279_v29  ;;  %v2385_v0 = vsel %vm215_vm0, %v2279_v29, 0.0  ;;  %v2428_v26 = vmul.f32 %v2279_v29, %v2279_v29 }
 0x35d   : > { %v2386_v48 = vadd.f32 %v2385_v0, %v2384_v13  ;;  %v2489_v42 = vsel %vm215_vm0, %v2429_v17, 0.0 }
 0x35e   : > { %v2487_v5 = vsel %vm215_vm0, %v2428_v26, 0.0 }
 0x35f   : > { %v2488_v47 = vadd.f32 %v2487_v5, %v2486_v43  ;;  %v2388_v8 = vadd.f32 %v2387_v60, %v2386_v48 }
 0x361   : > { %v2490_v27 = vadd.f32 %v2489_v42, %v2488_v47 }
 0x36d   : > { %v2758_v33 = vpop.f32.mrb[14].mxu1 }
 0x36e   : > { %2329 = vst.msk [vmem:[%s3776_s25 + $0xf8] sm:$0xff] %vm215_vm0, %v2758_v33  ;;  %v2289_v16 = vpop.f32.mrb[15].mxu1  ;;  %v2431_v34 = vmul.f32 %v2758_v33, %v2758_v33  ;;  %v2391_v31 = vsel %vm215_vm0, %v2758_v33, 0.0 }
 0x36f   : > { %2328 = vst.msk [vmem:[%s3776_s25 + $0xf0] sm:$0xff] %vm215_vm0, %v2289_v16  ;;  %v2389_v19 = vsel %vm215_vm0, %v2289_v16, 0.0  ;;  %v2430_v46 = vmul.f32 %v2289_v16, %v2289_v16 }
 0x370   : > { %v2390_v62 = vadd.f32 %v2389_v19, %v2388_v8  ;;  %v2493_v63 = vsel %vm215_vm0, %v2431_v34, 0.0 }
 0x371   : > { %v2491_v2 = vsel %vm215_vm0, %v2430_v46, 0.0 }
 0x372   : > { %v2392_v44 = vadd.f32 %v2391_v31, %v2390_v62  ;;  %v2492_v25 = vadd.f32 %v2491_v2, %v2490_v27 }
 0x374   : > { %v2393_v53 = vrot.slane %v2392_v44, 4  ;;  %v2494_v57 = vadd.f32 %v2493_v63, %v2492_v25 }
 0x376   : > { %v2394_v52 = vadd.f32 %v2393_v53, %v2392_v44  ;;  %v2495_v18 = vrot.slane %v2494_v57, 4 }
 0x378   : > { %v2395_v51 = vrot.slane %v2394_v52, 2  ;;  %v2496_v7 = vadd.f32 %v2495_v18, %v2494_v57 }
 0x37a   : > { %v2396_v10 = vadd.f32 %v2395_v51, %v2394_v52  ;;  %v2497_v30 = vrot.slane %v2496_v7, 2 }
 0x37c   : > { %v2397_v21 = vrot.slane %v2396_v10, 1  ;;  %v2498_v50 = vadd.f32 %v2497_v30, %v2496_v7 }
 0x37e   : > { %v2398_v35 = vadd.f32 %v2397_v21, %v2396_v10  ;;  %v2499_v1 = vrot.slane %v2498_v50, 1 }
 0x380   : > { %2399 = vst.msk [vmem:[%s211_s29] sm:$0x1] %vm224_vm1, %v2398_v35  ;;  %v2500_v56 = vadd.f32 %v2499_v1, %v2498_v50 }
 0x382   : > { %2501 = vst.msk [vmem:[%s214_s6] sm:$0x1] %vm224_vm1, %v2500_v56 }
 0x383 PF: > { %s15_s15 = sadd.s32 1, %s2808_s15  }
 0x384   : > { %p12_p4 = scmp.ge.s32.totalorder %s15_s15, 4  }
 0x386   :  { %14 = sbr.rel (!%p12_p4) target bundleno = 1 (0x1), region = 85 }

</bundles_post_ra>
